<compile_context>
chip_gen: v7x
topology: tpu7x:2x2x1
jax: 0.10.0
libtpu: 0.0.40
codegen_flags: <defaults>
</compile_context>

<pallas_src>
import jax
import jax.numpy as jnp
from jax.experimental import pallas as pl
from jax.experimental.pallas import tpu as pltpu


LANE = 128  # TPU lane width; last dims are padded to multiples of this.


def _round_up(x, m):
    return ((x + m - 1) // m) * m


def mlp_kernel(x_ref, w1_ref, b1_ref, w2_ref, b2_ref, w3_ref, b3_ref, o_ref):
    # x_ref: (TB, D_in) f32    w1: (D_in, H) bf16   b1: (1, H) f32
    # w2: (H, H) bf16          b2: (1, H) f32
    # w3: (H, D_out) bf16      b3: (1, D_out) f32   o_ref: (TB, D_out) f32
    x = x_ref[...].astype(jnp.bfloat16)

    # Layer 1: Linear -> ReLU   (Dropout = identity in eval)
    h1 = jnp.dot(x, w1_ref[...], preferred_element_type=jnp.float32) + b1_ref[...]
    h1 = jnp.maximum(h1, 0.0)

    # Layer 2: Linear -> ReLU   (Dropout = identity in eval)
    h2 = jnp.dot(h1.astype(jnp.bfloat16), w2_ref[...],
                 preferred_element_type=jnp.float32) + b2_ref[...]
    h2 = jnp.maximum(h2, 0.0)

    # Output head
    out = jnp.dot(h2.astype(jnp.bfloat16), w3_ref[...],
                  preferred_element_type=jnp.float32) + b3_ref[...]
    o_ref[...] = out.astype(o_ref.dtype)


def bloom_filter_mlp(x, params, *, tile_b=256):
    """Runs the 3-layer MLP. Pads batch/features; weights resident in VMEM."""
    w1, b1, w2, b2, w3, b3 = params
    B, D_in = x.shape
    H = w1.shape[1]
    D_out = w3.shape[1]

    # Lane-align feature dims; pick a batch tile that fills MXU rows but does
    # not over-pad tiny batches (B=16 -> one 128-row grid step).
    D_in_p = _round_up(D_in, LANE)
    H_p = _round_up(H, LANE)
    D_out_p = _round_up(D_out, LANE)
    eff_tile = min(tile_b, _round_up(B, LANE))
    B_p = _round_up(B, eff_tile)
    grid = (B_p // eff_tile,)

    f32 = jnp.float32
    bf16 = jnp.bfloat16
    xp = jnp.pad(x.astype(f32), ((0, B_p - B), (0, D_in_p - D_in)))
    w1p = jnp.pad(w1, ((0, D_in_p - D_in), (0, H_p - H))).astype(bf16)
    b1p = jnp.pad(b1, ((0, 0), (0, H_p - H))).astype(f32)
    w2p = jnp.pad(w2, ((0, H_p - H), (0, H_p - H))).astype(bf16)
    b2p = jnp.pad(b2, ((0, 0), (0, H_p - H))).astype(f32)
    w3p = jnp.pad(w3, ((0, H_p - H), (0, D_out_p - D_out))).astype(bf16)
    b3p = jnp.pad(b3, ((0, 0), (0, D_out_p - D_out))).astype(f32)

    def _resident(shape, single_buffer):
        # Constant index_map: same block every grid step (weights stay put).
        kwargs = {}
        if single_buffer:
            kwargs["pipeline_mode"] = pl.Buffered(1)
        return pl.BlockSpec(shape, lambda i: (0,) * len(shape), **kwargs)

    def _run(single_buffer_weights):
        grid_spec = pl.GridSpec(
            grid=grid,
            in_specs=[
                pl.BlockSpec((eff_tile, D_in_p), lambda i: (i, 0)),      # x (batch-tiled)
                _resident((D_in_p, H_p), single_buffer_weights),          # w1
                _resident((1, H_p), single_buffer_weights),               # b1
                _resident((H_p, H_p), single_buffer_weights),             # w2
                _resident((1, H_p), single_buffer_weights),               # b2
                _resident((H_p, D_out_p), single_buffer_weights),         # w3
                _resident((1, D_out_p), single_buffer_weights),           # b3
            ],
            out_specs=pl.BlockSpec((eff_tile, D_out_p), lambda i: (i, 0)),
        )
        return pl.pallas_call(
            mlp_kernel,
            out_shape=jax.ShapeDtypeStruct((B_p, D_out_p), jnp.float32),
            grid_spec=grid_spec,
            compiler_params=pltpu.CompilerParams(
                # Batch axis is independent -> shards across TCs on v7x megacore.
                dimension_semantics=("parallel",),
                # Explicit budget: fits the bf16 weights + a 256-row activation
                # tile with margin on every chip generation (incl. v7x 64 MiB).
                vmem_limit_bytes=32 * 1024 * 1024,
            ),
        )(xp, w1p, b1p, w2p, b2p, w3p, b3p)

    try:
        out = _run(single_buffer_weights=True)
    except Exception:
        # pipeline_mode=pl.Buffered(1) unsupported in this JAX build; fall back
        # to default double-buffering (weights are small, negligible VMEM delta).
        out = _run(single_buffer_weights=False)

    return out[:B, :D_out]


def init_params(key, input_dim, output_dim, hidden_layer):
    # Deterministic synthetic parameters (shapes match nn.Linear layers,
    # stored transposed: (in_features, out_features)).
    ks = jax.random.split(key, 6)
    scale = 0.02
    w1 = scale * jax.random.normal(ks[0], (input_dim, hidden_layer), jnp.float32)
    b1 = scale * jax.random.normal(ks[1], (1, hidden_layer), jnp.float32)
    w2 = scale * jax.random.normal(ks[2], (hidden_layer, hidden_layer), jnp.float32)
    b2 = scale * jax.random.normal(ks[3], (1, hidden_layer), jnp.float32)
    w3 = scale * jax.random.normal(ks[4], (hidden_layer, output_dim), jnp.float32)
    b3 = scale * jax.random.normal(ks[5], (1, output_dim), jnp.float32)
    return (w1, b1, w2, b2, w3, b3)


def reference_mlp(x, params):
    # Mirrors the kernel's numerics: bf16 matmul operands, f32 accumulation,
    # f32 bias/ReLU epilogue (dropout = identity in eval).
    w1, b1, w2, b2, w3, b3 = params
    bf16, f32 = jnp.bfloat16, jnp.float32
    h1 = jnp.dot(x.astype(bf16), w1.astype(bf16), preferred_element_type=f32) + b1
    h1 = jnp.maximum(h1, 0.0)
    h2 = jnp.dot(h1.astype(bf16), w2.astype(bf16), preferred_element_type=f32) + b2
    h2 = jnp.maximum(h2, 0.0)
    return jnp.dot(h2.astype(bf16), w3.astype(bf16), preferred_element_type=f32) + b3


if __name__ == "__main__":
    key = jax.random.PRNGKey(0)
    k_x, k_p = jax.random.split(key)

    # Small shapes consistent with the module.
    batch, input_dim, hidden_layer, output_dim = 16, 256, 512, 128

    x = jax.random.normal(k_x, (batch, input_dim), jnp.float32)
    params = init_params(k_p, input_dim, output_dim, hidden_layer)

    out = bloom_filter_mlp(x, params)
    out = jax.block_until_ready(out)

    ref = reference_mlp(x, params)
    assert out.shape == (batch, output_dim)
    assert jnp.allclose(out, ref, atol=1e-3, rtol=1e-3), "mismatch vs reference"

    print("KERNEL_OK")
</pallas_src>

<mosaic_0001>
module attributes {stable_mosaic.version = 11 : i64} {
  func.func @mlp_kernel(%arg0: i32, %arg1: memref<128x256xf32, #tpu.memory_space<vmem>>, %arg2: memref<256x512xbf16, #tpu.memory_space<vmem>>, %arg3: memref<1x512xf32, #tpu.memory_space<vmem>>, %arg4: memref<512x512xbf16, #tpu.memory_space<vmem>>, %arg5: memref<1x512xf32, #tpu.memory_space<vmem>>, %arg6: memref<512x128xbf16, #tpu.memory_space<vmem>>, %arg7: memref<1x128xf32, #tpu.memory_space<vmem>>, %arg8: memref<128x128xf32, #tpu.memory_space<vmem>>) attributes {dimension_semantics = [#tpu.dimension_semantics<parallel>], iteration_bounds = array<i64: 1>, scalar_prefetch = 0 : i64, scratch_operands = 0 : i64, tpu.core_type = #tpu.core_type<tc>, window_params = [{transform_indices = @transform_0, window_bounds = array<i64: 128, 256>}, {pipeline_mode = #tpu.pipeline_mode<synchronous>, transform_indices = @transform_1, window_bounds = array<i64: 256, 512>}, {pipeline_mode = #tpu.pipeline_mode<synchronous>, transform_indices = @transform_2, window_bounds = array<i64: 1, 512>}, {pipeline_mode = #tpu.pipeline_mode<synchronous>, transform_indices = @transform_3, window_bounds = array<i64: 512, 512>}, {pipeline_mode = #tpu.pipeline_mode<synchronous>, transform_indices = @transform_4, window_bounds = array<i64: 1, 512>}, {pipeline_mode = #tpu.pipeline_mode<synchronous>, transform_indices = @transform_5, window_bounds = array<i64: 512, 128>}, {pipeline_mode = #tpu.pipeline_mode<synchronous>, transform_indices = @transform_6, window_bounds = array<i64: 1, 128>}, {transform_indices = @transform_7, window_bounds = array<i64: 128, 128>}]} {
    %c0 = arith.constant 0 : index
    %c0_0 = arith.constant 0 : index
    %0 = vector.load %arg1[%c0, %c0_0] : memref<128x256xf32, #tpu.memory_space<vmem>>, vector<128x256xf32>
    %1 = arith.truncf %0 : vector<128x256xf32> to vector<128x256xbf16>
    %c0_1 = arith.constant 0 : index
    %c0_2 = arith.constant 0 : index
    %2 = vector.load %arg2[%c0_1, %c0_2] : memref<256x512xbf16, #tpu.memory_space<vmem>>, vector<256x512xbf16>
    %cst = arith.constant dense<0.000000e+00> : vector<128x512xf32>
    %3 = tpu.matmul %1, %2, %cst {dimension_numbers = #tpu.dot_dimension_numbers<[1], [0], [0], [1], [0, 0, 1, 1], [], []>} : vector<128x256xbf16>, vector<256x512xbf16>, vector<128x512xf32> -> vector<128x512xf32>
    %c0_3 = arith.constant 0 : index
    %c0_4 = arith.constant 0 : index
    %4 = vector.load %arg3[%c0_3, %c0_4] : memref<1x512xf32, #tpu.memory_space<vmem>>, vector<1x512xf32>
    %5 = vector.broadcast %4 : vector<1x512xf32> to vector<128x512xf32>
    %6 = arith.addf %3, %5 : vector<128x512xf32>
    %cst_5 = arith.constant 0.000000e+00 : f32
    %7 = vector.broadcast %cst_5 : f32 to vector<128x512xf32>
    %8 = arith.maximumf %6, %7 : vector<128x512xf32>
    %9 = arith.truncf %8 : vector<128x512xf32> to vector<128x512xbf16>
    %c0_6 = arith.constant 0 : index
    %c0_7 = arith.constant 0 : index
    %10 = vector.load %arg4[%c0_6, %c0_7] : memref<512x512xbf16, #tpu.memory_space<vmem>>, vector<512x512xbf16>
    %cst_8 = arith.constant dense<0.000000e+00> : vector<128x512xf32>
    %11 = tpu.matmul %9, %10, %cst_8 {dimension_numbers = #tpu.dot_dimension_numbers<[1], [0], [0], [1], [0, 0, 1, 1], [], []>} : vector<128x512xbf16>, vector<512x512xbf16>, vector<128x512xf32> -> vector<128x512xf32>
    %c0_9 = arith.constant 0 : index
    %c0_10 = arith.constant 0 : index
    %12 = vector.load %arg5[%c0_9, %c0_10] : memref<1x512xf32, #tpu.memory_space<vmem>>, vector<1x512xf32>
    %13 = vector.broadcast %12 : vector<1x512xf32> to vector<128x512xf32>
    %14 = arith.addf %11, %13 : vector<128x512xf32>
    %cst_11 = arith.constant 0.000000e+00 : f32
    %15 = vector.broadcast %cst_11 : f32 to vector<128x512xf32>
    %16 = arith.maximumf %14, %15 : vector<128x512xf32>
    %17 = arith.truncf %16 : vector<128x512xf32> to vector<128x512xbf16>
    %c0_12 = arith.constant 0 : index
    %c0_13 = arith.constant 0 : index
    %18 = vector.load %arg6[%c0_12, %c0_13] : memref<512x128xbf16, #tpu.memory_space<vmem>>, vector<512x128xbf16>
    %cst_14 = arith.constant dense<0.000000e+00> : vector<128x128xf32>
    %19 = tpu.matmul %17, %18, %cst_14 {dimension_numbers = #tpu.dot_dimension_numbers<[1], [0], [0], [1], [0, 0, 1, 1], [], []>} : vector<128x512xbf16>, vector<512x128xbf16>, vector<128x128xf32> -> vector<128x128xf32>
    %c0_15 = arith.constant 0 : index
    %c0_16 = arith.constant 0 : index
    %20 = vector.load %arg7[%c0_15, %c0_16] : memref<1x128xf32, #tpu.memory_space<vmem>>, vector<1x128xf32>
    %21 = vector.broadcast %20 : vector<1x128xf32> to vector<128x128xf32>
    %22 = arith.addf %19, %21 : vector<128x128xf32>
    %c0_17 = arith.constant 0 : index
    %c0_18 = arith.constant 0 : index
    %23 = vector.load %arg8[%c0_17, %c0_18] : memref<128x128xf32, #tpu.memory_space<vmem>>, vector<128x128xf32>
    tpu.vector_store %arg8[%c0_17, %c0_18], %22 {strides = array<i32>} : memref<128x128xf32, #tpu.memory_space<vmem>>, vector<128x128xf32>,
    return
  }
  func.func @transform_0(%arg0: i32) -> (i32, i32) {
    %c0_i32 = arith.constant 0 : i32
    %c0_i32_0 = arith.constant 0 : i32
    return %arg0, %c0_i32 : i32, i32
  }
  func.func @transform_1(%arg0: i32) -> (i32, i32) {
    %c0_i32 = arith.constant 0 : i32
    %c0_i32_0 = arith.constant 0 : i32
    %c0_i32_1 = arith.constant 0 : i32
    return %c0_i32, %c0_i32_0 : i32, i32
  }
  func.func @transform_2(%arg0: i32) -> (i32, i32) {
    %c0_i32 = arith.constant 0 : i32
    %c0_i32_0 = arith.constant 0 : i32
    %c0_i32_1 = arith.constant 0 : i32
    return %c0_i32, %c0_i32_0 : i32, i32
  }
  func.func @transform_3(%arg0: i32) -> (i32, i32) {
    %c0_i32 = arith.constant 0 : i32
    %c0_i32_0 = arith.constant 0 : i32
    %c0_i32_1 = arith.constant 0 : i32
    return %c0_i32, %c0_i32_0 : i32, i32
  }
  func.func @transform_4(%arg0: i32) -> (i32, i32) {
    %c0_i32 = arith.constant 0 : i32
    %c0_i32_0 = arith.constant 0 : i32
    %c0_i32_1 = arith.constant 0 : i32
    return %c0_i32, %c0_i32_0 : i32, i32
  }
  func.func @transform_5(%arg0: i32) -> (i32, i32) {
    %c0_i32 = arith.constant 0 : i32
    %c0_i32_0 = arith.constant 0 : i32
    %c0_i32_1 = arith.constant 0 : i32
    return %c0_i32, %c0_i32_0 : i32, i32
  }
  func.func @transform_6(%arg0: i32) -> (i32, i32) {
    %c0_i32 = arith.constant 0 : i32
    %c0_i32_0 = arith.constant 0 : i32
    %c0_i32_1 = arith.constant 0 : i32
    return %c0_i32, %c0_i32_0 : i32, i32
  }
  func.func @transform_7(%arg0: i32) -> (i32, i32) {
    %c0_i32 = arith.constant 0 : i32
    %c0_i32_0 = arith.constant 0 : i32
    return %arg0, %c0_i32 : i32, i32
  }
}

module attributes {stable_mosaic.version = 11 : i64} {
  func.func @mlp_kernel(%arg0: i32, %arg1: memref<128x256xf32, #tpu.memory_space<vmem>>, %arg2: memref<256x512xbf16, #tpu.memory_space<vmem>>, %arg3: memref<1x512xf32, #tpu.memory_space<vmem>>, %arg4: memref<512x512xbf16, #tpu.memory_space<vmem>>, %arg5: memref<1x512xf32, #tpu.memory_space<vmem>>, %arg6: memref<512x128xbf16, #tpu.memory_space<vmem>>, %arg7: memref<1x128xf32, #tpu.memory_space<vmem>>, %arg8: memref<128x128xf32, #tpu.memory_space<vmem>>) attributes {dimension_semantics = [#tpu.dimension_semantics<parallel>], iteration_bounds = array<i64: 1>, scalar_prefetch = 0 : i64, scratch_operands = 0 : i64, tpu.core_type = #tpu.core_type<tc>, window_params = [{transform_indices = @transform_0, window_bounds = array<i64: 128, 256>}, {pipeline_mode = #tpu.pipeline_mode<synchronous>, transform_indices = @transform_1, window_bounds = array<i64: 256, 512>}, {pipeline_mode = #tpu.pipeline_mode<synchronous>, transform_indices = @transform_2, window_bounds = array<i64: 1, 512>}, {pipeline_mode = #tpu.pipeline_mode<synchronous>, transform_indices = @transform_3, window_bounds = array<i64: 512, 512>}, {pipeline_mode = #tpu.pipeline_mode<synchronous>, transform_indices = @transform_4, window_bounds = array<i64: 1, 512>}, {pipeline_mode = #tpu.pipeline_mode<synchronous>, transform_indices = @transform_5, window_bounds = array<i64: 512, 128>}, {pipeline_mode = #tpu.pipeline_mode<synchronous>, transform_indices = @transform_6, window_bounds = array<i64: 1, 128>}, {transform_indices = @transform_7, window_bounds = array<i64: 128, 128>}]} {
    %c0 = arith.constant 0 : index
    %c0_0 = arith.constant 0 : index
    %0 = vector.load %arg1[%c0, %c0_0] : memref<128x256xf32, #tpu.memory_space<vmem>>, vector<128x256xf32>
    %1 = arith.truncf %0 : vector<128x256xf32> to vector<128x256xbf16>
    %c0_1 = arith.constant 0 : index
    %c0_2 = arith.constant 0 : index
    %2 = vector.load %arg2[%c0_1, %c0_2] : memref<256x512xbf16, #tpu.memory_space<vmem>>, vector<256x512xbf16>
    %cst = arith.constant dense<0.000000e+00> : vector<128x512xf32>
    %3 = tpu.matmul %1, %2, %cst {dimension_numbers = #tpu.dot_dimension_numbers<[1], [0], [0], [1], [0, 0, 1, 1], [], []>} : vector<128x256xbf16>, vector<256x512xbf16>, vector<128x512xf32> -> vector<128x512xf32>
    %c0_3 = arith.constant 0 : index
    %c0_4 = arith.constant 0 : index
    %4 = vector.load %arg3[%c0_3, %c0_4] : memref<1x512xf32, #tpu.memory_space<vmem>>, vector<1x512xf32>
    %5 = vector.broadcast %4 : vector<1x512xf32> to vector<128x512xf32>
    %6 = arith.addf %3, %5 : vector<128x512xf32>
    %cst_5 = arith.constant 0.000000e+00 : f32
    %7 = vector.broadcast %cst_5 : f32 to vector<128x512xf32>
    %8 = arith.maximumf %6, %7 : vector<128x512xf32>
    %9 = arith.truncf %8 : vector<128x512xf32> to vector<128x512xbf16>
    %c0_6 = arith.constant 0 : index
    %c0_7 = arith.constant 0 : index
    %10 = vector.load %arg4[%c0_6, %c0_7] : memref<512x512xbf16, #tpu.memory_space<vmem>>, vector<512x512xbf16>
    %cst_8 = arith.constant dense<0.000000e+00> : vector<128x512xf32>
    %11 = tpu.matmul %9, %10, %cst_8 {dimension_numbers = #tpu.dot_dimension_numbers<[1], [0], [0], [1], [0, 0, 1, 1], [], []>} : vector<128x512xbf16>, vector<512x512xbf16>, vector<128x512xf32> -> vector<128x512xf32>
    %c0_9 = arith.constant 0 : index
    %c0_10 = arith.constant 0 : index
    %12 = vector.load %arg5[%c0_9, %c0_10] : memref<1x512xf32, #tpu.memory_space<vmem>>, vector<1x512xf32>
    %13 = vector.broadcast %12 : vector<1x512xf32> to vector<128x512xf32>
    %14 = arith.addf %11, %13 : vector<128x512xf32>
    %cst_11 = arith.constant 0.000000e+00 : f32
    %15 = vector.broadcast %cst_11 : f32 to vector<128x512xf32>
    %16 = arith.maximumf %14, %15 : vector<128x512xf32>
    %17 = arith.truncf %16 : vector<128x512xf32> to vector<128x512xbf16>
    %c0_12 = arith.constant 0 : index
    %c0_13 = arith.constant 0 : index
    %18 = vector.load %arg6[%c0_12, %c0_13] : memref<512x128xbf16, #tpu.memory_space<vmem>>, vector<512x128xbf16>
    %cst_14 = arith.constant dense<0.000000e+00> : vector<128x128xf32>
    %19 = tpu.matmul %17, %18, %cst_14 {dimension_numbers = #tpu.dot_dimension_numbers<[1], [0], [0], [1], [0, 0, 1, 1], [], []>} : vector<128x512xbf16>, vector<512x128xbf16>, vector<128x128xf32> -> vector<128x128xf32>
    %c0_15 = arith.constant 0 : index
    %c0_16 = arith.constant 0 : index
    %20 = vector.load %arg7[%c0_15, %c0_16] : memref<1x128xf32, #tpu.memory_space<vmem>>, vector<1x128xf32>
    %21 = vector.broadcast %20 : vector<1x128xf32> to vector<128x128xf32>
    %22 = arith.addf %19, %21 : vector<128x128xf32>
    %c0_17 = arith.constant 0 : index
    %c0_18 = arith.constant 0 : index
    %23 = vector.load %arg8[%c0_17, %c0_18] : memref<128x128xf32, #tpu.memory_space<vmem>>, vector<128x128xf32>
    tpu.vector_store %arg8[%c0_17, %c0_18], %22 {strides = array<i32>} : memref<128x128xf32, #tpu.memory_space<vmem>>, vector<128x128xf32>,
    return
  }
  func.func @transform_0(%arg0: i32) -> (i32, i32) {
    %c0_i32 = arith.constant 0 : i32
    %c0_i32_0 = arith.constant 0 : i32
    return %arg0, %c0_i32 : i32, i32
  }
  func.func @transform_1(%arg0: i32) -> (i32, i32) {
    %c0_i32 = arith.constant 0 : i32
    %c0_i32_0 = arith.constant 0 : i32
    %c0_i32_1 = arith.constant 0 : i32
    return %c0_i32, %c0_i32_0 : i32, i32
  }
  func.func @transform_2(%arg0: i32) -> (i32, i32) {
    %c0_i32 = arith.constant 0 : i32
    %c0_i32_0 = arith.constant 0 : i32
    %c0_i32_1 = arith.constant 0 : i32
    return %c0_i32, %c0_i32_0 : i32, i32
  }
  func.func @transform_3(%arg0: i32) -> (i32, i32) {
    %c0_i32 = arith.constant 0 : i32
    %c0_i32_0 = arith.constant 0 : i32
    %c0_i32_1 = arith.constant 0 : i32
    return %c0_i32, %c0_i32_0 : i32, i32
  }
  func.func @transform_4(%arg0: i32) -> (i32, i32) {
    %c0_i32 = arith.constant 0 : i32
    %c0_i32_0 = arith.constant 0 : i32
    %c0_i32_1 = arith.constant 0 : i32
    return %c0_i32, %c0_i32_0 : i32, i32
  }
  func.func @transform_5(%arg0: i32) -> (i32, i32) {
    %c0_i32 = arith.constant 0 : i32
    %c0_i32_0 = arith.constant 0 : i32
    %c0_i32_1 = arith.constant 0 : i32
    return %c0_i32, %c0_i32_0 : i32, i32
  }
  func.func @transform_6(%arg0: i32) -> (i32, i32) {
    %c0_i32 = arith.constant 0 : i32
    %c0_i32_0 = arith.constant 0 : i32
    %c0_i32_1 = arith.constant 0 : i32
    return %c0_i32, %c0_i32_0 : i32, i32
  }
  func.func @transform_7(%arg0: i32) -> (i32, i32) {
    %c0_i32 = arith.constant 0 : i32
    %c0_i32_0 = arith.constant 0 : i32
    return %arg0, %c0_i32 : i32, i32
  }
}

</mosaic_0001>

<bundles_post_ra>
// kernel: tpu_custom_call.1
= control target key start
LH: loop header
LB: loop body
LE: loop exit
PB: predicated region body
PF: predicated region fallthrough
CT: control target
= control target key end

     0   :  { %12 = vsyncpa [#allocation3], 0  ;;  %s4048_s0 = inlined_call_operand.hbm [shape: f32[128,256], index: 0, kind: input, shape index: {}]   ;;  %s4049_s1 = inlined_call_operand.hbm [shape: bf16[256,512], index: 1, kind: input, shape index: {}]   ;;  %s4050_s2 = inlined_call_operand.vmem [shape: f32[1,512], index: 2, kind: input, shape index: {}]   ;;  %s4051_s3 = inlined_call_operand.hbm [shape: bf16[512,512], index: 3, kind: input, shape index: {}]   ;;  %s4052_s4 = inlined_call_operand.vmem [shape: f32[1,512], index: 4, kind: input, shape index: {}]   ;;  %s4053_s5 = inlined_call_operand.hbm [shape: bf16[512,128], index: 5, kind: input, shape index: {}]   ;;  %s4054_s6 = inlined_call_operand.vmem [shape: f32[1,128], index: 6, kind: input, shape index: {}]   ;;  %s4055_s7 = inlined_call_operand.hbm [shape: f32[128,128], index: 7, kind: output, shape index: {}]  }
   0x1   :  { %13 = vsyncpa [#allocation6], 0 }
   0x2   :  { %14 = vsyncpa [#allocation9], 0 }
   0x3   :  { %15 = vsyncpa [#allocation4], 0  ;;  %s3619_s24 = smov [#allocation5]   ;;  %s3620_s26 = smov [#allocation2]  }
   0x4   :  { %s33_s25 = sshll.u32 %s3619_s24, 4  ;;  %s21_s27 = sshll.u32 %s3620_s26, 4  ;;  %s34_s25 = int_to_ptr.vmem [resolvable:$true] %s33_s25  ;;  %s3670_s27 = int_to_ptr.vmem [resolvable:$true] %s21_s27 }
   0x5   :  { %s3501_s30 = scalar_lea.hbm %s4049_s1, 8192 }
   0x6   :  { %p3502_p0 = scmp.ne.s32.totalorder %s4049_s1, %s3501_s30  ;;  %p3505_p1 = scmp.lt.u32.totalorder %s3501_s30, %s4049_s1 }
   0x8   :  { %p3507_p2 = pnand %p3505_p1, %p3502_p0 }
   0xa   :  { %3510 = shalt.err (!%p3507_p2)
}
   0xb   :  { %s3511_s12 = scalar_lea.vmem %s34_s25, 8192  ;;  %p3516_p4 = scmp.lt.s32.totalorder %s34_s25, %s34_s25 }
   0xc   :  { %p3512_p3 = scmp.ne.s32.totalorder %s34_s25, %s3511_s12  ;;  %p3517_p5 = scmp.lt.s32.totalorder %s3511_s12, %s3511_s12 }
   0xe   :  { %p3518_p6 = por %p3517_p5, %p3516_p4 }
  0x10   :  { %p3519_p7 = pnand %p3518_p6, %p3512_p3 }
  0x12   :  { %3522 = shalt.err (!%p3519_p7)
}
  0x13   :  { %s3621_s13 = smov 256   ;;  %s3622_s14 = smov 16  }
  0x14   :  { %39 = dma.hbm_to_vmem [thread:$0]  %s4049_s1, 8192, %s34_s25, [#allocation6], %s3621_s13, %s3621_s13, %s3622_s14  }
  0x15   :  { %s3523_s19 = scalar_lea.hbm %s4048_s0, 4096 }
  0x16   :  { %p3524_p8 = scmp.ne.s32.totalorder %s4048_s0, %s3523_s19  ;;  %p3527_p9 = scmp.lt.u32.totalorder %s3523_s19, %s4048_s0 }
  0x18   :  { %p3529_p10 = pnand %p3527_p9, %p3524_p8 }
  0x1a   :  { %3532 = shalt.err (!%p3529_p10)
}
  0x1b   :  { %s3533_s24 = scalar_lea.vmem %s3670_s27, 4096  ;;  %p3538_p12 = scmp.lt.s32.totalorder %s3670_s27, %s3670_s27 }
  0x1c   :  { %p3534_p11 = scmp.ne.s32.totalorder %s3670_s27, %s3533_s24  ;;  %p3539_p13 = scmp.lt.s32.totalorder %s3533_s24, %s3533_s24 }
  0x1e   :  { %p3540_p0 = por %p3539_p13, %p3538_p12 }
  0x20   :  { %p3541_p1 = pnand %p3540_p0, %p3534_p11 }
  0x22   :  { %3544 = shalt.err (!%p3541_p1)
}
  0x23   :  { %27 = dma.hbm_to_vmem [thread:$0]  %s4048_s0, 4096, %s3670_s27, [#allocation3], %s3621_s13, %s3621_s13, %s3622_s14  }
  0x24   :  { %s3623_s26 = smov [#allocation7]   ;;  %s3624_s29 = smov [#allocation8]  }
  0x25   :  { %s47_s28 = sshll.u32 %s3623_s26, 4  ;;  %s61_s30 = sshll.u32 %s3624_s29, 4  ;;  %s48_s28 = int_to_ptr.vmem [resolvable:$true] %s47_s28  ;;  %s3707_s30 = int_to_ptr.vmem [resolvable:$true] %s61_s30 }
  0x26   :  { %s3545_s10 = scalar_lea.hbm %s4051_s3, 16384 }
  0x27   :  { %p3546_p2 = scmp.ne.s32.totalorder %s4051_s3, %s3545_s10  ;;  %p3549_p3 = scmp.lt.u32.totalorder %s3545_s10, %s4051_s3 }
  0x29   :  { %p3551_p4 = pnand %p3549_p3, %p3546_p2 }
  0x2b   :  { %3554 = shalt.err (!%p3551_p4)
}
  0x2c   :  { %s3555_s0 = scalar_lea.vmem %s48_s28, 16384  ;;  %p3560_p6 = scmp.lt.s32.totalorder %s48_s28, %s48_s28 }
  0x2d   :  { %p3556_p5 = scmp.ne.s32.totalorder %s48_s28, %s3555_s0  ;;  %p3561_p7 = scmp.lt.s32.totalorder %s3555_s0, %s3555_s0 }
  0x2f   :  { %p3562_p8 = por %p3561_p7, %p3560_p6 }
  0x31   :  { %p3563_p9 = pnand %p3562_p8, %p3556_p5 }
  0x33   :  { %3566 = shalt.err (!%p3563_p9)
}
  0x34   :  { %53 = dma.hbm_to_vmem [thread:$0]  %s4051_s3, 16384, %s48_s28, [#allocation6], %s3621_s13, %s3621_s13, %s3622_s14  }
  0x35   :  { %s3567_s20 = scalar_lea.hbm %s4053_s5, 4096 }
  0x36   :  { %p3568_p10 = scmp.ne.s32.totalorder %s4053_s5, %s3567_s20  ;;  %p3571_p11 = scmp.lt.u32.totalorder %s3567_s20, %s4053_s5 }
  0x38   :  { %p3573_p12 = pnand %p3571_p11, %p3568_p10 }
  0x3a   :  { %3576 = shalt.err (!%p3573_p12)
}
  0x3b   :  { %s3577_s1 = scalar_lea.vmem %s3707_s30, 4096  ;;  %p3582_p0 = scmp.lt.s32.totalorder %s3707_s30, %s3707_s30 }
  0x3c   :  { %p3578_p13 = scmp.ne.s32.totalorder %s3707_s30, %s3577_s1  ;;  %p3583_p1 = scmp.lt.s32.totalorder %s3577_s1, %s3577_s1 }
  0x3e   :  { %p3584_p2 = por %p3583_p1, %p3582_p0 }
  0x40   :  { %p3585_p3 = pnand %p3584_p2, %p3578_p13 }
  0x42   :  { %3588 = shalt.err (!%p3585_p3)
}
  0x43   :  { %s3625_s3 = smov 64   ;;  %s3626_s13 = smov 4  }
  0x44   :  { %67 = dma.hbm_to_vmem [thread:$0]  %s4053_s5, 4096, %s3707_s30, [#allocation9], %s3625_s3, %s3625_s3, %s3626_s13  }
  0x45   :  { %3611 = dma.done.wait [#allocation3], 4096  }
  0x46   :  { %3612 = vsyncadd [#allocation3], 4294963200 }
  0x47   :  { %3613 = dma.done.wait [#allocation6], 24576  }
  0x48   :  { %3614 = vsyncadd [#allocation6], 4294942720 }
  0x49   :  { %3615 = dma.done.wait [#allocation9], 4096  }
  0x4a   :  { %3616 = vsyncadd [#allocation9], 4294963200  ;;  %v3181_v0 = vld [vmem:[#allocation5 + $0x4] ss:$16 sps:$4 sm:$0xff]   ;;  %v3183_v1 = vld [vmem:[#allocation5] ss:$16 sps:$4 sm:$0xff]  }
  0x4b   :  { %537 = vmatprep.subr.bf16.mxu0 %v3181_v0  ;;  %v3184_v2 = vld [vmem:[#allocation5 + $0x24] ss:$16 sps:$4 sm:$0xff]   ;;  %v3186_v3 = vld [vmem:[#allocation5 + $0x20] ss:$16 sps:$4 sm:$0xff]   ;;  %v3229_v13 = vld [vmem:[#allocation5 + $0xc] ss:$16 sps:$4 sm:$0xff]  }
  0x4c   :  { %538 = vmatpush1.bf16.msra.mxu0 %v3183_v1  ;;  %v3187_v4 = vld [vmem:[#allocation5 + $0x44] ss:$16 sps:$4 sm:$0xff]   ;;  %v3189_v5 = vld [vmem:[#allocation5 + $0x40] ss:$16 sps:$4 sm:$0xff]   ;;  %v3231_v14 = vld [vmem:[#allocation5 + $0x8] ss:$16 sps:$4 sm:$0xff]   ;;  %650 = vmatprep.subr.bf16.mxu1 %v3229_v13 }
  0x4d   :  { %539 = vmatprep.subr.bf16.mxu0 %v3184_v2  ;;  %v3190_v6 = vld [vmem:[#allocation5 + $0x64] ss:$16 sps:$4 sm:$0xff]   ;;  %v3192_v7 = vld [vmem:[#allocation5 + $0x60] ss:$16 sps:$4 sm:$0xff]   ;;  %v84_v15 = vld [vmem:[#allocation2 + $0x8] sm:$0xff]  ;;  %651 = vmatpush1.bf16.msra.mxu1 %v3231_v14 }
  0x4e   :  { %v3193_v8 = vld [vmem:[#allocation5 + $0x84] ss:$16 sps:$4 sm:$0xff]   ;;  %v3195_v9 = vld [vmem:[#allocation5 + $0x80] ss:$16 sps:$4 sm:$0xff]   ;;  %v86_v18 = vld [vmem:[#allocation2 + $0x18] sm:$0xff] }
  0x4f   :  { %v3196_v10 = vld [vmem:[#allocation5 + $0xa4] ss:$16 sps:$4 sm:$0xff]   ;;  %v3198_v11 = vld [vmem:[#allocation5 + $0xa0] ss:$16 sps:$4 sm:$0xff]   ;;  %v116_v19 = vpack.c.bf16 %v86_v18, %v84_v15  ;;  %v3232_v20 = vld [vmem:[#allocation5 + $0x2c] ss:$16 sps:$4 sm:$0xff]  }
  0x50   :  { %540 = vmatpush1.bf16.msra.mxu0 %v3186_v3  ;;  %v3199_v12 = vld [vmem:[#allocation5 + $0xc4] ss:$16 sps:$4 sm:$0xff]   ;;  %v3201_v16 = vld [vmem:[#allocation5 + $0xc0] ss:$16 sps:$4 sm:$0xff]   ;;  %v3234_v21 = vld [vmem:[#allocation5 + $0x28] ss:$16 sps:$4 sm:$0xff]   ;;  %652 = vmatprep.subr.bf16.mxu1 %v3232_v20 }
  0x51   :  { %541 = vmatprep.subr.bf16.mxu0 %v3187_v4  ;;  %v3202_v17 = vld [vmem:[#allocation5 + $0xe4] ss:$16 sps:$4 sm:$0xff]   ;;  %569 = vmatprep.mubr.bf16.mxu0 %v116_v19  ;;  %v3235_v22 = vld [vmem:[#allocation5 + $0x4c] ss:$16 sps:$4 sm:$0xff]   ;;  %v3204_v23 = vld [vmem:[#allocation5 + $0xe0] ss:$16 sps:$4 sm:$0xff]  }
  0x52   :  { %682 = vmatprep.mubr.bf16.mxu1 %v116_v19  ;;  %v3205_v24 = vld [vmem:[#allocation5 + $0x104] ss:$16 sps:$4 sm:$0xff]   ;;  %653 = vmatpush1.bf16.msra.mxu1 %v3234_v21  ;;  %v3237_v25 = vld [vmem:[#allocation5 + $0x48] ss:$16 sps:$4 sm:$0xff]   ;;  %v3238_v26 = vld [vmem:[#allocation5 + $0x6c] ss:$16 sps:$4 sm:$0xff]  }
  0x53   :  { %654 = vmatprep.subr.bf16.mxu1 %v3235_v22  ;;  %v3207_v27 = vld [vmem:[#allocation5 + $0x100] ss:$16 sps:$4 sm:$0xff]   ;;  %v3208_v28 = vld [vmem:[#allocation5 + $0x124] ss:$16 sps:$4 sm:$0xff]   ;;  %v3240_v29 = vld [vmem:[#allocation5 + $0x68] ss:$16 sps:$4 sm:$0xff]  }
  0x54   :  { %542 = vmatpush1.bf16.msra.mxu0 %v3189_v5  ;;  %v3241_v30 = vld [vmem:[#allocation5 + $0x8c] ss:$16 sps:$4 sm:$0xff]   ;;  %v3210_v31 = vld [vmem:[#allocation5 + $0x120] ss:$16 sps:$4 sm:$0xff]   ;;  %v3211_v32 = vld [vmem:[#allocation5 + $0x144] ss:$16 sps:$4 sm:$0xff]  }
  0x55   :  { %543 = vmatprep.subr.bf16.mxu0 %v3190_v6  ;;  %v3243_v33 = vld [vmem:[#allocation5 + $0x88] ss:$16 sps:$4 sm:$0xff]   ;;  %v3244_v34 = vld [vmem:[#allocation5 + $0xac] ss:$16 sps:$4 sm:$0xff]   ;;  %v3213_v35 = vld [vmem:[#allocation5 + $0x140] ss:$16 sps:$4 sm:$0xff]  }
  0x56   :  { %655 = vmatpush1.bf16.msra.mxu1 %v3237_v25  ;;  %v3214_v36 = vld [vmem:[#allocation5 + $0x164] ss:$16 sps:$4 sm:$0xff]   ;;  %v3246_v37 = vld [vmem:[#allocation5 + $0xa8] ss:$16 sps:$4 sm:$0xff]   ;;  %v3247_v38 = vld [vmem:[#allocation5 + $0xcc] ss:$16 sps:$4 sm:$0xff]  }
  0x57   :  { %656 = vmatprep.subr.bf16.mxu1 %v3238_v26  ;;  %v3216_v39 = vld [vmem:[#allocation5 + $0x160] ss:$16 sps:$4 sm:$0xff]   ;;  %v3217_v40 = vld [vmem:[#allocation5 + $0x184] ss:$16 sps:$4 sm:$0xff]   ;;  %v3249_v41 = vld [vmem:[#allocation5 + $0xc8] ss:$16 sps:$4 sm:$0xff]  }
  0x58   :  { %544 = vmatpush1.bf16.msra.mxu0 %v3192_v7  ;;  %v3250_v42 = vld [vmem:[#allocation5 + $0xec] ss:$16 sps:$4 sm:$0xff]   ;;  %v3219_v43 = vld [vmem:[#allocation5 + $0x180] ss:$16 sps:$4 sm:$0xff]   ;;  %v3220_v44 = vld [vmem:[#allocation5 + $0x1a4] ss:$16 sps:$4 sm:$0xff]  }
  0x59   :  { %545 = vmatprep.subr.bf16.mxu0 %v3193_v8  ;;  %v3252_v45 = vld [vmem:[#allocation5 + $0xe8] ss:$16 sps:$4 sm:$0xff]   ;;  %v3253_v46 = vld [vmem:[#allocation5 + $0x10c] ss:$16 sps:$4 sm:$0xff]   ;;  %v3222_v47 = vld [vmem:[#allocation5 + $0x1a0] ss:$16 sps:$4 sm:$0xff]  }
  0x5a   :  { %657 = vmatpush1.bf16.msra.mxu1 %v3240_v29  ;;  %v3223_v48 = vld [vmem:[#allocation5 + $0x1c4] ss:$16 sps:$4 sm:$0xff]   ;;  %v3255_v49 = vld [vmem:[#allocation5 + $0x108] ss:$16 sps:$4 sm:$0xff]   ;;  %v3256_v50 = vld [vmem:[#allocation5 + $0x12c] ss:$16 sps:$4 sm:$0xff]  }
  0x5b   :  { %658 = vmatprep.subr.bf16.mxu1 %v3241_v30  ;;  %v3225_v51 = vld [vmem:[#allocation5 + $0x1c0] ss:$16 sps:$4 sm:$0xff]   ;;  %v3226_v52 = vld [vmem:[#allocation5 + $0x1e4] ss:$16 sps:$4 sm:$0xff]   ;;  %v3258_v55 = vld [vmem:[#allocation5 + $0x128] ss:$16 sps:$4 sm:$0xff]  }
  0x5c   :  { %546 = vmatpush1.bf16.msra.mxu0 %v3195_v9  ;;  %v3228_v53 = vld [vmem:[#allocation5 + $0x1e0] ss:$16 sps:$4 sm:$0xff]   ;;  %v3259_v57 = vld [vmem:[#allocation5 + $0x14c] ss:$16 sps:$4 sm:$0xff]   ;;  %v3279_v60 = vld [vmem:[#allocation7 + $0x4] ss:$16 sps:$4 sm:$0xff]  }
  0x5d   :  { %547 = vmatprep.subr.bf16.mxu0 %v3196_v10  ;;  %v83_v54 = vld [vmem:[#allocation2] sm:$0xff]  ;;  %v85_v56 = vld [vmem:[#allocation2 + $0x10] sm:$0xff]  ;;  %v88_v58 = vld [vmem:[#allocation2 + $0x28] sm:$0xff] }
  0x5e   :  { %659 = vmatpush1.bf16.msra.mxu1 %v3243_v33  ;;  %v90_v59 = vld [vmem:[#allocation2 + $0x38] sm:$0xff]  ;;  %v3741_v62 = vpack.c.bf16 %v85_v56, %v83_v54  ;;  %v3277_v1 = vld [vmem:[#allocation7] ss:$16 sps:$4 sm:$0xff]   ;;  %v3285_v2 = vld [vmem:[#allocation7 + $0x24] ss:$16 sps:$4 sm:$0xff]  }
  0x5f   :  { %660 = vmatprep.subr.bf16.mxu1 %v3244_v34  ;;  %v3261_v61 = vld [vmem:[#allocation5 + $0x148] ss:$16 sps:$4 sm:$0xff]   ;;  %v3262_v63 = vld [vmem:[#allocation5 + $0x16c] ss:$16 sps:$4 sm:$0xff]   ;;  %v3743_v0 = vpack.c.bf16 %v90_v59, %v88_v58  ;;  %v87_v3 = vld [vmem:[#allocation2 + $0x20] sm:$0xff] }
  0x60   :  { %548 = vmatpush1.bf16.msra.mxu0 %v3198_v11  ;;  %v89_v4 = vld [vmem:[#allocation2 + $0x30] sm:$0xff]  ;;  %v3264_v5 = vld [vmem:[#allocation5 + $0x168] ss:$16 sps:$4 sm:$0xff]   ;;  %v3265_v7 = vld [vmem:[#allocation5 + $0x18c] ss:$16 sps:$4 sm:$0xff]  }
  0x61   :  { %549 = vmatprep.subr.bf16.mxu0 %v3199_v12  ;;  %v92_v6 = vld [vmem:[#allocation2 + $0x48] sm:$0xff]  ;;  %v94_v8 = vld [vmem:[#allocation2 + $0x58] sm:$0xff]  ;;  %v3283_v9 = vld [vmem:[#allocation7 + $0x20] ss:$16 sps:$4 sm:$0xff]   ;;  %v3747_v12 = vpack.c.bf16 %v89_v4, %v87_v3 }
  0x62   :  { %661 = vmatpush1.bf16.msra.mxu1 %v3246_v37  ;;  %v3291_v10 = vld [vmem:[#allocation7 + $0x44] ss:$16 sps:$4 sm:$0xff]   ;;  %v3267_v11 = vld [vmem:[#allocation5 + $0x188] ss:$16 sps:$4 sm:$0xff]   ;;  %v3268_v13 = vld [vmem:[#allocation5 + $0x1ac] ss:$16 sps:$4 sm:$0xff]   ;;  %v3749_v14 = vpack.c.bf16 %v94_v8, %v92_v6 }
  0x63   :  { %662 = vmatprep.subr.bf16.mxu1 %v3247_v38  ;;  %v3289_v15 = vld [vmem:[#allocation7 + $0x40] ss:$16 sps:$4 sm:$0xff]   ;;  %v3270_v19 = vld [vmem:[#allocation5 + $0x1a8] ss:$16 sps:$4 sm:$0xff]   ;;  %v3271_v21 = vld [vmem:[#allocation5 + $0x1cc] ss:$16 sps:$4 sm:$0xff]  }
  0x64   :  { %550 = vmatpush1.bf16.msra.mxu0 %v3201_v16  ;;  %v3297_v16 = vld [vmem:[#allocation7 + $0x64] ss:$16 sps:$4 sm:$0xff]   ;;  %v96_v20 = vld [vmem:[#allocation2 + $0x68] sm:$0xff]  ;;  %v98_v22 = vld [vmem:[#allocation2 + $0x78] sm:$0xff] }
  0x65   :  { %551 = vmatprep.subr.bf16.mxu0 %v3202_v17  ;;  %v91_v17 = vld [vmem:[#allocation2 + $0x40] sm:$0xff]  ;;  %v93_v18 = vld [vmem:[#allocation2 + $0x50] sm:$0xff]  ;;  %v3273_v25 = vld [vmem:[#allocation5 + $0x1c8] ss:$16 sps:$4 sm:$0xff]  }
  0x66   :  { %663 = vmatpush1.bf16.msra.mxu1 %v3249_v41  ;;  %v3753_v26 = vpack.c.bf16 %v93_v18, %v91_v17  ;;  %v3301_v29 = vld [vmem:[#allocation7 + $0x80] ss:$16 sps:$4 sm:$0xff]   ;;  %v3309_v30 = vld [vmem:[#allocation7 + $0xa4] ss:$16 sps:$4 sm:$0xff]   ;;  %v3276_v33 = vld [vmem:[#allocation5 + $0x1e8] ss:$16 sps:$4 sm:$0xff]  }
  0x67   :  { %664 = vmatprep.subr.bf16.mxu1 %v3250_v42  ;;  %v100_v34 = vld [vmem:[#allocation2 + $0x88] sm:$0xff]  ;;  %v3307_v37 = vld [vmem:[#allocation7 + $0xa0] ss:$16 sps:$4 sm:$0xff]   ;;  %v3315_v38 = vld [vmem:[#allocation7 + $0xc4] ss:$16 sps:$4 sm:$0xff]  }
  0x68   :  { %552 = vmatpush1.bf16.msra.mxu0 %v3204_v23  ;;  %v3295_v23 = vld [vmem:[#allocation7 + $0x60] ss:$16 sps:$4 sm:$0xff]   ;;  %v3288_v41 = vld [vmem:[#allocation7 + $0x2c] ss:$16 sps:$4 sm:$0xff]   ;;  %v3298_v59 = vld [vmem:[#allocation7 + $0x68] ss:$16 sps:$4 sm:$0xff]  }
  0x69   :  { %553 = vmatprep.subr.bf16.mxu0 %v3205_v24  ;;  %v3303_v24 = vld [vmem:[#allocation7 + $0x84] ss:$16 sps:$4 sm:$0xff]   ;;  %v3300_v54 = vld [vmem:[#allocation7 + $0x6c] ss:$16 sps:$4 sm:$0xff]   ;;  %v3304_v3 = vld [vmem:[#allocation7 + $0x88] ss:$16 sps:$4 sm:$0xff]  }
  0x6a   :  { %665 = vmatpush1.bf16.msra.mxu1 %v3252_v45  ;;  %v99_v45 = vld [vmem:[#allocation2 + $0x80] sm:$0xff]  ;;  %v3312_v4 = vld [vmem:[#allocation7 + $0xac] ss:$16 sps:$4 sm:$0xff]   ;;  %v3316_v17 = vld [vmem:[#allocation7 + $0xc8] ss:$16 sps:$4 sm:$0xff]  }
  0x6b   :  { %666 = vmatprep.subr.bf16.mxu1 %v3253_v46  ;;  %v101_v46 = vld [vmem:[#allocation2 + $0x90] sm:$0xff]  ;;  %v3324_v18 = vld [vmem:[#allocation7 + $0xec] ss:$16 sps:$4 sm:$0xff]  }
  0x6c   :  { %554 = vmatpush1.bf16.msra.mxu0 %v3207_v27  ;;  %v3274_v27 = vld [vmem:[#allocation5 + $0x1ec] ss:$16 sps:$4 sm:$0xff]   ;;  %v3767_v56 = vpack.c.bf16 %v101_v46, %v99_v45  ;;  %v3367_v46 = vld [vmem:[#allocation7 + $0x1e0] ss:$16 sps:$4 sm:$0xff]  }
  0x6d   :  { %555 = vmatprep.subr.bf16.mxu0 %v3208_v28  ;;  %v3755_v28 = vpack.c.bf16 %v98_v22, %v96_v20  ;;  %v3372_v45 = vld [vmem:[#allocation7 + $0x1ec] ss:$16 sps:$4 sm:$0xff]  }
  0x6e   :  { %667 = vmatpush1.bf16.msra.mxu1 %v3255_v49  ;;  %v106_v49 = vld [vmem:[#allocation2 + $0xb8] sm:$0xff] }
  0x6f   :  { %668 = vmatprep.subr.bf16.mxu1 %v3256_v50  ;;  %v3294_v50 = vld [vmem:[#allocation7 + $0x4c] ss:$16 sps:$4 sm:$0xff]  }
  0x70   :  { %556 = vmatpush1.bf16.msra.mxu0 %v3210_v31  ;;  %v95_v31 = vld [vmem:[#allocation2 + $0x60] sm:$0xff] }
  0x71   :  { %557 = vmatprep.subr.bf16.mxu0 %v3211_v32  ;;  %v97_v32 = vld [vmem:[#allocation2 + $0x70] sm:$0xff] }
  0x72   :  { %669 = vmatpush1.bf16.msra.mxu1 %v3258_v55  ;;  %v3325_v55 = vld [vmem:[#allocation7 + $0x100] ss:$16 sps:$4 sm:$0xff]  }
  0x73   :  { %670 = vmatprep.subr.bf16.mxu1 %v3259_v57  ;;  %v3333_v57 = vld [vmem:[#allocation7 + $0x124] ss:$16 sps:$4 sm:$0xff]  }
  0x74   :  { %558 = vmatpush1.bf16.msra.mxu0 %v3213_v35  ;;  %v3282_v35 = vld [vmem:[#allocation7 + $0xc] ss:$16 sps:$4 sm:$0xff]  }
  0x75   :  { %559 = vmatprep.subr.bf16.mxu0 %v3214_v36  ;;  %v102_v36 = vld [vmem:[#allocation2 + $0x98] sm:$0xff] }
  0x76   :  { %671 = vmatpush1.bf16.msra.mxu1 %v3261_v61  ;;  %v3761_v42 = vpack.c.bf16 %v102_v36, %v100_v34  ;;  %v103_v61 = vld [vmem:[#allocation2 + $0xa0] sm:$0xff]  ;;  %v3348_v34 = vld [vmem:[#allocation7 + $0x16c] ss:$16 sps:$4 sm:$0xff]  }
  0x77   :  { %672 = vmatprep.subr.bf16.mxu1 %v3262_v63  ;;  %v3331_v63 = vld [vmem:[#allocation7 + $0x120] ss:$16 sps:$4 sm:$0xff]   ;;  %v3354_v36 = vld [vmem:[#allocation7 + $0x18c] ss:$16 sps:$4 sm:$0xff]  }
  0x78   :  { %560 = vmatpush1.bf16.msra.mxu0 %v3216_v39  ;;  %v3280_v39 = vld [vmem:[#allocation7 + $0x8] ss:$16 sps:$4 sm:$0xff]  }
  0x79   :  { %561 = vmatprep.subr.bf16.mxu0 %v3217_v40  ;;  %v3759_v40 = vpack.c.bf16 %v97_v32, %v95_v31  ;;  %v3334_v31 = vld [vmem:[#allocation7 + $0x128] ss:$16 sps:$4 sm:$0xff]   ;;  %v3342_v32 = vld [vmem:[#allocation7 + $0x14c] ss:$16 sps:$4 sm:$0xff]  }
  0x7a   :  { %673 = vmatpush1.bf16.msra.mxu1 %v3264_v5  ;;  %v3337_v5 = vld [vmem:[#allocation7 + $0x140] ss:$16 sps:$4 sm:$0xff]  }
  0x7b   :  { %674 = vmatprep.subr.bf16.mxu1 %v3265_v7  ;;  %v3345_v7 = vld [vmem:[#allocation7 + $0x164] ss:$16 sps:$4 sm:$0xff]  }
  0x7c   :  { %562 = vmatpush1.bf16.msra.mxu0 %v3219_v43  ;;  %v3313_v43 = vld [vmem:[#allocation7 + $0xc0] ss:$16 sps:$4 sm:$0xff]  }
  0x7d   :  { %563 = vmatprep.subr.bf16.mxu0 %v3220_v44  ;;  %v3321_v44 = vld [vmem:[#allocation7 + $0xe4] ss:$16 sps:$4 sm:$0xff]  }
  0x7e   :  { %675 = vmatpush1.bf16.msra.mxu1 %v3267_v11  ;;  %v107_v11 = vld [vmem:[#allocation2 + $0xc0] sm:$0xff] }
  0x7f   :  { %676 = vmatprep.subr.bf16.mxu1 %v3268_v13  ;;  %v3343_v13 = vld [vmem:[#allocation7 + $0x160] ss:$16 sps:$4 sm:$0xff]  }
  0x80   :  { %564 = vmatpush1.bf16.msra.mxu0 %v3222_v47  ;;  %v3286_v47 = vld [vmem:[#allocation7 + $0x28] ss:$16 sps:$4 sm:$0xff]  }
  0x81   :  { %565 = vmatprep.subr.bf16.mxu0 %v3223_v48  ;;  %v104_v48 = vld [vmem:[#allocation2 + $0xa8] sm:$0xff] }
  0x82   :  { %677 = vmatpush1.bf16.msra.mxu1 %v3270_v19  ;;  %v3769_v58 = vpack.c.bf16 %v106_v49, %v104_v48  ;;  %v3349_v19 = vld [vmem:[#allocation7 + $0x180] ss:$16 sps:$4 sm:$0xff]   ;;  %v3375_v48 = vld [vmem:[#allocation7 + $0x204] ss:$16 sps:$4 sm:$0xff]   ;;  %v3378_v49 = vld [vmem:[#allocation7 + $0x20c] ss:$16 sps:$4 sm:$0xff]  }
  0x83   :  { %678 = vmatprep.subr.bf16.mxu1 %v3271_v21  ;;  %v3357_v21 = vld [vmem:[#allocation7 + $0x1a4] ss:$16 sps:$4 sm:$0xff]  }
  0x84   :  { %566 = vmatpush1.bf16.msra.mxu0 %v3225_v51  ;;  %v3319_v51 = vld [vmem:[#allocation7 + $0xe0] ss:$16 sps:$4 sm:$0xff]  }
  0x85   :  { %567 = vmatprep.subr.bf16.mxu0 %v3226_v52  ;;  %v3327_v52 = vld [vmem:[#allocation7 + $0x104] ss:$16 sps:$4 sm:$0xff]  }
  0x86   :  { %679 = vmatpush1.bf16.msra.mxu1 %v3273_v25  ;;  %v111_v25 = vld [vmem:[#allocation2 + $0xe0] sm:$0xff] }
  0x87   :  { %680 = vmatprep.subr.bf16.mxu1 %v3274_v27  ;;  %v3355_v27 = vld [vmem:[#allocation7 + $0x1a0] ss:$16 sps:$4 sm:$0xff]  }
  0x88   :  { %568 = vmatpush1.bf16.msra.mxu0 %v3228_v53  ;;  %v3292_v53 = vld [vmem:[#allocation7 + $0x48] ss:$16 sps:$4 sm:$0xff]  }
  0x89   :  { %1649 = vmatprep.subr.bf16.mxu0 %v3279_v60  ;;  %v3306_v60 = vld [vmem:[#allocation7 + $0x8c] ss:$16 sps:$4 sm:$0xff]  }
  0x8a   :  { %681 = vmatpush1.bf16.msra.mxu1 %v3276_v33  ;;  %v3340_v33 = vld [vmem:[#allocation7 + $0x148] ss:$16 sps:$4 sm:$0xff]  }
  0x8b   :  { %570 = vmatmul.mubr.bf16.vlgmr.msra.gmra.mrb[0].mxu0 %v3741_v62  ;;  %1875 = vmatprep.subr.bf16.mxu1 %v3282_v35  ;;  %v3346_v35 = vld [vmem:[#allocation7 + $0x168] ss:$16 sps:$4 sm:$0xff]  }
  0x8c   :  { %579 = vmatprep.mubr.bf16.mxu0 %v3743_v0  ;;  %1650 = vmatpush1.bf16.msra.mxu0 %v3277_v1  ;;  %v110_v1 = vld [vmem:[#allocation2 + $0xd8] sm:$0xff] }
  0x8d   :  { %1651 = vmatprep.subr.bf16.mxu0 %v3285_v2  ;;  %683 = vmatmul.mubr.bf16.vlgmr.msra.gmra.mrb[0].mxu1 %v3741_v62  ;;  %v105_v62 = vld [vmem:[#allocation2 + $0xb0] sm:$0xff] }
  0x8e   :  { %692 = vmatprep.mubr.bf16.mxu1 %v3743_v0  ;;  %1876 = vmatpush1.bf16.msra.mxu1 %v3280_v39  ;;  %v108_v0 = vld [vmem:[#allocation2 + $0xc8] sm:$0xff]  ;;  %v3339_v2 = vld [vmem:[#allocation7 + $0x144] ss:$16 sps:$4 sm:$0xff]   ;;  %v125_v6 = vpack.c.bf16 %v105_v62, %v103_v61 }
  0x8f   :  { %1877 = vmatprep.subr.bf16.mxu1 %v3288_v41  ;;  %v128_v8 = vpack.c.bf16 %v110_v1, %v108_v0  ;;  %v3358_v39 = vld [vmem:[#allocation7 + $0x1a8] ss:$16 sps:$4 sm:$0xff]   ;;  %v3366_v41 = vld [vmem:[#allocation7 + $0x1cc] ss:$16 sps:$4 sm:$0xff]  }
  0x90   :  { %1652 = vmatpush1.bf16.msra.mxu0 %v3283_v9  ;;  %v3310_v9 = vld [vmem:[#allocation7 + $0xa8] ss:$16 sps:$4 sm:$0xff]  }
  0x91   :  { %1653 = vmatprep.subr.bf16.mxu0 %v3291_v10  ;;  %v3318_v10 = vld [vmem:[#allocation7 + $0xcc] ss:$16 sps:$4 sm:$0xff]  }
  0x92   :  { %1878 = vmatpush1.bf16.msra.mxu1 %v3286_v47  ;;  %v3370_v47 = vld [vmem:[#allocation7 + $0x1e8] ss:$16 sps:$4 sm:$0xff]  }
  0x93   :  { %580 = vmatmul.mubr.bf16.gmra.mrb[4].mxu0 %v3747_v12  ;;  %1879 = vmatprep.subr.bf16.mxu1 %v3294_v50  ;;  %v197_v50 = vlaneseq }
  0x94   :  { %589 = vmatprep.mubr.bf16.mxu0 %v3749_v14  ;;  %1654 = vmatpush1.bf16.msra.mxu0 %v3289_v15  ;;  %v114_v15 = vld [vmem:[#allocation2 + $0xf8] sm:$0xff] }
  0x95   :  { %1655 = vmatprep.subr.bf16.mxu0 %v3297_v16  ;;  %693 = vmatmul.mubr.bf16.gmra.mrb[4].mxu1 %v3747_v12  ;;  %v109_v12 = vld [vmem:[#allocation2 + $0xd0] sm:$0xff] }
  0x96   :  { %702 = vmatprep.mubr.bf16.mxu1 %v3749_v14  ;;  %1880 = vmatpush1.bf16.msra.mxu1 %v3292_v53  ;;  %v112_v14 = vld [vmem:[#allocation2 + $0xe8] sm:$0xff]  ;;  %v3351_v16 = vld [vmem:[#allocation7 + $0x184] ss:$16 sps:$4 sm:$0xff]   ;;  %v127_v20 = vpack.c.bf16 %v109_v12, %v107_v11  ;;  %v3787_v53 = vld [vmem:[%s4050_s2] sm:$0xf] }
  0x97   :  { %1881 = vmatprep.subr.bf16.mxu1 %v3300_v54  ;;  %v130_v22 = vpack.c.bf16 %v114_v15, %v112_v14  ;;  %v3381_v12 = vld [vmem:[#allocation7 + $0x224] ss:$16 sps:$4 sm:$0xff]  }
  0x98   :  { %1656 = vmatpush1.bf16.msra.mxu0 %v3295_v23  ;;  %v3322_v23 = vld [vmem:[#allocation7 + $0xe8] ss:$16 sps:$4 sm:$0xff]  }
  0x99   :  { %1657 = vmatprep.subr.bf16.mxu0 %v3303_v24  ;;  %v3330_v24 = vld [vmem:[#allocation7 + $0x10c] ss:$16 sps:$4 sm:$0xff]  }
  0x9a   :  { %1882 = vmatpush1.bf16.msra.mxu1 %v3298_v59 }
  0x9b   :  { %590 = vmatmul.mubr.bf16.gmra.mrb[8].mxu0 %v3753_v26  ;;  %1883 = vmatprep.subr.bf16.mxu1 %v3306_v60 }
  0x9c   :  { %599 = vmatprep.mubr.bf16.mxu0 %v3755_v28  ;;  %1658 = vmatpush1.bf16.msra.mxu0 %v3301_v29  ;;  %v3336_v29 = vld [vmem:[#allocation7 + $0x12c] ss:$16 sps:$4 sm:$0xff]  }
  0x9d   :  { %1659 = vmatprep.subr.bf16.mxu0 %v3309_v30  ;;  %703 = vmatmul.mubr.bf16.gmra.mrb[8].mxu1 %v3753_v26  ;;  %v113_v26 = vld [vmem:[#allocation2 + $0xf0] sm:$0xff] }
  0x9e   :  { %712 = vmatprep.mubr.bf16.mxu1 %v3755_v28  ;;  %1884 = vmatpush1.bf16.msra.mxu1 %v3304_v3  ;;  %v3328_v28 = vld [vmem:[#allocation7 + $0x108] ss:$16 sps:$4 sm:$0xff]   ;;  %v129_v30 = vpack.c.bf16 %v113_v26, %v111_v25 }
  0x9f   :  { %1885 = vmatprep.subr.bf16.mxu1 %v3312_v4 }
  0xa0   :  { %1660 = vmatpush1.bf16.msra.mxu0 %v3307_v37  ;;  %v3352_v37 = vld [vmem:[#allocation7 + $0x188] ss:$16 sps:$4 sm:$0xff]  }
  0xa1   :  { %1661 = vmatprep.subr.bf16.mxu0 %v3315_v38  ;;  %v3360_v38 = vld [vmem:[#allocation7 + $0x1ac] ss:$16 sps:$4 sm:$0xff]  }
  0xa2   :  { %1886 = vmatpush1.bf16.msra.mxu1 %v3310_v9  ;;  %v3376_v9 = vld [vmem:[#allocation7 + $0x208] ss:$16 sps:$4 sm:$0xff]  }
  0xa3   :  { %600 = vmatmul.mubr.bf16.gmra.mrb[12].mxu0 %v3759_v40  ;;  %1887 = vmatprep.subr.bf16.mxu1 %v3318_v10 }
  0xa4   :  { %609 = vmatprep.mubr.bf16.mxu0 %v3761_v42  ;;  %1662 = vmatpush1.bf16.msra.mxu0 %v3313_v43  ;;  %v3364_v43 = vld [vmem:[#allocation7 + $0x1c8] ss:$16 sps:$4 sm:$0xff]  }
  0xa5   :  { %1663 = vmatprep.subr.bf16.mxu0 %v3321_v44  ;;  %713 = vmatmul.mubr.bf16.gmra.mrb[12].mxu1 %v3759_v40  ;;  %v3363_v40 = vld [vmem:[#allocation7 + $0x1c4] ss:$16 sps:$4 sm:$0xff]  }
  0xa6   :  { %722 = vmatprep.mubr.bf16.mxu1 %v3761_v42  ;;  %1888 = vmatpush1.bf16.msra.mxu1 %v3316_v17  ;;  %v3361_v42 = vld [vmem:[#allocation7 + $0x1c0] ss:$16 sps:$4 sm:$0xff]   ;;  %v3369_v44 = vld [vmem:[#allocation7 + $0x1e4] ss:$16 sps:$4 sm:$0xff]  }
  0xa7   :  { %1889 = vmatprep.subr.bf16.mxu1 %v3324_v18 }
  0xa8   :  { %1664 = vmatpush1.bf16.msra.mxu0 %v3319_v51  ;;  %v3781_v51 = vshrl.u32 %v197_v50, 7  ;;  %v3402_v50 = vld [vmem:[#allocation7 + $0x28c] ss:$16 sps:$4 sm:$0xff]  }
  0xa9   :  { %1665 = vmatprep.subr.bf16.mxu0 %v3327_v52 }
  0xaa   :  { %1890 = vmatpush1.bf16.msra.mxu1 %v3322_v23  ;;  %v199_v52 = vsub.s32 0, %v3781_v51  ;;  %v203_v54 = vsub.s32 1, %v3781_v51  ;;  %v3387_v23 = vld [vmem:[#allocation7 + $0x244] ss:$16 sps:$4 sm:$0xff]  }
  0xab   :  { %610 = vmatmul.mubr.bf16.gmra.mrb[16].mxu0 %v3767_v56  ;;  %1891 = vmatprep.subr.bf16.mxu1 %v3330_v24  ;;  %v3390_v24 = vld [vmem:[#allocation7 + $0x24c] ss:$16 sps:$4 sm:$0xff]  }
  0xac   :  { %619 = vmatprep.mubr.bf16.mxu0 %v3769_v58  ;;  %1666 = vmatpush1.bf16.msra.mxu0 %v3325_v55  ;;  %v3793_v55 = vrot.slane %v3787_v53, %v199_v52 }
  0xad   :  { %1667 = vmatprep.subr.bf16.mxu0 %v3333_v57  ;;  %723 = vmatmul.mubr.bf16.gmra.mrb[16].mxu1 %v3767_v56  ;;  %v3798_v56 = vrot.slane %v3787_v53, %v203_v54 }
  0xae   :  { %732 = vmatprep.mubr.bf16.mxu1 %v3769_v58  ;;  %1892 = vmatpush1.bf16.msra.mxu1 %v3328_v28  ;;  %v207_v28 = vsub.s32 2, %v3781_v51 }
  0xaf   :  { %1893 = vmatprep.subr.bf16.mxu1 %v3336_v29 }
  0xb0   :  { %1668 = vmatpush1.bf16.msra.mxu0 %v3331_v63 }
  0xb1   :  { %1669 = vmatprep.subr.bf16.mxu0 %v3339_v2 }
  0xb2   :  { %1894 = vmatpush1.bf16.msra.mxu1 %v3334_v31  ;;  %v3385_v31 = vld [vmem:[#allocation7 + $0x240] ss:$16 sps:$4 sm:$0xff]  }
  0xb3   :  { %620 = vmatmul.mubr.bf16.gmra.mrb[20].mxu0 %v125_v6  ;;  %1895 = vmatprep.subr.bf16.mxu1 %v3342_v32  ;;  %v3388_v32 = vld [vmem:[#allocation7 + $0x248] ss:$16 sps:$4 sm:$0xff]  }
  0xb4   :  { %629 = vmatprep.mubr.bf16.mxu0 %v128_v8  ;;  %1670 = vmatpush1.bf16.msra.mxu0 %v3337_v5 }
  0xb5   :  { %1671 = vmatprep.subr.bf16.mxu0 %v3345_v7  ;;  %733 = vmatmul.mubr.bf16.gmra.mrb[20].mxu1 %v125_v6 }
  0xb6   :  { %742 = vmatprep.mubr.bf16.mxu1 %v128_v8  ;;  %1896 = vmatpush1.bf16.msra.mxu1 %v3340_v33  ;;  %v3373_v8 = vld [vmem:[#allocation7 + $0x200] ss:$16 sps:$4 sm:$0xff]   ;;  %v211_v33 = vsub.s32 3, %v3781_v51 }
  0xb7   :  { %1897 = vmatprep.subr.bf16.mxu1 %v3348_v34 }
  0xb8   :  { %1672 = vmatpush1.bf16.msra.mxu0 %v3343_v13  ;;  %v3384_v13 = vld [vmem:[#allocation7 + $0x22c] ss:$16 sps:$4 sm:$0xff]  }
  0xb9   :  { %1673 = vmatprep.subr.bf16.mxu0 %v3351_v16 }
  0xba   :  { %1898 = vmatpush1.bf16.msra.mxu1 %v3346_v35 }
  0xbb   :  { %630 = vmatmul.mubr.bf16.gmra.mrb[24].mxu0 %v127_v20  ;;  %1899 = vmatprep.subr.bf16.mxu1 %v3354_v36  ;;  %v3393_v36 = vld [vmem:[#allocation7 + $0x264] ss:$16 sps:$4 sm:$0xff]  }
  0xbc   :  { %639 = vmatprep.mubr.bf16.mxu0 %v130_v22  ;;  %1674 = vmatpush1.bf16.msra.mxu0 %v3349_v19  ;;  %v3379_v19 = vld [vmem:[#allocation7 + $0x220] ss:$16 sps:$4 sm:$0xff]  }
  0xbd   :  { %1675 = vmatprep.subr.bf16.mxu0 %v3357_v21  ;;  %743 = vmatmul.mubr.bf16.gmra.mrb[24].mxu1 %v127_v20  ;;  %v3382_v20 = vld [vmem:[#allocation7 + $0x228] ss:$16 sps:$4 sm:$0xff]  }
  0xbe   :  { %752 = vmatprep.mubr.bf16.mxu1 %v130_v22  ;;  %1900 = vmatpush1.bf16.msra.mxu1 %v3352_v37  ;;  %v3396_v37 = vld [vmem:[#allocation7 + $0x26c] ss:$16 sps:$4 sm:$0xff]  }
  0xbf   :  { %1901 = vmatprep.subr.bf16.mxu1 %v3360_v38 }
  0xc0   :  { %1676 = vmatpush1.bf16.msra.mxu0 %v3355_v27 }
  0xc1   :  { %1677 = vmatprep.subr.bf16.mxu0 %v3363_v40 }
  0xc2   :  { %1902 = vmatpush1.bf16.msra.mxu1 %v3358_v39 }
  0xc3   :  { %640 = vmatmul.mubr.bf16.gmra.mrb[28].mxu0 %v129_v30  ;;  %1903 = vmatprep.subr.bf16.mxu1 %v3366_v41 }
  0xc4   :  { %1678 = vmatpush1.bf16.msra.mxu0 %v3361_v42  ;;  %v3816_v42 = vrot.slane %v3787_v53, %v207_v28 }
  0xc5   :  { %753 = vmatmul.mubr.bf16.gmra.mrb[28].mxu1 %v129_v30  ;;  %1679 = vmatprep.subr.bf16.mxu0 %v3369_v44  ;;  %v3391_v44 = vld [vmem:[#allocation7 + $0x260] ss:$16 sps:$4 sm:$0xff]  }
  0xc6   :  { %1904 = vmatpush1.bf16.msra.mxu1 %v3364_v43 }
  0xc7   :  { %1905 = vmatprep.subr.bf16.mxu1 %v3372_v45  ;;  %v3394_v45 = vld [vmem:[#allocation7 + $0x268] ss:$16 sps:$4 sm:$0xff]  }
  0xc8   :  { %1680 = vmatpush1.bf16.msra.mxu0 %v3367_v46  ;;  %v3822_v46 = vrot.slane %v3787_v53, %v211_v33  ;;  %v3400_v53 = vld [vmem:[#allocation7 + $0x288] ss:$16 sps:$4 sm:$0xff]  }
  0xc9   :  { %1762 = vmatprep.subr.bf16.mxu0 %v3375_v48 }
  0xca   :  { %1906 = vmatpush1.bf16.msra.mxu1 %v3370_v47 }
  0xcb   :  { %1988 = vmatprep.subr.bf16.mxu1 %v3378_v49  ;;  %v3399_v49 = vld [vmem:[#allocation7 + $0x284] ss:$16 sps:$4 sm:$0xff]  }
 0x15e   :  { %v571_v57 = vpop.f32.mrb[0].mxu0 }
 0x15f   :  { %v572_v58 = vadd.f32 %v571_v57, %v3793_v55  ;;  %v573_v59 = vpop.f32.mrb[1].mxu0 }
 0x160   :  { %v574_v60 = vadd.f32 %v573_v59, %v3798_v56  ;;  %v575_v61 = vpop.f32.mrb[2].mxu0  ;;  %v684_v59 = vpop.f32.mrb[0].mxu1 }
 0x161   :  { %v576_v62 = vadd.f32 %v575_v61, %v3793_v55  ;;  %v577_v63 = vpop.f32.mrb[3].mxu0  ;;  %v763_v1 = vmax.f32 %v572_v58, 0.0  ;;  %v3397_v61 = vld [vmem:[#allocation7 + $0x280] ss:$16 sps:$4 sm:$0xff]  }
 0x162   :  { %v578_v0 = vadd.f32 %v577_v63, %v3798_v56  ;;  %v764_v3 = vmax.f32 %v574_v60, 0.0  ;;  %v686_v63 = vpop.f32.mrb[1].mxu1 }
 0x163   :  { %v767_v2 = vmax.f32 %v576_v62, 0.0  ;;  %v685_v62 = vadd.f32 %v684_v59, %v3816_v42 }
 0x164   :  { %v768_v4 = vmax.f32 %v578_v0, 0.0 }
 0x165   :  { %v827_v5 = vpack.c.bf16 %v767_v2, %v763_v1  ;;  %v3405_v2 = vld [vmem:[#allocation7 + $0x2a4] ss:$16 sps:$4 sm:$0xff]  }
 0x166   :  { %v828_v6 = vpack.c.bf16 %v768_v4, %v764_v3  ;;  %v581_v7 = vpop.f32.mrb[4].mxu0  ;;  %v687_v3 = vadd.f32 %v686_v63, %v3822_v46  ;;  %v688_v4 = vpop.f32.mrb[2].mxu1 }
 0x167   :  { %v582_v10 = vadd.f32 %v581_v7, %v3793_v55  ;;  %v583_v11 = vpop.f32.mrb[5].mxu0  ;;  %v3408_v7 = vld [vmem:[#allocation7 + $0x2ac] ss:$16 sps:$4 sm:$0xff]  }
 0x168   :  { %v584_v14 = vadd.f32 %v583_v11, %v3798_v56  ;;  %v585_v15 = vpop.f32.mrb[6].mxu0  ;;  %1681 = vmatprep.mubr.bf16.mxu0 %v828_v6  ;;  %1907 = vmatprep.mubr.bf16.mxu1 %v828_v6 }
 0x169   :  { %v586_v16 = vadd.f32 %v585_v15, %v3793_v55  ;;  %v587_v17 = vpop.f32.mrb[7].mxu0  ;;  %1682 = vmatmul.mubr.bf16.vlgmr.msra.gmra.mrb[32].mxu0 %v827_v5  ;;  %1908 = vmatmul.mubr.bf16.vlgmr.msra.gmra.mrb[32].mxu1 %v827_v5  ;;  %v771_v21 = vmax.f32 %v582_v10, 0.0  ;;  %v690_v10 = vpop.f32.mrb[3].mxu1 }
 0x16a   :  { %v588_v18 = vadd.f32 %v587_v17, %v3798_v56  ;;  %1763 = vmatpush1.bf16.msra.mxu0 %v3373_v8  ;;  %1989 = vmatpush1.bf16.msra.mxu1 %v3376_v9  ;;  %v772_v25 = vmax.f32 %v584_v14, 0.0  ;;  %v765_v8 = vmax.f32 %v685_v62, 0.0  ;;  %v689_v9 = vadd.f32 %v688_v4, %v3816_v42 }
 0x16b   :  { %v775_v22 = vmax.f32 %v586_v16, 0.0  ;;  %1764 = vmatprep.subr.bf16.mxu0 %v3381_v12  ;;  %1990 = vmatprep.subr.bf16.mxu1 %v3384_v13  ;;  %v766_v13 = vmax.f32 %v687_v3, 0.0  ;;  %v691_v14 = vadd.f32 %v690_v10, %v3822_v46 }
 0x16c   :  { %v776_v26 = vmax.f32 %v588_v18, 0.0  ;;  %v769_v17 = vmax.f32 %v689_v9, 0.0 }
 0x16d   :  { %v831_v27 = vpack.c.bf16 %v775_v22, %v771_v21  ;;  %v770_v21 = vmax.f32 %v691_v14, 0.0 }
 0x16e   :  { %v832_v29 = vpack.c.bf16 %v776_v26, %v772_v25  ;;  %1765 = vmatpush1.bf16.msra.mxu0 %v3379_v19  ;;  %v591_v30 = vpop.f32.mrb[8].mxu0  ;;  %1991 = vmatpush1.bf16.msra.mxu1 %v3382_v20  ;;  %v3403_v19 = vld [vmem:[#allocation7 + $0x2a0] ss:$16 sps:$4 sm:$0xff]   ;;  %v3406_v20 = vld [vmem:[#allocation7 + $0x2a8] ss:$16 sps:$4 sm:$0xff]   ;;  %v3832_v26 = vpack.c.bf16 %v769_v17, %v765_v8 }
 0x16f   :  { %v592_v34 = vadd.f32 %v591_v30, %v3793_v55  ;;  %v593_v35 = vpop.f32.mrb[9].mxu0  ;;  %1766 = vmatprep.subr.bf16.mxu0 %v3387_v23  ;;  %1992 = vmatprep.subr.bf16.mxu1 %v3390_v24  ;;  %v3411_v24 = vld [vmem:[#allocation7 + $0x2c4] ss:$16 sps:$4 sm:$0xff]   ;;  %v3414_v25 = vld [vmem:[#allocation7 + $0x2cc] ss:$16 sps:$4 sm:$0xff]   ;;  %v3834_v30 = vpack.c.bf16 %v770_v21, %v766_v13 }
 0x170   :  { %v594_v38 = vadd.f32 %v593_v35, %v3798_v56  ;;  %v595_v39 = vpop.f32.mrb[10].mxu0  ;;  %1691 = vmatprep.mubr.bf16.mxu0 %v832_v29  ;;  %1917 = vmatprep.mubr.bf16.mxu1 %v832_v29  ;;  %v3421_v13 = vld [vmem:[#allocation7 + $0x300] ss:$16 sps:$4 sm:$0xff]  }
 0x171   :  { %v596_v40 = vadd.f32 %v595_v39, %v3793_v55  ;;  %v597_v41 = vpop.f32.mrb[11].mxu0  ;;  %1692 = vmatmul.mubr.bf16.gmra.mrb[36].mxu0 %v831_v27  ;;  %1918 = vmatmul.mubr.bf16.gmra.mrb[36].mxu1 %v831_v27  ;;  %v779_v47 = vmax.f32 %v592_v34, 0.0  ;;  %v3409_v34 = vld [vmem:[#allocation7 + $0x2c0] ss:$16 sps:$4 sm:$0xff]   ;;  %v3412_v39 = vld [vmem:[#allocation7 + $0x2c8] ss:$16 sps:$4 sm:$0xff]  }
 0x172   :  { %v598_v43 = vadd.f32 %v597_v41, %v3798_v56  ;;  %1767 = vmatpush1.bf16.msra.mxu0 %v3385_v31  ;;  %1993 = vmatpush1.bf16.msra.mxu1 %v3388_v32  ;;  %v780_v57 = vmax.f32 %v594_v38, 0.0  ;;  %v694_v31 = vpop.f32.mrb[4].mxu1 }
 0x173   :  { %v783_v48 = vmax.f32 %v596_v40, 0.0  ;;  %1768 = vmatprep.subr.bf16.mxu0 %v3393_v36  ;;  %1994 = vmatprep.subr.bf16.mxu1 %v3396_v37  ;;  %v695_v35 = vadd.f32 %v694_v31, %v3816_v42  ;;  %v696_v36 = vpop.f32.mrb[5].mxu1  ;;  %v3417_v40 = vld [vmem:[#allocation7 + $0x2e4] ss:$16 sps:$4 sm:$0xff]  }
 0x174   :  { %v784_v58 = vmax.f32 %v598_v43, 0.0  ;;  %v697_v41 = vadd.f32 %v696_v36, %v3822_v46  ;;  %v698_v43 = vpop.f32.mrb[6].mxu1 }
 0x175   :  { %v835_v60 = vpack.c.bf16 %v783_v48, %v779_v47  ;;  %v3420_v47 = vld [vmem:[#allocation7 + $0x2ec] ss:$16 sps:$4 sm:$0xff]   ;;  %v773_v48 = vmax.f32 %v695_v35, 0.0 }
 0x176   :  { %v836_v0 = vpack.c.bf16 %v784_v58, %v780_v57  ;;  %1769 = vmatpush1.bf16.msra.mxu0 %v3391_v44  ;;  %v601_v1 = vpop.f32.mrb[12].mxu0  ;;  %1995 = vmatpush1.bf16.msra.mxu1 %v3394_v45  ;;  %v774_v59 = vmax.f32 %v697_v41, 0.0  ;;  %v3430_v41 = vld [vmem:[#allocation7 + $0x328] ss:$16 sps:$4 sm:$0xff]  }
 0x177   :  { %v602_v5 = vadd.f32 %v601_v1, %v3793_v55  ;;  %v603_v6 = vpop.f32.mrb[13].mxu0  ;;  %1770 = vmatprep.subr.bf16.mxu0 %v3399_v49  ;;  %1996 = vmatprep.subr.bf16.mxu1 %v3402_v50  ;;  %v699_v49 = vadd.f32 %v698_v43, %v3816_v42  ;;  %v700_v50 = vpop.f32.mrb[7].mxu1  ;;  %v3415_v1 = vld [vmem:[#allocation7 + $0x2e0] ss:$16 sps:$4 sm:$0xff]  }
 0x178   :  { %v604_v11 = vadd.f32 %v603_v6, %v3798_v56  ;;  %v605_v12 = vpop.f32.mrb[14].mxu0  ;;  %1701 = vmatprep.mubr.bf16.mxu0 %v836_v0  ;;  %1927 = vmatprep.mubr.bf16.mxu1 %v836_v0  ;;  %v3426_v6 = vld [vmem:[#allocation7 + $0x30c] ss:$16 sps:$4 sm:$0xff]  }
 0x179   :  { %v606_v15 = vadd.f32 %v605_v12, %v3793_v55  ;;  %v607_v16 = vpop.f32.mrb[15].mxu0  ;;  %1702 = vmatmul.mubr.bf16.gmra.mrb[40].mxu0 %v835_v60  ;;  %1928 = vmatmul.mubr.bf16.gmra.mrb[40].mxu1 %v835_v60  ;;  %v787_v22 = vmax.f32 %v602_v5, 0.0  ;;  %v701_v60 = vadd.f32 %v700_v50, %v3822_v46  ;;  %v777_v63 = vmax.f32 %v699_v49, 0.0  ;;  %v3423_v5 = vld [vmem:[#allocation7 + $0x304] ss:$16 sps:$4 sm:$0xff]  }
 0x17a   :  { %v608_v18 = vadd.f32 %v607_v16, %v3798_v56  ;;  %1771 = vmatpush1.bf16.msra.mxu0 %v3397_v61  ;;  %1997 = vmatpush1.bf16.msra.mxu1 %v3400_v53  ;;  %v788_v27 = vmax.f32 %v604_v11, 0.0  ;;  %v3418_v53 = vld [vmem:[#allocation7 + $0x2e8] ss:$16 sps:$4 sm:$0xff]   ;;  %v704_v11 = vpop.f32.mrb[8].mxu1 }
 0x17b   :  { %v791_v23 = vmax.f32 %v606_v15, 0.0  ;;  %1772 = vmatprep.subr.bf16.mxu0 %v3405_v2  ;;  %1998 = vmatprep.subr.bf16.mxu1 %v3408_v7  ;;  %v778_v2 = vmax.f32 %v701_v60, 0.0  ;;  %v3844_v7 = vpack.c.bf16 %v777_v63, %v773_v48  ;;  %v705_v14 = vadd.f32 %v704_v11, %v3816_v42  ;;  %v706_v15 = vpop.f32.mrb[9].mxu1  ;;  %v3438_v48 = vld [vmem:[#allocation7 + $0x34c] ss:$16 sps:$4 sm:$0xff]  }
 0x17c   :  { %v792_v29 = vmax.f32 %v608_v18, 0.0  ;;  %v3424_v18 = vld [vmem:[#allocation7 + $0x308] ss:$16 sps:$4 sm:$0xff]   ;;  %v708_v21 = vpop.f32.mrb[10].mxu1 }
 0x17d   :  { %v839_v32 = vpack.c.bf16 %v791_v23, %v787_v22  ;;  %v3846_v10 = vpack.c.bf16 %v778_v2, %v774_v59  ;;  %v3441_v2 = vld [vmem:[#allocation7 + $0x364] ss:$16 sps:$4 sm:$0xff]  }
 0x17e   :  { %v840_v37 = vpack.c.bf16 %v792_v29, %v788_v27  ;;  %1773 = vmatpush1.bf16.msra.mxu0 %v3403_v19  ;;  %v611_v38 = vpop.f32.mrb[16].mxu0  ;;  %1999 = vmatpush1.bf16.msra.mxu1 %v3406_v20  ;;  %v3429_v19 = vld [vmem:[#allocation7 + $0x324] ss:$16 sps:$4 sm:$0xff]   ;;  %v707_v20 = vadd.f32 %v706_v15, %v3822_v46  ;;  %v709_v27 = vadd.f32 %v708_v21, %v3816_v42  ;;  %v710_v29 = vpop.f32.mrb[11].mxu1  ;;  %v3439_v21 = vld [vmem:[#allocation7 + $0x360] ss:$16 sps:$4 sm:$0xff]  }
 0x17f   :  { %v612_v44 = vadd.f32 %v611_v38, %v3793_v55  ;;  %v613_v45 = vpop.f32.mrb[17].mxu0  ;;  %1774 = vmatprep.subr.bf16.mxu0 %v3411_v24  ;;  %2000 = vmatprep.subr.bf16.mxu1 %v3414_v25  ;;  %v3432_v24 = vld [vmem:[#allocation7 + $0x32c] ss:$16 sps:$4 sm:$0xff]   ;;  %v781_v25 = vmax.f32 %v705_v14, 0.0  ;;  %v711_v35 = vadd.f32 %v710_v29, %v3822_v46  ;;  %v714_v59 = vpop.f32.mrb[12].mxu1 }
 0x180   :  { %v614_v57 = vadd.f32 %v613_v45, %v3798_v56  ;;  %v615_v58 = vpop.f32.mrb[18].mxu0  ;;  %1711 = vmatprep.mubr.bf16.mxu0 %v840_v37  ;;  %1937 = vmatprep.mubr.bf16.mxu1 %v840_v37  ;;  %v785_v38 = vmax.f32 %v709_v27, 0.0  ;;  %v716_v63 = vpop.f32.mrb[13].mxu1  ;;  %v3447_v27 = vld [vmem:[#allocation7 + $0x384] ss:$16 sps:$4 sm:$0xff]  }
 0x181   :  { %v616_v61 = vadd.f32 %v615_v58, %v3793_v55  ;;  %v617_v62 = vpop.f32.mrb[19].mxu0  ;;  %1712 = vmatmul.mubr.bf16.gmra.mrb[44].mxu0 %v839_v32  ;;  %1938 = vmatmul.mubr.bf16.gmra.mrb[44].mxu1 %v839_v32  ;;  %v795_v3 = vmax.f32 %v612_v44, 0.0  ;;  %v786_v43 = vmax.f32 %v711_v35, 0.0  ;;  %v3450_v29 = vld [vmem:[#allocation7 + $0x38c] ss:$16 sps:$4 sm:$0xff]  }
 0x182   :  { %v618_v0 = vadd.f32 %v617_v62, %v3798_v56  ;;  %1775 = vmatpush1.bf16.msra.mxu0 %v3409_v34  ;;  %2001 = vmatpush1.bf16.msra.mxu1 %v3412_v39  ;;  %v796_v8 = vmax.f32 %v614_v57, 0.0  ;;  %v782_v34 = vmax.f32 %v707_v20, 0.0  ;;  %v3856_v49 = vpack.c.bf16 %v785_v38, %v781_v25  ;;  %v3445_v38 = vld [vmem:[#allocation7 + $0x380] ss:$16 sps:$4 sm:$0xff]  }
 0x183   :  { %v799_v4 = vmax.f32 %v616_v61, 0.0  ;;  %1776 = vmatprep.subr.bf16.mxu0 %v3417_v40  ;;  %2002 = vmatprep.subr.bf16.mxu1 %v3420_v47  ;;  %v3427_v40 = vld [vmem:[#allocation7 + $0x320] ss:$16 sps:$4 sm:$0xff]   ;;  %v3435_v47 = vld [vmem:[#allocation7 + $0x344] ss:$16 sps:$4 sm:$0xff]   ;;  %v715_v62 = vadd.f32 %v714_v59, %v3816_v42 }
 0x184   :  { %v800_v9 = vmax.f32 %v618_v0, 0.0  ;;  %v3858_v58 = vpack.c.bf16 %v786_v43, %v782_v34  ;;  %v3433_v61 = vld [vmem:[#allocation7 + $0x340] ss:$16 sps:$4 sm:$0xff]   ;;  %v3456_v59 = vld [vmem:[#allocation7 + $0x3ac] ss:$16 sps:$4 sm:$0xff]  }
 0x185   :  { %v843_v12 = vpack.c.bf16 %v799_v4, %v795_v3  ;;  %v717_v3 = vadd.f32 %v716_v63, %v3822_v46  ;;  %v718_v4 = vpop.f32.mrb[14].mxu1 }
 0x186   :  { %v844_v16 = vpack.c.bf16 %v800_v9, %v796_v8  ;;  %1777 = vmatpush1.bf16.msra.mxu0 %v3415_v1  ;;  %v621_v17 = vpop.f32.mrb[20].mxu0  ;;  %2003 = vmatpush1.bf16.msra.mxu1 %v3418_v53  ;;  %v3436_v53 = vld [vmem:[#allocation7 + $0x348] ss:$16 sps:$4 sm:$0xff]   ;;  %v3444_v8 = vld [vmem:[#allocation7 + $0x36c] ss:$16 sps:$4 sm:$0xff]   ;;  %v789_v9 = vmax.f32 %v715_v62, 0.0  ;;  %v719_v11 = vadd.f32 %v718_v4, %v3816_v42 }
 0x187   :  { %v622_v22 = vadd.f32 %v621_v17, %v3793_v55  ;;  %v623_v23 = vpop.f32.mrb[21].mxu0  ;;  %1778 = vmatprep.subr.bf16.mxu0 %v3423_v5  ;;  %2004 = vmatprep.subr.bf16.mxu1 %v3426_v6  ;;  %v790_v15 = vmax.f32 %v717_v3, 0.0 }
 0x188   :  { %v624_v31 = vadd.f32 %v623_v23, %v3798_v56  ;;  %v625_v32 = vpop.f32.mrb[22].mxu0  ;;  %1721 = vmatprep.mubr.bf16.mxu0 %v844_v16  ;;  %1947 = vmatprep.mubr.bf16.mxu1 %v844_v16 }
 0x189   :  { %v626_v36 = vadd.f32 %v625_v32, %v3793_v55  ;;  %v627_v37 = vpop.f32.mrb[23].mxu0  ;;  %1722 = vmatmul.mubr.bf16.gmra.mrb[48].mxu0 %v843_v12  ;;  %1948 = vmatmul.mubr.bf16.gmra.mrb[48].mxu1 %v843_v12  ;;  %v803_v44 = vmax.f32 %v622_v22, 0.0  ;;  %v720_v12 = vpop.f32.mrb[15].mxu1  ;;  %v3442_v22 = vld [vmem:[#allocation7 + $0x368] ss:$16 sps:$4 sm:$0xff]  }
 0x18a   :  { %v628_v39 = vadd.f32 %v627_v37, %v3798_v56  ;;  %1779 = vmatpush1.bf16.msra.mxu0 %v3421_v13  ;;  %2005 = vmatpush1.bf16.msra.mxu1 %v3424_v18  ;;  %v804_v50 = vmax.f32 %v624_v31, 0.0  ;;  %v721_v16 = vadd.f32 %v720_v12, %v3822_v46 }
 0x18b   :  { %v807_v45 = vmax.f32 %v626_v36, 0.0  ;;  %1780 = vmatprep.subr.bf16.mxu0 %v3429_v19  ;;  %2006 = vmatprep.subr.bf16.mxu1 %v3432_v24  ;;  %v793_v19 = vmax.f32 %v719_v11, 0.0  ;;  %v724_v36 = vpop.f32.mrb[16].mxu1 }
 0x18c   :  { %v808_v57 = vmax.f32 %v628_v39, 0.0  ;;  %v794_v23 = vmax.f32 %v721_v16, 0.0  ;;  %v725_v39 = vadd.f32 %v724_v36, %v3816_v42  ;;  %v3468_v36 = vld [vmem:[#allocation7 + $0x3ec] ss:$16 sps:$4 sm:$0xff]  }
 0x18d   :  { %v847_v60 = vpack.c.bf16 %v807_v45, %v803_v44  ;;  %v3868_v31 = vpack.c.bf16 %v793_v19, %v789_v9  ;;  %v3448_v44 = vld [vmem:[#allocation7 + $0x388] ss:$16 sps:$4 sm:$0xff]   ;;  %v3453_v45 = vld [vmem:[#allocation7 + $0x3a4] ss:$16 sps:$4 sm:$0xff]  }
 0x18e   :  { %v848_v0 = vpack.c.bf16 %v808_v57, %v804_v50  ;;  %1781 = vmatpush1.bf16.msra.mxu0 %v3427_v40  ;;  %v631_v1 = vpop.f32.mrb[24].mxu0  ;;  %2007 = vmatpush1.bf16.msra.mxu1 %v3430_v41  ;;  %v3870_v35 = vpack.c.bf16 %v794_v23, %v790_v15  ;;  %v726_v40 = vpop.f32.mrb[17].mxu1  ;;  %v3460_v23 = vld [vmem:[#allocation7 + $0x3c8] ss:$16 sps:$4 sm:$0xff]  }
 0x18f   :  { %v632_v5 = vadd.f32 %v631_v1, %v3793_v55  ;;  %v633_v6 = vpop.f32.mrb[25].mxu0  ;;  %1782 = vmatprep.subr.bf16.mxu0 %v3435_v47  ;;  %2008 = vmatprep.subr.bf16.mxu1 %v3438_v48  ;;  %v727_v47 = vadd.f32 %v726_v40, %v3822_v46  ;;  %v728_v48 = vpop.f32.mrb[18].mxu1  ;;  %v3463_v40 = vld [vmem:[#allocation7 + $0x3e0] ss:$16 sps:$4 sm:$0xff]  }
 0x190   :  { %v634_v13 = vadd.f32 %v633_v6, %v3798_v56  ;;  %v635_v14 = vpop.f32.mrb[26].mxu0  ;;  %1731 = vmatprep.mubr.bf16.mxu0 %v848_v0  ;;  %1957 = vmatprep.mubr.bf16.mxu1 %v848_v0  ;;  %v730_v62 = vpop.f32.mrb[19].mxu1  ;;  %v3451_v6 = vld [vmem:[#allocation7 + $0x3a0] ss:$16 sps:$4 sm:$0xff]  }
 0x191   :  { %v636_v17 = vadd.f32 %v635_v14, %v3793_v55  ;;  %v637_v18 = vpop.f32.mrb[27].mxu0  ;;  %1732 = vmatmul.mubr.bf16.gmra.mrb[52].mxu0 %v847_v60  ;;  %1958 = vmatmul.mubr.bf16.gmra.mrb[52].mxu1 %v847_v60  ;;  %v811_v24 = vmax.f32 %v632_v5, 0.0  ;;  %v797_v60 = vmax.f32 %v725_v39, 0.0  ;;  %v798_v1 = vmax.f32 %v727_v47, 0.0  ;;  %v3462_v14 = vld [vmem:[#allocation7 + $0x3cc] ss:$16 sps:$4 sm:$0xff]  }
 0x192   :  { %v638_v20 = vadd.f32 %v637_v18, %v3798_v56  ;;  %1783 = vmatpush1.bf16.msra.mxu0 %v3433_v61  ;;  %2009 = vmatpush1.bf16.msra.mxu1 %v3436_v53  ;;  %v812_v32 = vmax.f32 %v634_v13, 0.0  ;;  %v729_v61 = vadd.f32 %v728_v48, %v3816_v42  ;;  %v731_v53 = vadd.f32 %v730_v62, %v3822_v46  ;;  %v3459_v13 = vld [vmem:[#allocation7 + $0x3c4] ss:$16 sps:$4 sm:$0xff]   ;;  %v734_v18 = vpop.f32.mrb[20].mxu1 }
 0x193   :  { %v815_v25 = vmax.f32 %v636_v17, 0.0  ;;  %1784 = vmatprep.subr.bf16.mxu0 %v3441_v2  ;;  %2010 = vmatprep.subr.bf16.mxu1 %v3444_v8  ;;  %v3454_v8 = vld [vmem:[#allocation7 + $0x3a8] ss:$16 sps:$4 sm:$0xff]   ;;  %v3471_v47 = vld [vmem:[#allocation8 + $0xc0] sm:$0xff]  }
 0x194   :  { %v816_v34 = vmax.f32 %v638_v20, 0.0  ;;  %v801_v4 = vmax.f32 %v729_v61, 0.0  ;;  %v802_v9 = vmax.f32 %v731_v53, 0.0  ;;  %v736_v20 = vpop.f32.mrb[21].mxu1  ;;  %v3472_v53 = vld [vmem:[#allocation8 + $0x80] sm:$0xff]  }
 0x195   :  { %v851_v37 = vpack.c.bf16 %v815_v25, %v811_v24  ;;  %v737_v24 = vadd.f32 %v736_v20, %v3822_v46  ;;  %v738_v25 = vpop.f32.mrb[22].mxu1 }
 0x196   :  { %v852_v41 = vpack.c.bf16 %v816_v34, %v812_v32  ;;  %1785 = vmatpush1.bf16.msra.mxu0 %v3439_v21  ;;  %v641_v43 = vpop.f32.mrb[28].mxu0  ;;  %2011 = vmatpush1.bf16.msra.mxu1 %v3442_v22  ;;  %v3880_v15 = vpack.c.bf16 %v801_v4, %v797_v60  ;;  %v3882_v17 = vpack.c.bf16 %v802_v9, %v798_v1  ;;  %v3457_v22 = vld [vmem:[#allocation7 + $0x3c0] ss:$16 sps:$4 sm:$0xff]   ;;  %v740_v34 = vpop.f32.mrb[23].mxu1  ;;  %v3475_v4 = vld [vmem:[#allocation8 + $0xc8] sm:$0xff]  }
 0x197   :  { %v642_v50 = vadd.f32 %v641_v43, %v3793_v55  ;;  %v643_v57 = vpop.f32.mrb[29].mxu0  ;;  %1786 = vmatprep.subr.bf16.mxu0 %v3447_v27  ;;  %2012 = vmatprep.subr.bf16.mxu1 %v3450_v29  ;;  %v3465_v27 = vld [vmem:[#allocation7 + $0x3e4] ss:$16 sps:$4 sm:$0xff]   ;;  %v739_v32 = vadd.f32 %v738_v25, %v3816_v42  ;;  %v3474_v9 = vld [vmem:[#allocation8 + $0x8] sm:$0xff]   ;;  %v3481_v25 = vld [vmem:[#allocation8 + $0x58] sm:$0xff]  }
 0x198   :  { %v644_v63 = vadd.f32 %v643_v57, %v3798_v56  ;;  %v645_v0 = vpop.f32.mrb[30].mxu0  ;;  %1741 = vmatprep.mubr.bf16.mxu0 %v852_v41  ;;  %1967 = vmatprep.mubr.bf16.mxu1 %v852_v41  ;;  %v3466_v41 = vld [vmem:[#allocation7 + $0x3e8] ss:$16 sps:$4 sm:$0xff]   ;;  %v3470_v1 = vld [vmem:[#allocation8] sm:$0xff]  }
 0x199   :  { %v646_v2 = vadd.f32 %v645_v0, %v3793_v55  ;;  %v647_v3 = vpop.f32.mrb[31].mxu0  ;;  %1742 = vmatmul.mubr.bf16.gmra.mrb[56].mxu0 %v851_v37  ;;  %1968 = vmatmul.mubr.bf16.gmra.mrb[56].mxu1 %v851_v37  ;;  %v819_v11 = vmax.f32 %v642_v50, 0.0  ;;  %v806_v37 = vmax.f32 %v737_v24, 0.0  ;;  %v809_v39 = vmax.f32 %v739_v32, 0.0  ;;  %v744_v50 = vpop.f32.mrb[24].mxu1 }
 0x19a   :  { %v648_v5 = vadd.f32 %v647_v3, %v3798_v56  ;;  %1787 = vmatpush1.bf16.msra.mxu0 %v3445_v38  ;;  %2013 = vmatpush1.bf16.msra.mxu1 %v3448_v44  ;;  %v820_v55 = vmax.f32 %v644_v63, 0.0  ;;  %v735_v56 = vadd.f32 %v734_v18, %v3816_v42  ;;  %v741_v38 = vadd.f32 %v740_v34, %v3822_v46  ;;  %v3473_v3 = vld [vmem:[#allocation8 + $0x48] sm:$0xff]   ;;  %v3482_v34 = vld [vmem:[#allocation8 + $0x18] sm:$0xff]  }
 0x19b   :  { %v823_v12 = vmax.f32 %v646_v2, 0.0  ;;  %1788 = vmatprep.subr.bf16.mxu0 %v3453_v45  ;;  %2014 = vmatprep.subr.bf16.mxu1 %v3456_v59  ;;  %v3469_v45 = vld [vmem:[#allocation8 + $0x40] sm:$0xff]   ;;  %v745_v57 = vadd.f32 %v744_v50, %v3816_v42  ;;  %v746_v59 = vpop.f32.mrb[25].mxu1  ;;  %v3494_v50 = vld [vmem:[#allocation8 + $0x30] sm:$0xff]  }
 0x19c   :  { %v824_v16 = vmax.f32 %v648_v5, 0.0  ;;  %v805_v29 = vmax.f32 %v735_v56, 0.0  ;;  %v810_v43 = vmax.f32 %v741_v38, 0.0  ;;  %v747_v60 = vadd.f32 %v746_v59, %v3822_v46  ;;  %v748_v61 = vpop.f32.mrb[26].mxu1  ;;  %v3487_v38 = vld [vmem:[#allocation8 + $0xe0] sm:$0xff]  }
 0x19d   :  { %v855_v19 = vpack.c.bf16 %v823_v12, %v819_v11  ;;  %v813_v62 = vmax.f32 %v745_v57, 0.0  ;;  %v749_v63 = vadd.f32 %v748_v61, %v3816_v42  ;;  %v750_v0 = vpop.f32.mrb[27].mxu1  ;;  %v3476_v11 = vld [vmem:[#allocation8 + $0x88] sm:$0xff]   ;;  %v3496_v57 = vld [vmem:[#allocation8 + $0xb0] sm:$0xff]  }
 0x19e   :  { %v856_v21 = vpack.c.bf16 %v824_v16, %v820_v55  ;;  %1789 = vmatpush1.bf16.msra.mxu0 %v3451_v6  ;;  %2015 = vmatpush1.bf16.msra.mxu1 %v3454_v8  ;;  %v3889_v44 = vpack.c.bf16 %v809_v39, %v805_v29  ;;  %v3892_v48 = vpack.c.bf16 %v810_v43, %v806_v37  ;;  %v3479_v55 = vld [vmem:[#allocation8 + $0xd0] sm:$0xff]   ;;  %v3485_v37 = vld [vmem:[#allocation8 + $0x60] sm:$0xff]   ;;  %v3492_v43 = vld [vmem:[#allocation8 + $0xa8] sm:$0xff]  }
 0x19f   :  { %1790 = vmatprep.subr.bf16.mxu0 %v3459_v13  ;;  %2016 = vmatprep.subr.bf16.mxu1 %v3462_v14  ;;  %v751_v2 = vadd.f32 %v750_v0, %v3822_v46  ;;  %v817_v5 = vmax.f32 %v749_v63, 0.0  ;;  %v754_v13 = vpop.f32.mrb[28].mxu1  ;;  %v3477_v14 = vld [vmem:[#allocation8 + $0x50] sm:$0xff]   ;;  %v3486_v39 = vld [vmem:[#allocation8 + $0x20] sm:$0xff]  }
 0x1a0   :  { %1751 = vmatprep.mubr.bf16.mxu0 %v856_v21  ;;  %1977 = vmatprep.mubr.bf16.mxu1 %v856_v21  ;;  %v756_v16 = vpop.f32.mrb[29].mxu1  ;;  %v3478_v21 = vld [vmem:[#allocation8 + $0x10] sm:$0xff]  }
 0x1a1   :  { %1752 = vmatmul.mubr.bf16.gmra.mrb[60].mxu0 %v855_v19  ;;  %1978 = vmatmul.mubr.bf16.gmra.mrb[60].mxu1 %v855_v19  ;;  %v818_v6 = vmax.f32 %v751_v2, 0.0  ;;  %v3902_v8 = vpack.c.bf16 %v817_v5, %v813_v62  ;;  %v757_v18 = vadd.f32 %v756_v16, %v3822_v46 }
 0x1a2   :  { %1791 = vmatpush1.bf16.msra.mxu0 %v3457_v22  ;;  %2017 = vmatpush1.bf16.msra.mxu1 %v3460_v23  ;;  %v3480_v22 = vld [vmem:[#allocation8 + $0x90] sm:$0xff]  }
 0x1a3   :  { %1792 = vmatprep.subr.bf16.mxu0 %v3465_v27  ;;  %1794 = vmatprep.mubr.bf16.mxu0 %v3834_v30  ;;  %v822_v23 = vmax.f32 %v757_v18, 0.0  ;;  %v3483_v27 = vld [vmem:[#allocation8 + $0xd8] sm:$0xff]  }
 0x1a4   :  { %2018 = vmatprep.subr.bf16.mxu1 %v3468_v36  ;;  %2020 = vmatprep.mubr.bf16.mxu1 %v3834_v30  ;;  %v814_v30 = vmax.f32 %v747_v60, 0.0  ;;  %v3484_v36 = vld [vmem:[#allocation8 + $0x98] sm:$0xff]  }
 0x1a6   :  { %1793 = vmatpush1.bf16.msra.mxu0 %v3463_v40  ;;  %2019 = vmatpush1.bf16.msra.mxu1 %v3466_v41  ;;  %v3904_v12 = vpack.c.bf16 %v818_v6, %v814_v30  ;;  %v3489_v40 = vld [vmem:[#allocation8 + $0x68] sm:$0xff]  }
 0x1a7   :  { %2914 = vmatprep.subr.bf16.mxu0 %v3469_v45  ;;  %2978 = vmatprep.subr.bf16.mxu1 %v3471_v47  ;;  %v3491_v41 = vld [vmem:[#allocation8 + $0xe8] sm:$0xff]   ;;  %v3493_v45 = vld [vmem:[#allocation8 + $0x70] sm:$0xff]  }
 0x1a8   :  { %v3495_v47 = vld [vmem:[#allocation8 + $0xf0] sm:$0xff]  }
 0x1a9   :  { %1795 = vmatmul.mubr.bf16.vlgmr.msra.gmra.mrb[32].mxu0 %v3832_v26  ;;  %2021 = vmatmul.mubr.bf16.vlgmr.msra.gmra.mrb[32].mxu1 %v3832_v26  ;;  %v755_v26 = vadd.f32 %v754_v13, %v3816_v42 }
 0x1aa   :  { %1804 = vmatprep.mubr.bf16.mxu0 %v3846_v10  ;;  %2030 = vmatprep.mubr.bf16.mxu1 %v3846_v10  ;;  %v758_v10 = vpop.f32.mrb[30].mxu1 }
 0x1ab   :  { %2915 = vmatpush3.bf16.msra.mxu0 %v3470_v1  ;;  %2979 = vmatpush3.bf16.msra.mxu1 %v3472_v53  ;;  %v821_v19 = vmax.f32 %v755_v26, 0.0  ;;  %v759_v56 = vadd.f32 %v758_v10, %v3816_v42  ;;  %v760_v20 = vpop.f32.mrb[31].mxu1 }
 0x1ac   :  { %2916 = vmatprep.subr.bf16.mxu0 %v3473_v3  ;;  %2980 = vmatprep.subr.bf16.mxu1 %v3475_v4  ;;  %v761_v24 = vadd.f32 %v760_v20, %v3822_v46 }
 0x1ad   :  { %v825_v29 = vmax.f32 %v759_v56, 0.0 }
 0x1ae   :  { %v826_v42 = vmax.f32 %v761_v24, 0.0 }
 0x1af   :  { %2917 = vmatpush3.bf16.msra.mxu0 %v3474_v9  ;;  %2981 = vmatpush3.bf16.msra.mxu1 %v3476_v11  ;;  %v857_v32 = vpack.c.bf16 %v825_v29, %v821_v19 }
 0x1b0   :  { %2918 = vmatprep.subr.bf16.mxu0 %v3477_v14  ;;  %2982 = vmatprep.subr.bf16.mxu1 %v3479_v55  ;;  %v858_v46 = vpack.c.bf16 %v826_v42, %v822_v23 }
 0x1b1   :  { %1805 = vmatmul.mubr.bf16.gmra.mrb[36].mxu0 %v3844_v7  ;;  %2031 = vmatmul.mubr.bf16.gmra.mrb[36].mxu1 %v3844_v7  ;;  %v3488_v7 = vld [vmem:[#allocation8 + $0xa0] sm:$0xff]  }
 0x1b2   :  { %1814 = vmatprep.mubr.bf16.mxu0 %v3858_v58  ;;  %2040 = vmatprep.mubr.bf16.mxu1 %v3858_v58  ;;  %v3490_v58 = vld [vmem:[#allocation8 + $0x28] sm:$0xff]  }
 0x1b3   :  { %2919 = vmatpush3.bf16.msra.mxu0 %v3478_v21  ;;  %2983 = vmatpush3.bf16.msra.mxu1 %v3480_v22 }
 0x1b4   :  { %2920 = vmatprep.subr.bf16.mxu0 %v3481_v25  ;;  %2984 = vmatprep.subr.bf16.mxu1 %v3483_v27 }
 0x1b7   :  { %2921 = vmatpush3.bf16.msra.mxu0 %v3482_v34  ;;  %2985 = vmatpush3.bf16.msra.mxu1 %v3484_v36 }
 0x1b8   :  { %2922 = vmatprep.subr.bf16.mxu0 %v3485_v37  ;;  %2986 = vmatprep.subr.bf16.mxu1 %v3487_v38 }
 0x1b9   :  { %1815 = vmatmul.mubr.bf16.gmra.mrb[40].mxu0 %v3856_v49  ;;  %2041 = vmatmul.mubr.bf16.gmra.mrb[40].mxu1 %v3856_v49  ;;  %v3497_v49 = vld [vmem:[#allocation8 + $0x78] sm:$0xff]  }
 0x1ba   :  { %1824 = vmatprep.mubr.bf16.mxu0 %v3870_v35  ;;  %2050 = vmatprep.mubr.bf16.mxu1 %v3870_v35  ;;  %v3498_v35 = vld [vmem:[#allocation8 + $0x38] sm:$0xff]  }
 0x1bb   :  { %2923 = vmatpush3.bf16.msra.mxu0 %v3486_v39  ;;  %2987 = vmatpush3.bf16.msra.mxu1 %v3488_v7 }
 0x1bc   :  { %2924 = vmatprep.subr.bf16.mxu0 %v3489_v40  ;;  %2988 = vmatprep.subr.bf16.mxu1 %v3491_v41 }
 0x1bf   :  { %2925 = vmatpush3.bf16.msra.mxu0 %v3490_v58  ;;  %2989 = vmatpush3.bf16.msra.mxu1 %v3492_v43 }
 0x1c0   :  { %2926 = vmatprep.subr.bf16.mxu0 %v3493_v45  ;;  %2990 = vmatprep.subr.bf16.mxu1 %v3495_v47 }
 0x1c1   :  { %1825 = vmatmul.mubr.bf16.gmra.mrb[44].mxu0 %v3868_v31  ;;  %2051 = vmatmul.mubr.bf16.gmra.mrb[44].mxu1 %v3868_v31  ;;  %v3499_v31 = vld [vmem:[#allocation8 + $0xf8] sm:$0xff]  }
 0x1c2   :  { %1834 = vmatprep.mubr.bf16.mxu0 %v3882_v17  ;;  %2060 = vmatprep.mubr.bf16.mxu1 %v3882_v17  ;;  %v987_v17 = vld [vmem:[%s4052_s4] sm:$0xf] }
 0x1c3   :  { %2927 = vmatpush3.bf16.msra.mxu0 %v3494_v50  ;;  %2991 = vmatpush3.bf16.msra.mxu1 %v3496_v57  ;;  %v3945_v59 = vrot.slane %v987_v17, %v203_v54  ;;  %v3949_v60 = vrot.slane %v987_v17, %v211_v33 }
 0x1c4   :  { %2928 = vmatprep.subr.bf16.mxu0 %v3497_v49  ;;  %2992 = vmatprep.subr.bf16.mxu1 %v3499_v31 }
 0x1c7   :  { %2929 = vmatpush3.bf16.msra.mxu0 %v3498_v35 }
 0x1c9   :  { %1835 = vmatmul.mubr.bf16.gmra.mrb[48].mxu0 %v3880_v15  ;;  %2061 = vmatmul.mubr.bf16.gmra.mrb[48].mxu1 %v3880_v15  ;;  %v3500_v15 = vld [vmem:[#allocation8 + $0xb8] sm:$0xff]  }
 0x1ca   :  { %1844 = vmatprep.mubr.bf16.mxu0 %v3892_v48  ;;  %2070 = vmatprep.mubr.bf16.mxu1 %v3892_v48  ;;  %v3941_v48 = vrot.slane %v987_v17, %v207_v28 }
 0x1cb   :  { %2993 = vmatpush3.bf16.msra.mxu1 %v3500_v15 }
 0x1d1   :  { %1845 = vmatmul.mubr.bf16.gmra.mrb[52].mxu0 %v3889_v44  ;;  %2071 = vmatmul.mubr.bf16.gmra.mrb[52].mxu1 %v3889_v44  ;;  %v3937_v44 = vrot.slane %v987_v17, %v199_v52 }
 0x1d2   :  { %1854 = vmatprep.mubr.bf16.mxu0 %v3904_v12  ;;  %2080 = vmatprep.mubr.bf16.mxu1 %v3904_v12 }
 0x1d9   :  { %1855 = vmatmul.mubr.bf16.gmra.mrb[56].mxu0 %v3902_v8  ;;  %2081 = vmatmul.mubr.bf16.gmra.mrb[56].mxu1 %v3902_v8 }
 0x1da   :  { %1864 = vmatprep.mubr.bf16.mxu0 %v858_v46  ;;  %2090 = vmatprep.mubr.bf16.mxu1 %v858_v46 }
 0x1e1   :  { %1865 = vmatmul.mubr.bf16.gmra.mrb[60].mxu0 %v857_v32  ;;  %2091 = vmatmul.mubr.bf16.gmra.mrb[60].mxu1 %v857_v32 }
 0x27c   :  { %v1796_v61 = vpop.f32.mrb[32].mxu0  ;;  %v2022_v62 = vpop.f32.mrb[32].mxu1 }
 0x27d   :  { %v3042_v63 = vadd.f32 %v1796_v61, %v3937_v44  ;;  %v3074_v0 = vadd.f32 %v2022_v62, %v3941_v48  ;;  %v1798_v52 = vpop.f32.mrb[33].mxu0  ;;  %v2024_v1 = vpop.f32.mrb[33].mxu1 }
 0x27e   :  { %v3043_v53 = vadd.f32 %v1798_v52, %v3945_v59  ;;  %v3075_v28 = vadd.f32 %v2024_v1, %v3949_v60  ;;  %v1800_v30 = vpop.f32.mrb[34].mxu0  ;;  %v2026_v2 = vpop.f32.mrb[34].mxu1 }
 0x27f   :  { %v3044_v54 = vadd.f32 %v1800_v30, %v3937_v44  ;;  %v3076_v51 = vadd.f32 %v2026_v2, %v3941_v48  ;;  %v1802_v33 = vpop.f32.mrb[35].mxu0  ;;  %v2028_v3 = vpop.f32.mrb[35].mxu1  ;;  %v2101_v6 = vmax.f32 %v3042_v63, 0.0  ;;  %v2103_v8 = vmax.f32 %v3074_v0, 0.0 }
 0x280   :  { %v3045_v4 = vadd.f32 %v1802_v33, %v3945_v59  ;;  %v3077_v5 = vadd.f32 %v2028_v3, %v3949_v60  ;;  %v2102_v12 = vmax.f32 %v3043_v53, 0.0  ;;  %v2104_v13 = vmax.f32 %v3075_v28, 0.0 }
 0x281   :  { %v2105_v9 = vmax.f32 %v3044_v54, 0.0  ;;  %v2107_v11 = vmax.f32 %v3076_v51, 0.0 }
 0x282   :  { %v2106_v14 = vmax.f32 %v3045_v4, 0.0  ;;  %v2108_v55 = vmax.f32 %v3077_v5, 0.0 }
 0x283   :  { %v2165_v26 = vpack.c.bf16 %v2105_v9, %v2101_v6  ;;  %v2167_v16 = vpack.c.bf16 %v2107_v11, %v2103_v8 }
 0x284   :  { %v2166_v18 = vpack.c.bf16 %v2106_v14, %v2102_v12  ;;  %v2168_v10 = vpack.c.bf16 %v2108_v55, %v2104_v13  ;;  %v1806_v19 = vpop.f32.mrb[36].mxu0  ;;  %v2032_v56 = vpop.f32.mrb[36].mxu1 }
 0x285   :  { %v3046_v20 = vadd.f32 %v1806_v19, %v3937_v44  ;;  %v3078_v21 = vadd.f32 %v2032_v56, %v3941_v48  ;;  %v1808_v22 = vpop.f32.mrb[37].mxu0  ;;  %v2034_v23 = vpop.f32.mrb[37].mxu1 }
 0x286   :  { %v3047_v24 = vadd.f32 %v1808_v22, %v3945_v59  ;;  %v3079_v25 = vadd.f32 %v2034_v23, %v3949_v60  ;;  %v1810_v27 = vpop.f32.mrb[38].mxu0  ;;  %v2036_v29 = vpop.f32.mrb[38].mxu1  ;;  %2492 = vmatprep.mubr.bf16.mxu0 %v2166_v18  ;;  %2589 = vmatprep.mubr.bf16.mxu1 %v2168_v10 }
 0x287   :  { %v3048_v42 = vadd.f32 %v1810_v27, %v3937_v44  ;;  %v3080_v32 = vadd.f32 %v2036_v29, %v3941_v48  ;;  %v1812_v34 = vpop.f32.mrb[39].mxu0  ;;  %v2038_v36 = vpop.f32.mrb[39].mxu1  ;;  %2493 = vmatmul.mubr.bf16.vlgmr.msra.gmra.mrb[64].mxu0 %v2165_v26  ;;  %2590 = vmatmul.mubr.bf16.vlgmr.msra.gmra.mrb[64].mxu1 %v2167_v16  ;;  %v2109_v38 = vmax.f32 %v3046_v20, 0.0  ;;  %v2111_v39 = vmax.f32 %v3078_v21, 0.0 }
 0x288   :  { %v3049_v46 = vadd.f32 %v1812_v34, %v3945_v59  ;;  %v3081_v37 = vadd.f32 %v2038_v36, %v3949_v60  ;;  %v2110_v41 = vmax.f32 %v3047_v24, 0.0  ;;  %v2112_v58 = vmax.f32 %v3079_v25, 0.0 }
 0x289   :  { %v2113_v7 = vmax.f32 %v3048_v42, 0.0  ;;  %v2115_v40 = vmax.f32 %v3080_v32, 0.0 }
 0x28a   :  { %v2114_v43 = vmax.f32 %v3049_v46, 0.0  ;;  %v2116_v45 = vmax.f32 %v3081_v37, 0.0 }
 0x28b   :  { %v2169_v47 = vpack.c.bf16 %v2113_v7, %v2109_v38  ;;  %v2171_v50 = vpack.c.bf16 %v2115_v40, %v2111_v39 }
 0x28c   :  { %v2170_v57 = vpack.c.bf16 %v2114_v43, %v2110_v41  ;;  %v2172_v49 = vpack.c.bf16 %v2116_v45, %v2112_v58  ;;  %v1816_v31 = vpop.f32.mrb[40].mxu0  ;;  %v2042_v35 = vpop.f32.mrb[40].mxu1 }
 0x28d   :  { %v3050_v15 = vadd.f32 %v1816_v31, %v3937_v44  ;;  %v3082_v17 = vadd.f32 %v2042_v35, %v3941_v48  ;;  %v1818_v61 = vpop.f32.mrb[41].mxu0  ;;  %v2044_v62 = vpop.f32.mrb[41].mxu1 }
 0x28e   :  { %v3051_v63 = vadd.f32 %v1818_v61, %v3945_v59  ;;  %v3083_v0 = vadd.f32 %v2044_v62, %v3949_v60  ;;  %v1820_v52 = vpop.f32.mrb[42].mxu0  ;;  %v2046_v1 = vpop.f32.mrb[42].mxu1  ;;  %2500 = vmatprep.mubr.bf16.mxu0 %v2170_v57  ;;  %2597 = vmatprep.mubr.bf16.mxu1 %v2172_v49 }
 0x28f   :  { %v3052_v53 = vadd.f32 %v1820_v52, %v3937_v44  ;;  %v3084_v28 = vadd.f32 %v2046_v1, %v3941_v48  ;;  %v1822_v30 = vpop.f32.mrb[43].mxu0  ;;  %v2048_v2 = vpop.f32.mrb[43].mxu1  ;;  %2501 = vmatmul.mubr.bf16.gmra.mrb[68].mxu0 %v2169_v47  ;;  %2598 = vmatmul.mubr.bf16.gmra.mrb[68].mxu1 %v2171_v50  ;;  %v2117_v33 = vmax.f32 %v3050_v15, 0.0  ;;  %v2119_v3 = vmax.f32 %v3082_v17, 0.0 }
 0x290   :  { %v3053_v54 = vadd.f32 %v1822_v30, %v3945_v59  ;;  %v3085_v51 = vadd.f32 %v2048_v2, %v3949_v60  ;;  %v2118_v6 = vmax.f32 %v3051_v63, 0.0  ;;  %v2120_v8 = vmax.f32 %v3083_v0, 0.0 }
 0x291   :  { %v2121_v4 = vmax.f32 %v3052_v53, 0.0  ;;  %v2123_v5 = vmax.f32 %v3084_v28, 0.0 }
 0x292   :  { %v2122_v9 = vmax.f32 %v3053_v54, 0.0  ;;  %v2124_v11 = vmax.f32 %v3085_v51, 0.0 }
 0x293   :  { %v2173_v12 = vpack.c.bf16 %v2121_v4, %v2117_v33  ;;  %v2175_v13 = vpack.c.bf16 %v2123_v5, %v2119_v3 }
 0x294   :  { %v2174_v14 = vpack.c.bf16 %v2122_v9, %v2118_v6  ;;  %v2176_v55 = vpack.c.bf16 %v2124_v11, %v2120_v8  ;;  %v1826_v26 = vpop.f32.mrb[44].mxu0  ;;  %v2052_v16 = vpop.f32.mrb[44].mxu1 }
 0x295   :  { %v3054_v18 = vadd.f32 %v1826_v26, %v3937_v44  ;;  %v3086_v10 = vadd.f32 %v2052_v16, %v3941_v48  ;;  %v1828_v19 = vpop.f32.mrb[45].mxu0  ;;  %v2054_v56 = vpop.f32.mrb[45].mxu1 }
 0x296   :  { %v3055_v20 = vadd.f32 %v1828_v19, %v3945_v59  ;;  %v3087_v21 = vadd.f32 %v2054_v56, %v3949_v60  ;;  %v1830_v22 = vpop.f32.mrb[46].mxu0  ;;  %v2056_v23 = vpop.f32.mrb[46].mxu1  ;;  %2508 = vmatprep.mubr.bf16.mxu0 %v2174_v14  ;;  %2605 = vmatprep.mubr.bf16.mxu1 %v2176_v55 }
 0x297   :  { %v3056_v24 = vadd.f32 %v1830_v22, %v3937_v44  ;;  %v3088_v25 = vadd.f32 %v2056_v23, %v3941_v48  ;;  %v1832_v27 = vpop.f32.mrb[47].mxu0  ;;  %v2058_v29 = vpop.f32.mrb[47].mxu1  ;;  %2509 = vmatmul.mubr.bf16.gmra.mrb[72].mxu0 %v2173_v12  ;;  %2606 = vmatmul.mubr.bf16.gmra.mrb[72].mxu1 %v2175_v13  ;;  %v2125_v34 = vmax.f32 %v3054_v18, 0.0  ;;  %v2127_v36 = vmax.f32 %v3086_v10, 0.0 }
 0x298   :  { %v3057_v42 = vadd.f32 %v1832_v27, %v3945_v59  ;;  %v3089_v32 = vadd.f32 %v2058_v29, %v3949_v60  ;;  %v2126_v38 = vmax.f32 %v3055_v20, 0.0  ;;  %v2128_v39 = vmax.f32 %v3087_v21, 0.0 }
 0x299   :  { %v2129_v46 = vmax.f32 %v3056_v24, 0.0  ;;  %v2131_v37 = vmax.f32 %v3088_v25, 0.0 }
 0x29a   :  { %v2130_v7 = vmax.f32 %v3057_v42, 0.0  ;;  %v2132_v40 = vmax.f32 %v3089_v32, 0.0 }
 0x29b   :  { %v2177_v41 = vpack.c.bf16 %v2129_v46, %v2125_v34  ;;  %v2179_v58 = vpack.c.bf16 %v2131_v37, %v2127_v36 }
 0x29c   :  { %v2178_v43 = vpack.c.bf16 %v2130_v7, %v2126_v38  ;;  %v2180_v45 = vpack.c.bf16 %v2132_v40, %v2128_v39  ;;  %v1836_v47 = vpop.f32.mrb[48].mxu0  ;;  %v2062_v50 = vpop.f32.mrb[48].mxu1 }
 0x29d   :  { %v3058_v57 = vadd.f32 %v1836_v47, %v3937_v44  ;;  %v3090_v49 = vadd.f32 %v2062_v50, %v3941_v48  ;;  %v1838_v31 = vpop.f32.mrb[49].mxu0  ;;  %v2064_v35 = vpop.f32.mrb[49].mxu1 }
 0x29e   :  { %v3059_v15 = vadd.f32 %v1838_v31, %v3945_v59  ;;  %v3091_v17 = vadd.f32 %v2064_v35, %v3949_v60  ;;  %v1840_v61 = vpop.f32.mrb[50].mxu0  ;;  %v2066_v62 = vpop.f32.mrb[50].mxu1  ;;  %2516 = vmatprep.mubr.bf16.mxu0 %v2178_v43  ;;  %2613 = vmatprep.mubr.bf16.mxu1 %v2180_v45 }
 0x29f   :  { %v3060_v63 = vadd.f32 %v1840_v61, %v3937_v44  ;;  %v3092_v0 = vadd.f32 %v2066_v62, %v3941_v48  ;;  %v1842_v52 = vpop.f32.mrb[51].mxu0  ;;  %v2068_v1 = vpop.f32.mrb[51].mxu1  ;;  %2517 = vmatmul.mubr.bf16.gmra.mrb[76].mxu0 %v2177_v41  ;;  %2614 = vmatmul.mubr.bf16.gmra.mrb[76].mxu1 %v2179_v58  ;;  %v2133_v30 = vmax.f32 %v3058_v57, 0.0  ;;  %v2135_v2 = vmax.f32 %v3090_v49, 0.0 }
 0x2a0   :  { %v3061_v53 = vadd.f32 %v1842_v52, %v3945_v59  ;;  %v3093_v28 = vadd.f32 %v2068_v1, %v3949_v60  ;;  %v2134_v33 = vmax.f32 %v3059_v15, 0.0  ;;  %v2136_v3 = vmax.f32 %v3091_v17, 0.0 }
 0x2a1   :  { %v2137_v54 = vmax.f32 %v3060_v63, 0.0  ;;  %v2139_v51 = vmax.f32 %v3092_v0, 0.0 }
 0x2a2   :  { %v2138_v4 = vmax.f32 %v3061_v53, 0.0  ;;  %v2140_v5 = vmax.f32 %v3093_v28, 0.0 }
 0x2a3   :  { %v2181_v6 = vpack.c.bf16 %v2137_v54, %v2133_v30  ;;  %v2183_v8 = vpack.c.bf16 %v2139_v51, %v2135_v2 }
 0x2a4   :  { %v2182_v9 = vpack.c.bf16 %v2138_v4, %v2134_v33  ;;  %v2184_v11 = vpack.c.bf16 %v2140_v5, %v2136_v3  ;;  %v1846_v12 = vpop.f32.mrb[52].mxu0  ;;  %v2072_v13 = vpop.f32.mrb[52].mxu1 }
 0x2a5   :  { %v3062_v14 = vadd.f32 %v1846_v12, %v3937_v44  ;;  %v3094_v55 = vadd.f32 %v2072_v13, %v3941_v48  ;;  %v1848_v26 = vpop.f32.mrb[53].mxu0  ;;  %v2074_v16 = vpop.f32.mrb[53].mxu1 }
 0x2a6   :  { %v3063_v18 = vadd.f32 %v1848_v26, %v3945_v59  ;;  %v3095_v10 = vadd.f32 %v2074_v16, %v3949_v60  ;;  %v1850_v19 = vpop.f32.mrb[54].mxu0  ;;  %v2076_v56 = vpop.f32.mrb[54].mxu1  ;;  %2524 = vmatprep.mubr.bf16.mxu0 %v2182_v9  ;;  %2621 = vmatprep.mubr.bf16.mxu1 %v2184_v11 }
 0x2a7   :  { %v3064_v20 = vadd.f32 %v1850_v19, %v3937_v44  ;;  %v3096_v21 = vadd.f32 %v2076_v56, %v3941_v48  ;;  %v1852_v22 = vpop.f32.mrb[55].mxu0  ;;  %v2078_v23 = vpop.f32.mrb[55].mxu1  ;;  %2525 = vmatmul.mubr.bf16.gmra.mrb[80].mxu0 %v2181_v6  ;;  %2622 = vmatmul.mubr.bf16.gmra.mrb[80].mxu1 %v2183_v8  ;;  %v2141_v27 = vmax.f32 %v3062_v14, 0.0  ;;  %v2143_v29 = vmax.f32 %v3094_v55, 0.0 }
 0x2a8   :  { %v3065_v24 = vadd.f32 %v1852_v22, %v3945_v59  ;;  %v3097_v25 = vadd.f32 %v2078_v23, %v3949_v60  ;;  %v2142_v34 = vmax.f32 %v3063_v18, 0.0  ;;  %v2144_v36 = vmax.f32 %v3095_v10, 0.0 }
 0x2a9   :  { %v2145_v42 = vmax.f32 %v3064_v20, 0.0  ;;  %v2147_v32 = vmax.f32 %v3096_v21, 0.0 }
 0x2aa   :  { %v2146_v46 = vmax.f32 %v3065_v24, 0.0  ;;  %v2148_v37 = vmax.f32 %v3097_v25, 0.0 }
 0x2ab   :  { %v2185_v38 = vpack.c.bf16 %v2145_v42, %v2141_v27  ;;  %v2187_v39 = vpack.c.bf16 %v2147_v32, %v2143_v29 }
 0x2ac   :  { %v2186_v7 = vpack.c.bf16 %v2146_v46, %v2142_v34  ;;  %v2188_v40 = vpack.c.bf16 %v2148_v37, %v2144_v36  ;;  %v1856_v41 = vpop.f32.mrb[56].mxu0  ;;  %v2082_v58 = vpop.f32.mrb[56].mxu1 }
 0x2ad   :  { %v3066_v43 = vadd.f32 %v1856_v41, %v3937_v44  ;;  %v3098_v45 = vadd.f32 %v2082_v58, %v3941_v48  ;;  %v1858_v47 = vpop.f32.mrb[57].mxu0  ;;  %v2084_v50 = vpop.f32.mrb[57].mxu1 }
 0x2ae   :  { %v3067_v57 = vadd.f32 %v1858_v47, %v3945_v59  ;;  %v3099_v49 = vadd.f32 %v2084_v50, %v3949_v60  ;;  %v1860_v31 = vpop.f32.mrb[58].mxu0  ;;  %v2086_v35 = vpop.f32.mrb[58].mxu1  ;;  %2532 = vmatprep.mubr.bf16.mxu0 %v2186_v7  ;;  %2629 = vmatprep.mubr.bf16.mxu1 %v2188_v40 }
 0x2af   :  { %v3068_v15 = vadd.f32 %v1860_v31, %v3937_v44  ;;  %v3100_v17 = vadd.f32 %v2086_v35, %v3941_v48  ;;  %v1862_v61 = vpop.f32.mrb[59].mxu0  ;;  %v2088_v62 = vpop.f32.mrb[59].mxu1  ;;  %2533 = vmatmul.mubr.bf16.gmra.mrb[84].mxu0 %v2185_v38  ;;  %2630 = vmatmul.mubr.bf16.gmra.mrb[84].mxu1 %v2187_v39  ;;  %v2149_v52 = vmax.f32 %v3066_v43, 0.0  ;;  %v2151_v1 = vmax.f32 %v3098_v45, 0.0 }
 0x2b0   :  { %v3069_v63 = vadd.f32 %v1862_v61, %v3945_v59  ;;  %v3101_v0 = vadd.f32 %v2088_v62, %v3949_v60  ;;  %v2150_v30 = vmax.f32 %v3067_v57, 0.0  ;;  %v2152_v2 = vmax.f32 %v3099_v49, 0.0 }
 0x2b1   :  { %v2153_v53 = vmax.f32 %v3068_v15, 0.0  ;;  %v2155_v28 = vmax.f32 %v3100_v17, 0.0 }
 0x2b2   :  { %v2154_v54 = vmax.f32 %v3069_v63, 0.0  ;;  %v2156_v51 = vmax.f32 %v3101_v0, 0.0 }
 0x2b3   :  { %v2189_v33 = vpack.c.bf16 %v2153_v53, %v2149_v52  ;;  %v2191_v3 = vpack.c.bf16 %v2155_v28, %v2151_v1 }
 0x2b4   :  { %v2190_v4 = vpack.c.bf16 %v2154_v54, %v2150_v30  ;;  %v2192_v5 = vpack.c.bf16 %v2156_v51, %v2152_v2  ;;  %v1866_v6 = vpop.f32.mrb[60].mxu0  ;;  %v2092_v8 = vpop.f32.mrb[60].mxu1 }
 0x2b5   :  { %v3070_v9 = vadd.f32 %v1866_v6, %v3937_v44  ;;  %v3102_v11 = vadd.f32 %v2092_v8, %v3941_v48  ;;  %v1868_v12 = vpop.f32.mrb[61].mxu0  ;;  %v2094_v13 = vpop.f32.mrb[61].mxu1 }
 0x2b6   :  { %v3071_v14 = vadd.f32 %v1868_v12, %v3945_v59  ;;  %v3103_v55 = vadd.f32 %v2094_v13, %v3949_v60  ;;  %v1870_v26 = vpop.f32.mrb[62].mxu0  ;;  %v2096_v16 = vpop.f32.mrb[62].mxu1  ;;  %2540 = vmatprep.mubr.bf16.mxu0 %v2190_v4  ;;  %2637 = vmatprep.mubr.bf16.mxu1 %v2192_v5 }
 0x2b7   :  { %v3072_v18 = vadd.f32 %v1870_v26, %v3937_v44  ;;  %v3104_v10 = vadd.f32 %v2096_v16, %v3941_v48  ;;  %v1872_v19 = vpop.f32.mrb[63].mxu0  ;;  %v2098_v56 = vpop.f32.mrb[63].mxu1  ;;  %2541 = vmatmul.mubr.bf16.gmra.mrb[88].mxu0 %v2189_v33  ;;  %2638 = vmatmul.mubr.bf16.gmra.mrb[88].mxu1 %v2191_v3  ;;  %v2157_v22 = vmax.f32 %v3070_v9, 0.0  ;;  %v2159_v23 = vmax.f32 %v3102_v11, 0.0 }
 0x2b8   :  { %v3073_v20 = vadd.f32 %v1872_v19, %v3945_v59  ;;  %v3105_v21 = vadd.f32 %v2098_v56, %v3949_v60  ;;  %v2158_v27 = vmax.f32 %v3071_v14, 0.0  ;;  %v2160_v29 = vmax.f32 %v3103_v55, 0.0  ;;  %v4018_v60 = vld [vmem:[%s4054_s6] ss:$0 sm:$0xff]  ;;  %s3627_s6 = smov [#allocation10]  }
 0x2b9   :  { %v2161_v24 = vmax.f32 %v3072_v18, 0.0  ;;  %v2163_v25 = vmax.f32 %v3104_v10, 0.0  ;;  %s2675_s30 = sshll.u32 %s3627_s6, 4  ;;  %s2676_s30 = int_to_ptr.vmem [resolvable:$true] %s2675_s30 }
 0x2ba   :  { %v2162_v42 = vmax.f32 %v3073_v20, 0.0  ;;  %v2164_v32 = vmax.f32 %v3105_v21, 0.0  ;;  %s3589_s8 = scalar_lea.vmem %s2676_s30, 2048  ;;  %p3594_p5 = scmp.lt.s32.totalorder %s2676_s30, %s2676_s30 }
 0x2bb   :  { %v2193_v34 = vpack.c.bf16 %v2161_v24, %v2157_v22  ;;  %v2195_v44 = vpack.c.bf16 %v2163_v25, %v2159_v23  ;;  %p3590_p4 = scmp.ne.s32.totalorder %s2676_s30, %s3589_s8  ;;  %p3595_p6 = scmp.lt.s32.totalorder %s3589_s8, %s3589_s8 }
 0x2bc   :  { %v2194_v36 = vpack.c.bf16 %v2162_v42, %v2158_v27  ;;  %v2196_v48 = vpack.c.bf16 %v2164_v32, %v2160_v29 }
 0x2bd   :  { %p3596_p7 = por %p3595_p6, %p3594_p5 }
 0x2be   :  { %2548 = vmatprep.mubr.bf16.mxu0 %v2194_v36  ;;  %2645 = vmatprep.mubr.bf16.mxu1 %v2196_v48 }
 0x2bf   :  { %2549 = vmatmul.mubr.bf16.gmra.mrb[92].mxu0 %v2193_v34  ;;  %2646 = vmatmul.mubr.bf16.gmra.mrb[92].mxu1 %v2195_v44  ;;  %p3597_p8 = pnand %p3596_p7, %p3590_p4 }
 0x35a   :  { %v2930_v46 = vpop.f32.mrb[64].mxu0  ;;  %v2994_v59 = vpop.f32.mrb[64].mxu1 }
 0x35b   :  { %v2931_v37 = vpop.f32.mrb[65].mxu0  ;;  %v2995_v38 = vpop.f32.mrb[65].mxu1 }
 0x35c   :  { %v2932_v39 = vadd.f32 %v2931_v37, %v2930_v46  ;;  %v2996_v7 = vadd.f32 %v2995_v38, %v2994_v59  ;;  %v2933_v40 = vpop.f32.mrb[66].mxu0  ;;  %v2997_v41 = vpop.f32.mrb[66].mxu1 }
 0x35d   :  { %v2934_v58 = vpop.f32.mrb[67].mxu0  ;;  %v2998_v43 = vpop.f32.mrb[67].mxu1 }
 0x35e   :  { %v2495_v45 = vadd.f32 %v2932_v39, %v4018_v60  ;;  %v2935_v47 = vadd.f32 %v2934_v58, %v2933_v40  ;;  %v2999_v50 = vadd.f32 %v2998_v43, %v2997_v41 }
 0x360   :  { %v2592_v57 = vadd.f32 %v2996_v7, %v2495_v45  ;;  %v2498_v49 = vadd.f32 %v2935_v47, %v4018_v60 }
 0x362   :  { %2654 = vst [vmem:[#allocation10] sm:$0xff] %v2592_v57  ;;  %v2595_v31 = vadd.f32 %v2999_v50, %v2498_v49  ;;  %v2936_v35 = vpop.f32.mrb[68].mxu0  ;;  %v3000_v15 = vpop.f32.mrb[68].mxu1 }
 0x363   :  { %v2937_v17 = vpop.f32.mrb[69].mxu0  ;;  %v3001_v61 = vpop.f32.mrb[69].mxu1 }
 0x364   :  { %2655 = vst [vmem:[#allocation10 + $0x8] sm:$0xff] %v2595_v31  ;;  %v2938_v62 = vadd.f32 %v2937_v17, %v2936_v35  ;;  %v3002_v63 = vadd.f32 %v3001_v61, %v3000_v15  ;;  %v2939_v0 = vpop.f32.mrb[70].mxu0  ;;  %v3003_v52 = vpop.f32.mrb[70].mxu1 }
 0x365   :  { %v2940_v1 = vpop.f32.mrb[71].mxu0  ;;  %v3004_v53 = vpop.f32.mrb[71].mxu1 }
 0x366   :  { %v2503_v28 = vadd.f32 %v2938_v62, %v4018_v60  ;;  %v2941_v30 = vadd.f32 %v2940_v1, %v2939_v0  ;;  %v3005_v2 = vadd.f32 %v3004_v53, %v3003_v52 }
 0x368   :  { %v2600_v54 = vadd.f32 %v3002_v63, %v2503_v28  ;;  %v2506_v51 = vadd.f32 %v2941_v30, %v4018_v60 }
 0x36a   :  { %2656 = vst [vmem:[#allocation10 + $0x10] sm:$0xff] %v2600_v54  ;;  %v2603_v33 = vadd.f32 %v3005_v2, %v2506_v51  ;;  %v2942_v3 = vpop.f32.mrb[72].mxu0  ;;  %v3006_v4 = vpop.f32.mrb[72].mxu1 }
 0x36b   :  { %v2943_v5 = vpop.f32.mrb[73].mxu0  ;;  %v3007_v6 = vpop.f32.mrb[73].mxu1 }
 0x36c   :  { %2657 = vst [vmem:[#allocation10 + $0x18] sm:$0xff] %v2603_v33  ;;  %v2944_v8 = vadd.f32 %v2943_v5, %v2942_v3  ;;  %v3008_v9 = vadd.f32 %v3007_v6, %v3006_v4  ;;  %v2945_v11 = vpop.f32.mrb[74].mxu0  ;;  %v3009_v12 = vpop.f32.mrb[74].mxu1 }
 0x36d   :  { %v2946_v13 = vpop.f32.mrb[75].mxu0  ;;  %v3010_v14 = vpop.f32.mrb[75].mxu1 }
 0x36e   :  { %v2511_v55 = vadd.f32 %v2944_v8, %v4018_v60  ;;  %v2947_v26 = vadd.f32 %v2946_v13, %v2945_v11  ;;  %v3011_v16 = vadd.f32 %v3010_v14, %v3009_v12 }
 0x370   :  { %v2608_v18 = vadd.f32 %v3008_v9, %v2511_v55  ;;  %v2514_v10 = vadd.f32 %v2947_v26, %v4018_v60 }
 0x372   :  { %2658 = vst [vmem:[#allocation10 + $0x20] sm:$0xff] %v2608_v18  ;;  %v2611_v19 = vadd.f32 %v3011_v16, %v2514_v10  ;;  %v2948_v56 = vpop.f32.mrb[76].mxu0  ;;  %v3012_v20 = vpop.f32.mrb[76].mxu1 }
 0x373   :  { %v2949_v21 = vpop.f32.mrb[77].mxu0  ;;  %v3013_v22 = vpop.f32.mrb[77].mxu1 }
 0x374   :  { %2659 = vst [vmem:[#allocation10 + $0x28] sm:$0xff] %v2611_v19  ;;  %v2950_v23 = vadd.f32 %v2949_v21, %v2948_v56  ;;  %v3014_v24 = vadd.f32 %v3013_v22, %v3012_v20  ;;  %v2951_v25 = vpop.f32.mrb[78].mxu0  ;;  %v3015_v27 = vpop.f32.mrb[78].mxu1 }
 0x375   :  { %v2952_v29 = vpop.f32.mrb[79].mxu0  ;;  %v3016_v42 = vpop.f32.mrb[79].mxu1 }
 0x376   :  { %v2519_v32 = vadd.f32 %v2950_v23, %v4018_v60  ;;  %v2953_v34 = vadd.f32 %v2952_v29, %v2951_v25  ;;  %v3017_v44 = vadd.f32 %v3016_v42, %v3015_v27 }
 0x378   :  { %v2616_v36 = vadd.f32 %v3014_v24, %v2519_v32  ;;  %v2522_v48 = vadd.f32 %v2953_v34, %v4018_v60 }
 0x37a   :  { %2660 = vst [vmem:[#allocation10 + $0x30] sm:$0xff] %v2616_v36  ;;  %v2619_v46 = vadd.f32 %v3017_v44, %v2522_v48  ;;  %v2954_v59 = vpop.f32.mrb[80].mxu0  ;;  %v3018_v37 = vpop.f32.mrb[80].mxu1 }
 0x37b   :  { %v2955_v38 = vpop.f32.mrb[81].mxu0  ;;  %v3019_v39 = vpop.f32.mrb[81].mxu1 }
 0x37c   :  { %2661 = vst [vmem:[#allocation10 + $0x38] sm:$0xff] %v2619_v46  ;;  %v2956_v7 = vadd.f32 %v2955_v38, %v2954_v59  ;;  %v3020_v40 = vadd.f32 %v3019_v39, %v3018_v37  ;;  %v2957_v41 = vpop.f32.mrb[82].mxu0  ;;  %v3021_v58 = vpop.f32.mrb[82].mxu1 }
 0x37d   :  { %v2958_v43 = vpop.f32.mrb[83].mxu0  ;;  %v3022_v45 = vpop.f32.mrb[83].mxu1 }
 0x37e   :  { %v2527_v47 = vadd.f32 %v2956_v7, %v4018_v60  ;;  %v2959_v50 = vadd.f32 %v2958_v43, %v2957_v41  ;;  %v3023_v57 = vadd.f32 %v3022_v45, %v3021_v58 }
 0x380   :  { %v2624_v49 = vadd.f32 %v3020_v40, %v2527_v47  ;;  %v2530_v31 = vadd.f32 %v2959_v50, %v4018_v60 }
 0x382   :  { %2662 = vst [vmem:[#allocation10 + $0x40] sm:$0xff] %v2624_v49  ;;  %v2627_v35 = vadd.f32 %v3023_v57, %v2530_v31  ;;  %v2960_v15 = vpop.f32.mrb[84].mxu0  ;;  %v3024_v17 = vpop.f32.mrb[84].mxu1 }
 0x383   :  { %v2961_v61 = vpop.f32.mrb[85].mxu0  ;;  %v3025_v62 = vpop.f32.mrb[85].mxu1 }
 0x384   :  { %2663 = vst [vmem:[#allocation10 + $0x48] sm:$0xff] %v2627_v35  ;;  %v2962_v63 = vadd.f32 %v2961_v61, %v2960_v15  ;;  %v3026_v0 = vadd.f32 %v3025_v62, %v3024_v17  ;;  %v2963_v52 = vpop.f32.mrb[86].mxu0  ;;  %v3027_v1 = vpop.f32.mrb[86].mxu1 }
 0x385   :  { %v2964_v53 = vpop.f32.mrb[87].mxu0  ;;  %v3028_v28 = vpop.f32.mrb[87].mxu1 }
 0x386   :  { %v2535_v30 = vadd.f32 %v2962_v63, %v4018_v60  ;;  %v2965_v2 = vadd.f32 %v2964_v53, %v2963_v52  ;;  %v3029_v54 = vadd.f32 %v3028_v28, %v3027_v1 }
 0x388   :  { %v2632_v51 = vadd.f32 %v3026_v0, %v2535_v30  ;;  %v2538_v33 = vadd.f32 %v2965_v2, %v4018_v60 }
 0x38a   :  { %2664 = vst [vmem:[#allocation10 + $0x50] sm:$0xff] %v2632_v51  ;;  %v2635_v3 = vadd.f32 %v3029_v54, %v2538_v33  ;;  %v2966_v4 = vpop.f32.mrb[88].mxu0  ;;  %v3030_v5 = vpop.f32.mrb[88].mxu1 }
 0x38b   :  { %v2967_v6 = vpop.f32.mrb[89].mxu0  ;;  %v3031_v8 = vpop.f32.mrb[89].mxu1 }
 0x38c   :  { %2665 = vst [vmem:[#allocation10 + $0x58] sm:$0xff] %v2635_v3  ;;  %v2968_v9 = vadd.f32 %v2967_v6, %v2966_v4  ;;  %v3032_v11 = vadd.f32 %v3031_v8, %v3030_v5  ;;  %v2969_v12 = vpop.f32.mrb[90].mxu0  ;;  %v3033_v13 = vpop.f32.mrb[90].mxu1 }
 0x38d   :  { %v2970_v14 = vpop.f32.mrb[91].mxu0  ;;  %v3034_v55 = vpop.f32.mrb[91].mxu1 }
 0x38e   :  { %v2543_v26 = vadd.f32 %v2968_v9, %v4018_v60  ;;  %v2971_v16 = vadd.f32 %v2970_v14, %v2969_v12  ;;  %v3035_v18 = vadd.f32 %v3034_v55, %v3033_v13 }
 0x390   :  { %v2640_v10 = vadd.f32 %v3032_v11, %v2543_v26  ;;  %v2546_v19 = vadd.f32 %v2971_v16, %v4018_v60 }
 0x392   :  { %2666 = vst [vmem:[#allocation10 + $0x60] sm:$0xff] %v2640_v10  ;;  %v2643_v56 = vadd.f32 %v3035_v18, %v2546_v19  ;;  %v2972_v20 = vpop.f32.mrb[92].mxu0  ;;  %v3036_v21 = vpop.f32.mrb[92].mxu1 }
 0x393   :  { %v2973_v22 = vpop.f32.mrb[93].mxu0  ;;  %v3037_v23 = vpop.f32.mrb[93].mxu1 }
 0x394   :  { %2667 = vst [vmem:[#allocation10 + $0x68] sm:$0xff] %v2643_v56  ;;  %v2974_v24 = vadd.f32 %v2973_v22, %v2972_v20  ;;  %v3038_v25 = vadd.f32 %v3037_v23, %v3036_v21  ;;  %v2975_v27 = vpop.f32.mrb[94].mxu0  ;;  %v3039_v29 = vpop.f32.mrb[94].mxu1 }
 0x395   :  { %v2976_v42 = vpop.f32.mrb[95].mxu0  ;;  %v3040_v32 = vpop.f32.mrb[95].mxu1 }
 0x396   :  { %v2551_v34 = vadd.f32 %v2974_v24, %v4018_v60  ;;  %v2977_v44 = vadd.f32 %v2976_v42, %v2975_v27  ;;  %v3041_v36 = vadd.f32 %v3040_v32, %v3039_v29 }
 0x398   :  { %v2648_v48 = vadd.f32 %v3038_v25, %v2551_v34  ;;  %v2554_v46 = vadd.f32 %v2977_v44, %v4018_v60 }
 0x39a   :  { %2668 = vst [vmem:[#allocation10 + $0x70] sm:$0xff] %v2648_v48  ;;  %v2651_v59 = vadd.f32 %v3041_v36, %v2554_v46 }
 0x39c   :  { %2669 = vst [vmem:[#allocation10 + $0x78] sm:$0xff] %v2651_v59 }
 0x39d   :  { %3600 = shalt.err (!%p3597_p8)
}
 0x39e   :  { %s3601_s11 = scalar_lea.hbm %s4055_s7, 2048 }
 0x39f   :  { %p3602_p9 = scmp.ne.s32.totalorder %s4055_s7, %s3601_s11  ;;  %p3605_p10 = scmp.lt.u32.totalorder %s3601_s11, %s4055_s7 }
 0x3a1   :  { %p3607_p11 = pnand %p3605_p10, %p3602_p9 }
 0x3a3   :  { %3610 = shalt.err (!%p3607_p11)
}
 0x3a4   :  { %s3628_s27 = smov 128   ;;  %s3629_s17 = smov 8  }
 0x3a5   :  { %2681 = dma.vmem_to_hbm [thread:$0]  %s2676_s30, 2048, %s4055_s7, [#allocation4], %s3628_s27, %s3628_s27, %s3629_s17  }
 0x3a6   :  { %3617 = dma.done.wait [#allocation4], 2048  }
 0x3a7   :  { %3618 = vsyncadd [#allocation4], 4294965248 }
 0x3a8   :  { %2685 = vsyncpa [#allocation3], 1 }
 0x3a9   :  { %2686 = vsyncpa [#allocation6], 1 }
 0x3aa   :  { %2687 = vsyncpa [#allocation9], 1 }
 0x3ab   :  { %2688 = vsyncpa [#allocation4], 1 }

// kernel: tpu_custom_call.1
= control target key start
LH: loop header
LB: loop body
LE: loop exit
PB: predicated region body
PF: predicated region fallthrough
CT: control target
= control target key end

     0   :  { %12 = vsyncpa [#allocation3], 0  ;;  %s4048_s0 = inlined_call_operand.hbm [shape: f32[128,256], index: 0, kind: input, shape index: {}]   ;;  %s4049_s1 = inlined_call_operand.hbm [shape: bf16[256,512], index: 1, kind: input, shape index: {}]   ;;  %s4050_s2 = inlined_call_operand.vmem [shape: f32[1,512], index: 2, kind: input, shape index: {}]   ;;  %s4051_s3 = inlined_call_operand.hbm [shape: bf16[512,512], index: 3, kind: input, shape index: {}]   ;;  %s4052_s4 = inlined_call_operand.vmem [shape: f32[1,512], index: 4, kind: input, shape index: {}]   ;;  %s4053_s5 = inlined_call_operand.hbm [shape: bf16[512,128], index: 5, kind: input, shape index: {}]   ;;  %s4054_s6 = inlined_call_operand.vmem [shape: f32[1,128], index: 6, kind: input, shape index: {}]   ;;  %s4055_s7 = inlined_call_operand.hbm [shape: f32[128,128], index: 7, kind: output, shape index: {}]  }
   0x1   :  { %13 = vsyncpa [#allocation6], 0 }
   0x2   :  { %14 = vsyncpa [#allocation9], 0 }
   0x3   :  { %15 = vsyncpa [#allocation4], 0  ;;  %s3619_s24 = smov [#allocation5]   ;;  %s3620_s26 = smov [#allocation2]  }
   0x4   :  { %s33_s25 = sshll.u32 %s3619_s24, 4  ;;  %s21_s27 = sshll.u32 %s3620_s26, 4  ;;  %s34_s25 = int_to_ptr.vmem [resolvable:$true] %s33_s25  ;;  %s3670_s27 = int_to_ptr.vmem [resolvable:$true] %s21_s27 }
   0x5   :  { %s3501_s30 = scalar_lea.hbm %s4049_s1, 8192 }
   0x6   :  { %p3502_p0 = scmp.ne.s32.totalorder %s4049_s1, %s3501_s30  ;;  %p3505_p1 = scmp.lt.u32.totalorder %s3501_s30, %s4049_s1 }
   0x8   :  { %p3507_p2 = pnand %p3505_p1, %p3502_p0 }
   0xa   :  { %3510 = shalt.err (!%p3507_p2)
}
   0xb   :  { %s3511_s12 = scalar_lea.vmem %s34_s25, 8192  ;;  %p3516_p4 = scmp.lt.s32.totalorder %s34_s25, %s34_s25 }
   0xc   :  { %p3512_p3 = scmp.ne.s32.totalorder %s34_s25, %s3511_s12  ;;  %p3517_p5 = scmp.lt.s32.totalorder %s3511_s12, %s3511_s12 }
   0xe   :  { %p3518_p6 = por %p3517_p5, %p3516_p4 }
  0x10   :  { %p3519_p7 = pnand %p3518_p6, %p3512_p3 }
  0x12   :  { %3522 = shalt.err (!%p3519_p7)
}
  0x13   :  { %s3621_s13 = smov 256   ;;  %s3622_s14 = smov 16  }
  0x14   :  { %39 = dma.hbm_to_vmem [thread:$0]  %s4049_s1, 8192, %s34_s25, [#allocation6], %s3621_s13, %s3621_s13, %s3622_s14  }
  0x15   :  { %s3523_s19 = scalar_lea.hbm %s4048_s0, 4096 }
  0x16   :  { %p3524_p8 = scmp.ne.s32.totalorder %s4048_s0, %s3523_s19  ;;  %p3527_p9 = scmp.lt.u32.totalorder %s3523_s19, %s4048_s0 }
  0x18   :  { %p3529_p10 = pnand %p3527_p9, %p3524_p8 }
  0x1a   :  { %3532 = shalt.err (!%p3529_p10)
}
  0x1b   :  { %s3533_s24 = scalar_lea.vmem %s3670_s27, 4096  ;;  %p3538_p12 = scmp.lt.s32.totalorder %s3670_s27, %s3670_s27 }
  0x1c   :  { %p3534_p11 = scmp.ne.s32.totalorder %s3670_s27, %s3533_s24  ;;  %p3539_p13 = scmp.lt.s32.totalorder %s3533_s24, %s3533_s24 }
  0x1e   :  { %p3540_p0 = por %p3539_p13, %p3538_p12 }
  0x20   :  { %p3541_p1 = pnand %p3540_p0, %p3534_p11 }
  0x22   :  { %3544 = shalt.err (!%p3541_p1)
}
  0x23   :  { %27 = dma.hbm_to_vmem [thread:$0]  %s4048_s0, 4096, %s3670_s27, [#allocation3], %s3621_s13, %s3621_s13, %s3622_s14  }
  0x24   :  { %s3623_s26 = smov [#allocation7]   ;;  %s3624_s29 = smov [#allocation8]  }
  0x25   :  { %s47_s28 = sshll.u32 %s3623_s26, 4  ;;  %s61_s30 = sshll.u32 %s3624_s29, 4  ;;  %s48_s28 = int_to_ptr.vmem [resolvable:$true] %s47_s28  ;;  %s3707_s30 = int_to_ptr.vmem [resolvable:$true] %s61_s30 }
  0x26   :  { %s3545_s10 = scalar_lea.hbm %s4051_s3, 16384 }
  0x27   :  { %p3546_p2 = scmp.ne.s32.totalorder %s4051_s3, %s3545_s10  ;;  %p3549_p3 = scmp.lt.u32.totalorder %s3545_s10, %s4051_s3 }
  0x29   :  { %p3551_p4 = pnand %p3549_p3, %p3546_p2 }
  0x2b   :  { %3554 = shalt.err (!%p3551_p4)
}
  0x2c   :  { %s3555_s0 = scalar_lea.vmem %s48_s28, 16384  ;;  %p3560_p6 = scmp.lt.s32.totalorder %s48_s28, %s48_s28 }
  0x2d   :  { %p3556_p5 = scmp.ne.s32.totalorder %s48_s28, %s3555_s0  ;;  %p3561_p7 = scmp.lt.s32.totalorder %s3555_s0, %s3555_s0 }
  0x2f   :  { %p3562_p8 = por %p3561_p7, %p3560_p6 }
  0x31   :  { %p3563_p9 = pnand %p3562_p8, %p3556_p5 }
  0x33   :  { %3566 = shalt.err (!%p3563_p9)
}
  0x34   :  { %53 = dma.hbm_to_vmem [thread:$0]  %s4051_s3, 16384, %s48_s28, [#allocation6], %s3621_s13, %s3621_s13, %s3622_s14  }
  0x35   :  { %s3567_s20 = scalar_lea.hbm %s4053_s5, 4096 }
  0x36   :  { %p3568_p10 = scmp.ne.s32.totalorder %s4053_s5, %s3567_s20  ;;  %p3571_p11 = scmp.lt.u32.totalorder %s3567_s20, %s4053_s5 }
  0x38   :  { %p3573_p12 = pnand %p3571_p11, %p3568_p10 }
  0x3a   :  { %3576 = shalt.err (!%p3573_p12)
}
  0x3b   :  { %s3577_s1 = scalar_lea.vmem %s3707_s30, 4096  ;;  %p3582_p0 = scmp.lt.s32.totalorder %s3707_s30, %s3707_s30 }
  0x3c   :  { %p3578_p13 = scmp.ne.s32.totalorder %s3707_s30, %s3577_s1  ;;  %p3583_p1 = scmp.lt.s32.totalorder %s3577_s1, %s3577_s1 }
  0x3e   :  { %p3584_p2 = por %p3583_p1, %p3582_p0 }
  0x40   :  { %p3585_p3 = pnand %p3584_p2, %p3578_p13 }
  0x42   :  { %3588 = shalt.err (!%p3585_p3)
}
  0x43   :  { %s3625_s3 = smov 64   ;;  %s3626_s13 = smov 4  }
  0x44   :  { %67 = dma.hbm_to_vmem [thread:$0]  %s4053_s5, 4096, %s3707_s30, [#allocation9], %s3625_s3, %s3625_s3, %s3626_s13  }
  0x45   :  { %3611 = dma.done.wait [#allocation3], 4096  }
  0x46   :  { %3612 = vsyncadd [#allocation3], 4294963200 }
  0x47   :  { %3613 = dma.done.wait [#allocation6], 24576  }
  0x48   :  { %3614 = vsyncadd [#allocation6], 4294942720 }
  0x49   :  { %3615 = dma.done.wait [#allocation9], 4096  }
  0x4a   :  { %3616 = vsyncadd [#allocation9], 4294963200  ;;  %v3181_v0 = vld [vmem:[#allocation5 + $0x4] ss:$16 sps:$4 sm:$0xff]   ;;  %v3183_v1 = vld [vmem:[#allocation5] ss:$16 sps:$4 sm:$0xff]  }
  0x4b   :  { %537 = vmatprep.subr.bf16.mxu0 %v3181_v0  ;;  %v3184_v2 = vld [vmem:[#allocation5 + $0x24] ss:$16 sps:$4 sm:$0xff]   ;;  %v3186_v3 = vld [vmem:[#allocation5 + $0x20] ss:$16 sps:$4 sm:$0xff]   ;;  %v3229_v13 = vld [vmem:[#allocation5 + $0xc] ss:$16 sps:$4 sm:$0xff]  }
  0x4c   :  { %538 = vmatpush1.bf16.msra.mxu0 %v3183_v1  ;;  %v3187_v4 = vld [vmem:[#allocation5 + $0x44] ss:$16 sps:$4 sm:$0xff]   ;;  %v3189_v5 = vld [vmem:[#allocation5 + $0x40] ss:$16 sps:$4 sm:$0xff]   ;;  %v3231_v14 = vld [vmem:[#allocation5 + $0x8] ss:$16 sps:$4 sm:$0xff]   ;;  %650 = vmatprep.subr.bf16.mxu1 %v3229_v13 }
  0x4d   :  { %539 = vmatprep.subr.bf16.mxu0 %v3184_v2  ;;  %v3190_v6 = vld [vmem:[#allocation5 + $0x64] ss:$16 sps:$4 sm:$0xff]   ;;  %v3192_v7 = vld [vmem:[#allocation5 + $0x60] ss:$16 sps:$4 sm:$0xff]   ;;  %v84_v15 = vld [vmem:[#allocation2 + $0x8] sm:$0xff]  ;;  %651 = vmatpush1.bf16.msra.mxu1 %v3231_v14 }
  0x4e   :  { %v3193_v8 = vld [vmem:[#allocation5 + $0x84] ss:$16 sps:$4 sm:$0xff]   ;;  %v3195_v9 = vld [vmem:[#allocation5 + $0x80] ss:$16 sps:$4 sm:$0xff]   ;;  %v86_v18 = vld [vmem:[#allocation2 + $0x18] sm:$0xff] }
  0x4f   :  { %v3196_v10 = vld [vmem:[#allocation5 + $0xa4] ss:$16 sps:$4 sm:$0xff]   ;;  %v3198_v11 = vld [vmem:[#allocation5 + $0xa0] ss:$16 sps:$4 sm:$0xff]   ;;  %v116_v19 = vpack.c.bf16 %v86_v18, %v84_v15  ;;  %v3232_v20 = vld [vmem:[#allocation5 + $0x2c] ss:$16 sps:$4 sm:$0xff]  }
  0x50   :  { %540 = vmatpush1.bf16.msra.mxu0 %v3186_v3  ;;  %v3199_v12 = vld [vmem:[#allocation5 + $0xc4] ss:$16 sps:$4 sm:$0xff]   ;;  %v3201_v16 = vld [vmem:[#allocation5 + $0xc0] ss:$16 sps:$4 sm:$0xff]   ;;  %v3234_v21 = vld [vmem:[#allocation5 + $0x28] ss:$16 sps:$4 sm:$0xff]   ;;  %652 = vmatprep.subr.bf16.mxu1 %v3232_v20 }
  0x51   :  { %541 = vmatprep.subr.bf16.mxu0 %v3187_v4  ;;  %v3202_v17 = vld [vmem:[#allocation5 + $0xe4] ss:$16 sps:$4 sm:$0xff]   ;;  %569 = vmatprep.mubr.bf16.mxu0 %v116_v19  ;;  %v3235_v22 = vld [vmem:[#allocation5 + $0x4c] ss:$16 sps:$4 sm:$0xff]   ;;  %v3204_v23 = vld [vmem:[#allocation5 + $0xe0] ss:$16 sps:$4 sm:$0xff]  }
  0x52   :  { %682 = vmatprep.mubr.bf16.mxu1 %v116_v19  ;;  %v3205_v24 = vld [vmem:[#allocation5 + $0x104] ss:$16 sps:$4 sm:$0xff]   ;;  %653 = vmatpush1.bf16.msra.mxu1 %v3234_v21  ;;  %v3237_v25 = vld [vmem:[#allocation5 + $0x48] ss:$16 sps:$4 sm:$0xff]   ;;  %v3238_v26 = vld [vmem:[#allocation5 + $0x6c] ss:$16 sps:$4 sm:$0xff]  }
  0x53   :  { %654 = vmatprep.subr.bf16.mxu1 %v3235_v22  ;;  %v3207_v27 = vld [vmem:[#allocation5 + $0x100] ss:$16 sps:$4 sm:$0xff]   ;;  %v3208_v28 = vld [vmem:[#allocation5 + $0x124] ss:$16 sps:$4 sm:$0xff]   ;;  %v3240_v29 = vld [vmem:[#allocation5 + $0x68] ss:$16 sps:$4 sm:$0xff]  }
  0x54   :  { %542 = vmatpush1.bf16.msra.mxu0 %v3189_v5  ;;  %v3241_v30 = vld [vmem:[#allocation5 + $0x8c] ss:$16 sps:$4 sm:$0xff]   ;;  %v3210_v31 = vld [vmem:[#allocation5 + $0x120] ss:$16 sps:$4 sm:$0xff]   ;;  %v3211_v32 = vld [vmem:[#allocation5 + $0x144] ss:$16 sps:$4 sm:$0xff]  }
  0x55   :  { %543 = vmatprep.subr.bf16.mxu0 %v3190_v6  ;;  %v3243_v33 = vld [vmem:[#allocation5 + $0x88] ss:$16 sps:$4 sm:$0xff]   ;;  %v3244_v34 = vld [vmem:[#allocation5 + $0xac] ss:$16 sps:$4 sm:$0xff]   ;;  %v3213_v35 = vld [vmem:[#allocation5 + $0x140] ss:$16 sps:$4 sm:$0xff]  }
  0x56   :  { %655 = vmatpush1.bf16.msra.mxu1 %v3237_v25  ;;  %v3214_v36 = vld [vmem:[#allocation5 + $0x164] ss:$16 sps:$4 sm:$0xff]   ;;  %v3246_v37 = vld [vmem:[#allocation5 + $0xa8] ss:$16 sps:$4 sm:$0xff]   ;;  %v3247_v38 = vld [vmem:[#allocation5 + $0xcc] ss:$16 sps:$4 sm:$0xff]  }
  0x57   :  { %656 = vmatprep.subr.bf16.mxu1 %v3238_v26  ;;  %v3216_v39 = vld [vmem:[#allocation5 + $0x160] ss:$16 sps:$4 sm:$0xff]   ;;  %v3217_v40 = vld [vmem:[#allocation5 + $0x184] ss:$16 sps:$4 sm:$0xff]   ;;  %v3249_v41 = vld [vmem:[#allocation5 + $0xc8] ss:$16 sps:$4 sm:$0xff]  }
  0x58   :  { %544 = vmatpush1.bf16.msra.mxu0 %v3192_v7  ;;  %v3250_v42 = vld [vmem:[#allocation5 + $0xec] ss:$16 sps:$4 sm:$0xff]   ;;  %v3219_v43 = vld [vmem:[#allocation5 + $0x180] ss:$16 sps:$4 sm:$0xff]   ;;  %v3220_v44 = vld [vmem:[#allocation5 + $0x1a4] ss:$16 sps:$4 sm:$0xff]  }
  0x59   :  { %545 = vmatprep.subr.bf16.mxu0 %v3193_v8  ;;  %v3252_v45 = vld [vmem:[#allocation5 + $0xe8] ss:$16 sps:$4 sm:$0xff]   ;;  %v3253_v46 = vld [vmem:[#allocation5 + $0x10c] ss:$16 sps:$4 sm:$0xff]   ;;  %v3222_v47 = vld [vmem:[#allocation5 + $0x1a0] ss:$16 sps:$4 sm:$0xff]  }
  0x5a   :  { %657 = vmatpush1.bf16.msra.mxu1 %v3240_v29  ;;  %v3223_v48 = vld [vmem:[#allocation5 + $0x1c4] ss:$16 sps:$4 sm:$0xff]   ;;  %v3255_v49 = vld [vmem:[#allocation5 + $0x108] ss:$16 sps:$4 sm:$0xff]   ;;  %v3256_v50 = vld [vmem:[#allocation5 + $0x12c] ss:$16 sps:$4 sm:$0xff]  }
  0x5b   :  { %658 = vmatprep.subr.bf16.mxu1 %v3241_v30  ;;  %v3225_v51 = vld [vmem:[#allocation5 + $0x1c0] ss:$16 sps:$4 sm:$0xff]   ;;  %v3226_v52 = vld [vmem:[#allocation5 + $0x1e4] ss:$16 sps:$4 sm:$0xff]   ;;  %v3258_v55 = vld [vmem:[#allocation5 + $0x128] ss:$16 sps:$4 sm:$0xff]  }
  0x5c   :  { %546 = vmatpush1.bf16.msra.mxu0 %v3195_v9  ;;  %v3228_v53 = vld [vmem:[#allocation5 + $0x1e0] ss:$16 sps:$4 sm:$0xff]   ;;  %v3259_v57 = vld [vmem:[#allocation5 + $0x14c] ss:$16 sps:$4 sm:$0xff]   ;;  %v3279_v60 = vld [vmem:[#allocation7 + $0x4] ss:$16 sps:$4 sm:$0xff]  }
  0x5d   :  { %547 = vmatprep.subr.bf16.mxu0 %v3196_v10  ;;  %v83_v54 = vld [vmem:[#allocation2] sm:$0xff]  ;;  %v85_v56 = vld [vmem:[#allocation2 + $0x10] sm:$0xff]  ;;  %v88_v58 = vld [vmem:[#allocation2 + $0x28] sm:$0xff] }
  0x5e   :  { %659 = vmatpush1.bf16.msra.mxu1 %v3243_v33  ;;  %v90_v59 = vld [vmem:[#allocation2 + $0x38] sm:$0xff]  ;;  %v3741_v62 = vpack.c.bf16 %v85_v56, %v83_v54  ;;  %v3277_v1 = vld [vmem:[#allocation7] ss:$16 sps:$4 sm:$0xff]   ;;  %v3285_v2 = vld [vmem:[#allocation7 + $0x24] ss:$16 sps:$4 sm:$0xff]  }
  0x5f   :  { %660 = vmatprep.subr.bf16.mxu1 %v3244_v34  ;;  %v3261_v61 = vld [vmem:[#allocation5 + $0x148] ss:$16 sps:$4 sm:$0xff]   ;;  %v3262_v63 = vld [vmem:[#allocation5 + $0x16c] ss:$16 sps:$4 sm:$0xff]   ;;  %v3743_v0 = vpack.c.bf16 %v90_v59, %v88_v58  ;;  %v87_v3 = vld [vmem:[#allocation2 + $0x20] sm:$0xff] }
  0x60   :  { %548 = vmatpush1.bf16.msra.mxu0 %v3198_v11  ;;  %v89_v4 = vld [vmem:[#allocation2 + $0x30] sm:$0xff]  ;;  %v3264_v5 = vld [vmem:[#allocation5 + $0x168] ss:$16 sps:$4 sm:$0xff]   ;;  %v3265_v7 = vld [vmem:[#allocation5 + $0x18c] ss:$16 sps:$4 sm:$0xff]  }
  0x61   :  { %549 = vmatprep.subr.bf16.mxu0 %v3199_v12  ;;  %v92_v6 = vld [vmem:[#allocation2 + $0x48] sm:$0xff]  ;;  %v94_v8 = vld [vmem:[#allocation2 + $0x58] sm:$0xff]  ;;  %v3283_v9 = vld [vmem:[#allocation7 + $0x20] ss:$16 sps:$4 sm:$0xff]   ;;  %v3747_v12 = vpack.c.bf16 %v89_v4, %v87_v3 }
  0x62   :  { %661 = vmatpush1.bf16.msra.mxu1 %v3246_v37  ;;  %v3291_v10 = vld [vmem:[#allocation7 + $0x44] ss:$16 sps:$4 sm:$0xff]   ;;  %v3267_v11 = vld [vmem:[#allocation5 + $0x188] ss:$16 sps:$4 sm:$0xff]   ;;  %v3268_v13 = vld [vmem:[#allocation5 + $0x1ac] ss:$16 sps:$4 sm:$0xff]   ;;  %v3749_v14 = vpack.c.bf16 %v94_v8, %v92_v6 }
  0x63   :  { %662 = vmatprep.subr.bf16.mxu1 %v3247_v38  ;;  %v3289_v15 = vld [vmem:[#allocation7 + $0x40] ss:$16 sps:$4 sm:$0xff]   ;;  %v3270_v19 = vld [vmem:[#allocation5 + $0x1a8] ss:$16 sps:$4 sm:$0xff]   ;;  %v3271_v21 = vld [vmem:[#allocation5 + $0x1cc] ss:$16 sps:$4 sm:$0xff]  }
  0x64   :  { %550 = vmatpush1.bf16.msra.mxu0 %v3201_v16  ;;  %v3297_v16 = vld [vmem:[#allocation7 + $0x64] ss:$16 sps:$4 sm:$0xff]   ;;  %v96_v20 = vld [vmem:[#allocation2 + $0x68] sm:$0xff]  ;;  %v98_v22 = vld [vmem:[#allocation2 + $0x78] sm:$0xff] }
  0x65   :  { %551 = vmatprep.subr.bf16.mxu0 %v3202_v17  ;;  %v91_v17 = vld [vmem:[#allocation2 + $0x40] sm:$0xff]  ;;  %v93_v18 = vld [vmem:[#allocation2 + $0x50] sm:$0xff]  ;;  %v3273_v25 = vld [vmem:[#allocation5 + $0x1c8] ss:$16 sps:$4 sm:$0xff]  }
  0x66   :  { %663 = vmatpush1.bf16.msra.mxu1 %v3249_v41  ;;  %v3753_v26 = vpack.c.bf16 %v93_v18, %v91_v17  ;;  %v3301_v29 = vld [vmem:[#allocation7 + $0x80] ss:$16 sps:$4 sm:$0xff]   ;;  %v3309_v30 = vld [vmem:[#allocation7 + $0xa4] ss:$16 sps:$4 sm:$0xff]   ;;  %v3276_v33 = vld [vmem:[#allocation5 + $0x1e8] ss:$16 sps:$4 sm:$0xff]  }
  0x67   :  { %664 = vmatprep.subr.bf16.mxu1 %v3250_v42  ;;  %v100_v34 = vld [vmem:[#allocation2 + $0x88] sm:$0xff]  ;;  %v3307_v37 = vld [vmem:[#allocation7 + $0xa0] ss:$16 sps:$4 sm:$0xff]   ;;  %v3315_v38 = vld [vmem:[#allocation7 + $0xc4] ss:$16 sps:$4 sm:$0xff]  }
  0x68   :  { %552 = vmatpush1.bf16.msra.mxu0 %v3204_v23  ;;  %v3295_v23 = vld [vmem:[#allocation7 + $0x60] ss:$16 sps:$4 sm:$0xff]   ;;  %v3288_v41 = vld [vmem:[#allocation7 + $0x2c] ss:$16 sps:$4 sm:$0xff]   ;;  %v3298_v59 = vld [vmem:[#allocation7 + $0x68] ss:$16 sps:$4 sm:$0xff]  }
  0x69   :  { %553 = vmatprep.subr.bf16.mxu0 %v3205_v24  ;;  %v3303_v24 = vld [vmem:[#allocation7 + $0x84] ss:$16 sps:$4 sm:$0xff]   ;;  %v3300_v54 = vld [vmem:[#allocation7 + $0x6c] ss:$16 sps:$4 sm:$0xff]   ;;  %v3304_v3 = vld [vmem:[#allocation7 + $0x88] ss:$16 sps:$4 sm:$0xff]  }
  0x6a   :  { %665 = vmatpush1.bf16.msra.mxu1 %v3252_v45  ;;  %v99_v45 = vld [vmem:[#allocation2 + $0x80] sm:$0xff]  ;;  %v3312_v4 = vld [vmem:[#allocation7 + $0xac] ss:$16 sps:$4 sm:$0xff]   ;;  %v3316_v17 = vld [vmem:[#allocation7 + $0xc8] ss:$16 sps:$4 sm:$0xff]  }
  0x6b   :  { %666 = vmatprep.subr.bf16.mxu1 %v3253_v46  ;;  %v101_v46 = vld [vmem:[#allocation2 + $0x90] sm:$0xff]  ;;  %v3324_v18 = vld [vmem:[#allocation7 + $0xec] ss:$16 sps:$4 sm:$0xff]  }
  0x6c   :  { %554 = vmatpush1.bf16.msra.mxu0 %v3207_v27  ;;  %v3274_v27 = vld [vmem:[#allocation5 + $0x1ec] ss:$16 sps:$4 sm:$0xff]   ;;  %v3767_v56 = vpack.c.bf16 %v101_v46, %v99_v45  ;;  %v3367_v46 = vld [vmem:[#allocation7 + $0x1e0] ss:$16 sps:$4 sm:$0xff]  }
  0x6d   :  { %555 = vmatprep.subr.bf16.mxu0 %v3208_v28  ;;  %v3755_v28 = vpack.c.bf16 %v98_v22, %v96_v20  ;;  %v3372_v45 = vld [vmem:[#allocation7 + $0x1ec] ss:$16 sps:$4 sm:$0xff]  }
  0x6e   :  { %667 = vmatpush1.bf16.msra.mxu1 %v3255_v49  ;;  %v106_v49 = vld [vmem:[#allocation2 + $0xb8] sm:$0xff] }
  0x6f   :  { %668 = vmatprep.subr.bf16.mxu1 %v3256_v50  ;;  %v3294_v50 = vld [vmem:[#allocation7 + $0x4c] ss:$16 sps:$4 sm:$0xff]  }
  0x70   :  { %556 = vmatpush1.bf16.msra.mxu0 %v3210_v31  ;;  %v95_v31 = vld [vmem:[#allocation2 + $0x60] sm:$0xff] }
  0x71   :  { %557 = vmatprep.subr.bf16.mxu0 %v3211_v32  ;;  %v97_v32 = vld [vmem:[#allocation2 + $0x70] sm:$0xff] }
  0x72   :  { %669 = vmatpush1.bf16.msra.mxu1 %v3258_v55  ;;  %v3325_v55 = vld [vmem:[#allocation7 + $0x100] ss:$16 sps:$4 sm:$0xff]  }
  0x73   :  { %670 = vmatprep.subr.bf16.mxu1 %v3259_v57  ;;  %v3333_v57 = vld [vmem:[#allocation7 + $0x124] ss:$16 sps:$4 sm:$0xff]  }
  0x74   :  { %558 = vmatpush1.bf16.msra.mxu0 %v3213_v35  ;;  %v3282_v35 = vld [vmem:[#allocation7 + $0xc] ss:$16 sps:$4 sm:$0xff]  }
  0x75   :  { %559 = vmatprep.subr.bf16.mxu0 %v3214_v36  ;;  %v102_v36 = vld [vmem:[#allocation2 + $0x98] sm:$0xff] }
  0x76   :  { %671 = vmatpush1.bf16.msra.mxu1 %v3261_v61  ;;  %v3761_v42 = vpack.c.bf16 %v102_v36, %v100_v34  ;;  %v103_v61 = vld [vmem:[#allocation2 + $0xa0] sm:$0xff]  ;;  %v3348_v34 = vld [vmem:[#allocation7 + $0x16c] ss:$16 sps:$4 sm:$0xff]  }
  0x77   :  { %672 = vmatprep.subr.bf16.mxu1 %v3262_v63  ;;  %v3331_v63 = vld [vmem:[#allocation7 + $0x120] ss:$16 sps:$4 sm:$0xff]   ;;  %v3354_v36 = vld [vmem:[#allocation7 + $0x18c] ss:$16 sps:$4 sm:$0xff]  }
  0x78   :  { %560 = vmatpush1.bf16.msra.mxu0 %v3216_v39  ;;  %v3280_v39 = vld [vmem:[#allocation7 + $0x8] ss:$16 sps:$4 sm:$0xff]  }
  0x79   :  { %561 = vmatprep.subr.bf16.mxu0 %v3217_v40  ;;  %v3759_v40 = vpack.c.bf16 %v97_v32, %v95_v31  ;;  %v3334_v31 = vld [vmem:[#allocation7 + $0x128] ss:$16 sps:$4 sm:$0xff]   ;;  %v3342_v32 = vld [vmem:[#allocation7 + $0x14c] ss:$16 sps:$4 sm:$0xff]  }
  0x7a   :  { %673 = vmatpush1.bf16.msra.mxu1 %v3264_v5  ;;  %v3337_v5 = vld [vmem:[#allocation7 + $0x140] ss:$16 sps:$4 sm:$0xff]  }
  0x7b   :  { %674 = vmatprep.subr.bf16.mxu1 %v3265_v7  ;;  %v3345_v7 = vld [vmem:[#allocation7 + $0x164] ss:$16 sps:$4 sm:$0xff]  }
  0x7c   :  { %562 = vmatpush1.bf16.msra.mxu0 %v3219_v43  ;;  %v3313_v43 = vld [vmem:[#allocation7 + $0xc0] ss:$16 sps:$4 sm:$0xff]  }
  0x7d   :  { %563 = vmatprep.subr.bf16.mxu0 %v3220_v44  ;;  %v3321_v44 = vld [vmem:[#allocation7 + $0xe4] ss:$16 sps:$4 sm:$0xff]  }
  0x7e   :  { %675 = vmatpush1.bf16.msra.mxu1 %v3267_v11  ;;  %v107_v11 = vld [vmem:[#allocation2 + $0xc0] sm:$0xff] }
  0x7f   :  { %676 = vmatprep.subr.bf16.mxu1 %v3268_v13  ;;  %v3343_v13 = vld [vmem:[#allocation7 + $0x160] ss:$16 sps:$4 sm:$0xff]  }
  0x80   :  { %564 = vmatpush1.bf16.msra.mxu0 %v3222_v47  ;;  %v3286_v47 = vld [vmem:[#allocation7 + $0x28] ss:$16 sps:$4 sm:$0xff]  }
  0x81   :  { %565 = vmatprep.subr.bf16.mxu0 %v3223_v48  ;;  %v104_v48 = vld [vmem:[#allocation2 + $0xa8] sm:$0xff] }
  0x82   :  { %677 = vmatpush1.bf16.msra.mxu1 %v3270_v19  ;;  %v3769_v58 = vpack.c.bf16 %v106_v49, %v104_v48  ;;  %v3349_v19 = vld [vmem:[#allocation7 + $0x180] ss:$16 sps:$4 sm:$0xff]   ;;  %v3375_v48 = vld [vmem:[#allocation7 + $0x204] ss:$16 sps:$4 sm:$0xff]   ;;  %v3378_v49 = vld [vmem:[#allocation7 + $0x20c] ss:$16 sps:$4 sm:$0xff]  }
  0x83   :  { %678 = vmatprep.subr.bf16.mxu1 %v3271_v21  ;;  %v3357_v21 = vld [vmem:[#allocation7 + $0x1a4] ss:$16 sps:$4 sm:$0xff]  }
  0x84   :  { %566 = vmatpush1.bf16.msra.mxu0 %v3225_v51  ;;  %v3319_v51 = vld [vmem:[#allocation7 + $0xe0] ss:$16 sps:$4 sm:$0xff]  }
  0x85   :  { %567 = vmatprep.subr.bf16.mxu0 %v3226_v52  ;;  %v3327_v52 = vld [vmem:[#allocation7 + $0x104] ss:$16 sps:$4 sm:$0xff]  }
  0x86   :  { %679 = vmatpush1.bf16.msra.mxu1 %v3273_v25  ;;  %v111_v25 = vld [vmem:[#allocation2 + $0xe0] sm:$0xff] }
  0x87   :  { %680 = vmatprep.subr.bf16.mxu1 %v3274_v27  ;;  %v3355_v27 = vld [vmem:[#allocation7 + $0x1a0] ss:$16 sps:$4 sm:$0xff]  }
  0x88   :  { %568 = vmatpush1.bf16.msra.mxu0 %v3228_v53  ;;  %v3292_v53 = vld [vmem:[#allocation7 + $0x48] ss:$16 sps:$4 sm:$0xff]  }
  0x89   :  { %1649 = vmatprep.subr.bf16.mxu0 %v3279_v60  ;;  %v3306_v60 = vld [vmem:[#allocation7 + $0x8c] ss:$16 sps:$4 sm:$0xff]  }
  0x8a   :  { %681 = vmatpush1.bf16.msra.mxu1 %v3276_v33  ;;  %v3340_v33 = vld [vmem:[#allocation7 + $0x148] ss:$16 sps:$4 sm:$0xff]  }
  0x8b   :  { %570 = vmatmul.mubr.bf16.vlgmr.msra.gmra.mrb[0].mxu0 %v3741_v62  ;;  %1875 = vmatprep.subr.bf16.mxu1 %v3282_v35  ;;  %v3346_v35 = vld [vmem:[#allocation7 + $0x168] ss:$16 sps:$4 sm:$0xff]  }
  0x8c   :  { %579 = vmatprep.mubr.bf16.mxu0 %v3743_v0  ;;  %1650 = vmatpush1.bf16.msra.mxu0 %v3277_v1  ;;  %v110_v1 = vld [vmem:[#allocation2 + $0xd8] sm:$0xff] }
  0x8d   :  { %1651 = vmatprep.subr.bf16.mxu0 %v3285_v2  ;;  %683 = vmatmul.mubr.bf16.vlgmr.msra.gmra.mrb[0].mxu1 %v3741_v62  ;;  %v105_v62 = vld [vmem:[#allocation2 + $0xb0] sm:$0xff] }
  0x8e   :  { %692 = vmatprep.mubr.bf16.mxu1 %v3743_v0  ;;  %1876 = vmatpush1.bf16.msra.mxu1 %v3280_v39  ;;  %v108_v0 = vld [vmem:[#allocation2 + $0xc8] sm:$0xff]  ;;  %v3339_v2 = vld [vmem:[#allocation7 + $0x144] ss:$16 sps:$4 sm:$0xff]   ;;  %v125_v6 = vpack.c.bf16 %v105_v62, %v103_v61 }
  0x8f   :  { %1877 = vmatprep.subr.bf16.mxu1 %v3288_v41  ;;  %v128_v8 = vpack.c.bf16 %v110_v1, %v108_v0  ;;  %v3358_v39 = vld [vmem:[#allocation7 + $0x1a8] ss:$16 sps:$4 sm:$0xff]   ;;  %v3366_v41 = vld [vmem:[#allocation7 + $0x1cc] ss:$16 sps:$4 sm:$0xff]  }
  0x90   :  { %1652 = vmatpush1.bf16.msra.mxu0 %v3283_v9  ;;  %v3310_v9 = vld [vmem:[#allocation7 + $0xa8] ss:$16 sps:$4 sm:$0xff]  }
  0x91   :  { %1653 = vmatprep.subr.bf16.mxu0 %v3291_v10  ;;  %v3318_v10 = vld [vmem:[#allocation7 + $0xcc] ss:$16 sps:$4 sm:$0xff]  }
  0x92   :  { %1878 = vmatpush1.bf16.msra.mxu1 %v3286_v47  ;;  %v3370_v47 = vld [vmem:[#allocation7 + $0x1e8] ss:$16 sps:$4 sm:$0xff]  }
  0x93   :  { %580 = vmatmul.mubr.bf16.gmra.mrb[4].mxu0 %v3747_v12  ;;  %1879 = vmatprep.subr.bf16.mxu1 %v3294_v50  ;;  %v197_v50 = vlaneseq }
  0x94   :  { %589 = vmatprep.mubr.bf16.mxu0 %v3749_v14  ;;  %1654 = vmatpush1.bf16.msra.mxu0 %v3289_v15  ;;  %v114_v15 = vld [vmem:[#allocation2 + $0xf8] sm:$0xff] }
  0x95   :  { %1655 = vmatprep.subr.bf16.mxu0 %v3297_v16  ;;  %693 = vmatmul.mubr.bf16.gmra.mrb[4].mxu1 %v3747_v12  ;;  %v109_v12 = vld [vmem:[#allocation2 + $0xd0] sm:$0xff] }
  0x96   :  { %702 = vmatprep.mubr.bf16.mxu1 %v3749_v14  ;;  %1880 = vmatpush1.bf16.msra.mxu1 %v3292_v53  ;;  %v112_v14 = vld [vmem:[#allocation2 + $0xe8] sm:$0xff]  ;;  %v3351_v16 = vld [vmem:[#allocation7 + $0x184] ss:$16 sps:$4 sm:$0xff]   ;;  %v127_v20 = vpack.c.bf16 %v109_v12, %v107_v11  ;;  %v3787_v53 = vld [vmem:[%s4050_s2] sm:$0xf] }
  0x97   :  { %1881 = vmatprep.subr.bf16.mxu1 %v3300_v54  ;;  %v130_v22 = vpack.c.bf16 %v114_v15, %v112_v14  ;;  %v3381_v12 = vld [vmem:[#allocation7 + $0x224] ss:$16 sps:$4 sm:$0xff]  }
  0x98   :  { %1656 = vmatpush1.bf16.msra.mxu0 %v3295_v23  ;;  %v3322_v23 = vld [vmem:[#allocation7 + $0xe8] ss:$16 sps:$4 sm:$0xff]  }
  0x99   :  { %1657 = vmatprep.subr.bf16.mxu0 %v3303_v24  ;;  %v3330_v24 = vld [vmem:[#allocation7 + $0x10c] ss:$16 sps:$4 sm:$0xff]  }
  0x9a   :  { %1882 = vmatpush1.bf16.msra.mxu1 %v3298_v59 }
  0x9b   :  { %590 = vmatmul.mubr.bf16.gmra.mrb[8].mxu0 %v3753_v26  ;;  %1883 = vmatprep.subr.bf16.mxu1 %v3306_v60 }
  0x9c   :  { %599 = vmatprep.mubr.bf16.mxu0 %v3755_v28  ;;  %1658 = vmatpush1.bf16.msra.mxu0 %v3301_v29  ;;  %v3336_v29 = vld [vmem:[#allocation7 + $0x12c] ss:$16 sps:$4 sm:$0xff]  }
  0x9d   :  { %1659 = vmatprep.subr.bf16.mxu0 %v3309_v30  ;;  %703 = vmatmul.mubr.bf16.gmra.mrb[8].mxu1 %v3753_v26  ;;  %v113_v26 = vld [vmem:[#allocation2 + $0xf0] sm:$0xff] }
  0x9e   :  { %712 = vmatprep.mubr.bf16.mxu1 %v3755_v28  ;;  %1884 = vmatpush1.bf16.msra.mxu1 %v3304_v3  ;;  %v3328_v28 = vld [vmem:[#allocation7 + $0x108] ss:$16 sps:$4 sm:$0xff]   ;;  %v129_v30 = vpack.c.bf16 %v113_v26, %v111_v25 }
  0x9f   :  { %1885 = vmatprep.subr.bf16.mxu1 %v3312_v4 }
  0xa0   :  { %1660 = vmatpush1.bf16.msra.mxu0 %v3307_v37  ;;  %v3352_v37 = vld [vmem:[#allocation7 + $0x188] ss:$16 sps:$4 sm:$0xff]  }
  0xa1   :  { %1661 = vmatprep.subr.bf16.mxu0 %v3315_v38  ;;  %v3360_v38 = vld [vmem:[#allocation7 + $0x1ac] ss:$16 sps:$4 sm:$0xff]  }
  0xa2   :  { %1886 = vmatpush1.bf16.msra.mxu1 %v3310_v9  ;;  %v3376_v9 = vld [vmem:[#allocation7 + $0x208] ss:$16 sps:$4 sm:$0xff]  }
  0xa3   :  { %600 = vmatmul.mubr.bf16.gmra.mrb[12].mxu0 %v3759_v40  ;;  %1887 = vmatprep.subr.bf16.mxu1 %v3318_v10 }
  0xa4   :  { %609 = vmatprep.mubr.bf16.mxu0 %v3761_v42  ;;  %1662 = vmatpush1.bf16.msra.mxu0 %v3313_v43  ;;  %v3364_v43 = vld [vmem:[#allocation7 + $0x1c8] ss:$16 sps:$4 sm:$0xff]  }
  0xa5   :  { %1663 = vmatprep.subr.bf16.mxu0 %v3321_v44  ;;  %713 = vmatmul.mubr.bf16.gmra.mrb[12].mxu1 %v3759_v40  ;;  %v3363_v40 = vld [vmem:[#allocation7 + $0x1c4] ss:$16 sps:$4 sm:$0xff]  }
  0xa6   :  { %722 = vmatprep.mubr.bf16.mxu1 %v3761_v42  ;;  %1888 = vmatpush1.bf16.msra.mxu1 %v3316_v17  ;;  %v3361_v42 = vld [vmem:[#allocation7 + $0x1c0] ss:$16 sps:$4 sm:$0xff]   ;;  %v3369_v44 = vld [vmem:[#allocation7 + $0x1e4] ss:$16 sps:$4 sm:$0xff]  }
  0xa7   :  { %1889 = vmatprep.subr.bf16.mxu1 %v3324_v18 }
  0xa8   :  { %1664 = vmatpush1.bf16.msra.mxu0 %v3319_v51  ;;  %v3781_v51 = vshrl.u32 %v197_v50, 7  ;;  %v3402_v50 = vld [vmem:[#allocation7 + $0x28c] ss:$16 sps:$4 sm:$0xff]  }
  0xa9   :  { %1665 = vmatprep.subr.bf16.mxu0 %v3327_v52 }
  0xaa   :  { %1890 = vmatpush1.bf16.msra.mxu1 %v3322_v23  ;;  %v199_v52 = vsub.s32 0, %v3781_v51  ;;  %v203_v54 = vsub.s32 1, %v3781_v51  ;;  %v3387_v23 = vld [vmem:[#allocation7 + $0x244] ss:$16 sps:$4 sm:$0xff]  }
  0xab   :  { %610 = vmatmul.mubr.bf16.gmra.mrb[16].mxu0 %v3767_v56  ;;  %1891 = vmatprep.subr.bf16.mxu1 %v3330_v24  ;;  %v3390_v24 = vld [vmem:[#allocation7 + $0x24c] ss:$16 sps:$4 sm:$0xff]  }
  0xac   :  { %619 = vmatprep.mubr.bf16.mxu0 %v3769_v58  ;;  %1666 = vmatpush1.bf16.msra.mxu0 %v3325_v55  ;;  %v3793_v55 = vrot.slane %v3787_v53, %v199_v52 }
  0xad   :  { %1667 = vmatprep.subr.bf16.mxu0 %v3333_v57  ;;  %723 = vmatmul.mubr.bf16.gmra.mrb[16].mxu1 %v3767_v56  ;;  %v3798_v56 = vrot.slane %v3787_v53, %v203_v54 }
  0xae   :  { %732 = vmatprep.mubr.bf16.mxu1 %v3769_v58  ;;  %1892 = vmatpush1.bf16.msra.mxu1 %v3328_v28  ;;  %v207_v28 = vsub.s32 2, %v3781_v51 }
  0xaf   :  { %1893 = vmatprep.subr.bf16.mxu1 %v3336_v29 }
  0xb0   :  { %1668 = vmatpush1.bf16.msra.mxu0 %v3331_v63 }
  0xb1   :  { %1669 = vmatprep.subr.bf16.mxu0 %v3339_v2 }
  0xb2   :  { %1894 = vmatpush1.bf16.msra.mxu1 %v3334_v31  ;;  %v3385_v31 = vld [vmem:[#allocation7 + $0x240] ss:$16 sps:$4 sm:$0xff]  }
  0xb3   :  { %620 = vmatmul.mubr.bf16.gmra.mrb[20].mxu0 %v125_v6  ;;  %1895 = vmatprep.subr.bf16.mxu1 %v3342_v32  ;;  %v3388_v32 = vld [vmem:[#allocation7 + $0x248] ss:$16 sps:$4 sm:$0xff]  }
  0xb4   :  { %629 = vmatprep.mubr.bf16.mxu0 %v128_v8  ;;  %1670 = vmatpush1.bf16.msra.mxu0 %v3337_v5 }
  0xb5   :  { %1671 = vmatprep.subr.bf16.mxu0 %v3345_v7  ;;  %733 = vmatmul.mubr.bf16.gmra.mrb[20].mxu1 %v125_v6 }
  0xb6   :  { %742 = vmatprep.mubr.bf16.mxu1 %v128_v8  ;;  %1896 = vmatpush1.bf16.msra.mxu1 %v3340_v33  ;;  %v3373_v8 = vld [vmem:[#allocation7 + $0x200] ss:$16 sps:$4 sm:$0xff]   ;;  %v211_v33 = vsub.s32 3, %v3781_v51 }
  0xb7   :  { %1897 = vmatprep.subr.bf16.mxu1 %v3348_v34 }
  0xb8   :  { %1672 = vmatpush1.bf16.msra.mxu0 %v3343_v13  ;;  %v3384_v13 = vld [vmem:[#allocation7 + $0x22c] ss:$16 sps:$4 sm:$0xff]  }
  0xb9   :  { %1673 = vmatprep.subr.bf16.mxu0 %v3351_v16 }
  0xba   :  { %1898 = vmatpush1.bf16.msra.mxu1 %v3346_v35 }
  0xbb   :  { %630 = vmatmul.mubr.bf16.gmra.mrb[24].mxu0 %v127_v20  ;;  %1899 = vmatprep.subr.bf16.mxu1 %v3354_v36  ;;  %v3393_v36 = vld [vmem:[#allocation7 + $0x264] ss:$16 sps:$4 sm:$0xff]  }
  0xbc   :  { %639 = vmatprep.mubr.bf16.mxu0 %v130_v22  ;;  %1674 = vmatpush1.bf16.msra.mxu0 %v3349_v19  ;;  %v3379_v19 = vld [vmem:[#allocation7 + $0x220] ss:$16 sps:$4 sm:$0xff]  }
  0xbd   :  { %1675 = vmatprep.subr.bf16.mxu0 %v3357_v21  ;;  %743 = vmatmul.mubr.bf16.gmra.mrb[24].mxu1 %v127_v20  ;;  %v3382_v20 = vld [vmem:[#allocation7 + $0x228] ss:$16 sps:$4 sm:$0xff]  }
  0xbe   :  { %752 = vmatprep.mubr.bf16.mxu1 %v130_v22  ;;  %1900 = vmatpush1.bf16.msra.mxu1 %v3352_v37  ;;  %v3396_v37 = vld [vmem:[#allocation7 + $0x26c] ss:$16 sps:$4 sm:$0xff]  }
  0xbf   :  { %1901 = vmatprep.subr.bf16.mxu1 %v3360_v38 }
  0xc0   :  { %1676 = vmatpush1.bf16.msra.mxu0 %v3355_v27 }
  0xc1   :  { %1677 = vmatprep.subr.bf16.mxu0 %v3363_v40 }
  0xc2   :  { %1902 = vmatpush1.bf16.msra.mxu1 %v3358_v39 }
  0xc3   :  { %640 = vmatmul.mubr.bf16.gmra.mrb[28].mxu0 %v129_v30  ;;  %1903 = vmatprep.subr.bf16.mxu1 %v3366_v41 }
  0xc4   :  { %1678 = vmatpush1.bf16.msra.mxu0 %v3361_v42  ;;  %v3816_v42 = vrot.slane %v3787_v53, %v207_v28 }
  0xc5   :  { %753 = vmatmul.mubr.bf16.gmra.mrb[28].mxu1 %v129_v30  ;;  %1679 = vmatprep.subr.bf16.mxu0 %v3369_v44  ;;  %v3391_v44 = vld [vmem:[#allocation7 + $0x260] ss:$16 sps:$4 sm:$0xff]  }
  0xc6   :  { %1904 = vmatpush1.bf16.msra.mxu1 %v3364_v43 }
  0xc7   :  { %1905 = vmatprep.subr.bf16.mxu1 %v3372_v45  ;;  %v3394_v45 = vld [vmem:[#allocation7 + $0x268] ss:$16 sps:$4 sm:$0xff]  }
  0xc8   :  { %1680 = vmatpush1.bf16.msra.mxu0 %v3367_v46  ;;  %v3822_v46 = vrot.slane %v3787_v53, %v211_v33  ;;  %v3400_v53 = vld [vmem:[#allocation7 + $0x288] ss:$16 sps:$4 sm:$0xff]  }
  0xc9   :  { %1762 = vmatprep.subr.bf16.mxu0 %v3375_v48 }
  0xca   :  { %1906 = vmatpush1.bf16.msra.mxu1 %v3370_v47 }
  0xcb   :  { %1988 = vmatprep.subr.bf16.mxu1 %v3378_v49  ;;  %v3399_v49 = vld [vmem:[#allocation7 + $0x284] ss:$16 sps:$4 sm:$0xff]  }
 0x15e   :  { %v571_v57 = vpop.f32.mrb[0].mxu0 }
 0x15f   :  { %v572_v58 = vadd.f32 %v571_v57, %v3793_v55  ;;  %v573_v59 = vpop.f32.mrb[1].mxu0 }
 0x160   :  { %v574_v60 = vadd.f32 %v573_v59, %v3798_v56  ;;  %v575_v61 = vpop.f32.mrb[2].mxu0  ;;  %v684_v59 = vpop.f32.mrb[0].mxu1 }
 0x161   :  { %v576_v62 = vadd.f32 %v575_v61, %v3793_v55  ;;  %v577_v63 = vpop.f32.mrb[3].mxu0  ;;  %v763_v1 = vmax.f32 %v572_v58, 0.0  ;;  %v3397_v61 = vld [vmem:[#allocation7 + $0x280] ss:$16 sps:$4 sm:$0xff]  }
 0x162   :  { %v578_v0 = vadd.f32 %v577_v63, %v3798_v56  ;;  %v764_v3 = vmax.f32 %v574_v60, 0.0  ;;  %v686_v63 = vpop.f32.mrb[1].mxu1 }
 0x163   :  { %v767_v2 = vmax.f32 %v576_v62, 0.0  ;;  %v685_v62 = vadd.f32 %v684_v59, %v3816_v42 }
 0x164   :  { %v768_v4 = vmax.f32 %v578_v0, 0.0 }
 0x165   :  { %v827_v5 = vpack.c.bf16 %v767_v2, %v763_v1  ;;  %v3405_v2 = vld [vmem:[#allocation7 + $0x2a4] ss:$16 sps:$4 sm:$0xff]  }
 0x166   :  { %v828_v6 = vpack.c.bf16 %v768_v4, %v764_v3  ;;  %v581_v7 = vpop.f32.mrb[4].mxu0  ;;  %v687_v3 = vadd.f32 %v686_v63, %v3822_v46  ;;  %v688_v4 = vpop.f32.mrb[2].mxu1 }
 0x167   :  { %v582_v10 = vadd.f32 %v581_v7, %v3793_v55  ;;  %v583_v11 = vpop.f32.mrb[5].mxu0  ;;  %v3408_v7 = vld [vmem:[#allocation7 + $0x2ac] ss:$16 sps:$4 sm:$0xff]  }
 0x168   :  { %v584_v14 = vadd.f32 %v583_v11, %v3798_v56  ;;  %v585_v15 = vpop.f32.mrb[6].mxu0  ;;  %1681 = vmatprep.mubr.bf16.mxu0 %v828_v6  ;;  %1907 = vmatprep.mubr.bf16.mxu1 %v828_v6 }
 0x169   :  { %v586_v16 = vadd.f32 %v585_v15, %v3793_v55  ;;  %v587_v17 = vpop.f32.mrb[7].mxu0  ;;  %1682 = vmatmul.mubr.bf16.vlgmr.msra.gmra.mrb[32].mxu0 %v827_v5  ;;  %1908 = vmatmul.mubr.bf16.vlgmr.msra.gmra.mrb[32].mxu1 %v827_v5  ;;  %v771_v21 = vmax.f32 %v582_v10, 0.0  ;;  %v690_v10 = vpop.f32.mrb[3].mxu1 }
 0x16a   :  { %v588_v18 = vadd.f32 %v587_v17, %v3798_v56  ;;  %1763 = vmatpush1.bf16.msra.mxu0 %v3373_v8  ;;  %1989 = vmatpush1.bf16.msra.mxu1 %v3376_v9  ;;  %v772_v25 = vmax.f32 %v584_v14, 0.0  ;;  %v765_v8 = vmax.f32 %v685_v62, 0.0  ;;  %v689_v9 = vadd.f32 %v688_v4, %v3816_v42 }
 0x16b   :  { %v775_v22 = vmax.f32 %v586_v16, 0.0  ;;  %1764 = vmatprep.subr.bf16.mxu0 %v3381_v12  ;;  %1990 = vmatprep.subr.bf16.mxu1 %v3384_v13  ;;  %v766_v13 = vmax.f32 %v687_v3, 0.0  ;;  %v691_v14 = vadd.f32 %v690_v10, %v3822_v46 }
 0x16c   :  { %v776_v26 = vmax.f32 %v588_v18, 0.0  ;;  %v769_v17 = vmax.f32 %v689_v9, 0.0 }
 0x16d   :  { %v831_v27 = vpack.c.bf16 %v775_v22, %v771_v21  ;;  %v770_v21 = vmax.f32 %v691_v14, 0.0 }
 0x16e   :  { %v832_v29 = vpack.c.bf16 %v776_v26, %v772_v25  ;;  %1765 = vmatpush1.bf16.msra.mxu0 %v3379_v19  ;;  %v591_v30 = vpop.f32.mrb[8].mxu0  ;;  %1991 = vmatpush1.bf16.msra.mxu1 %v3382_v20  ;;  %v3403_v19 = vld [vmem:[#allocation7 + $0x2a0] ss:$16 sps:$4 sm:$0xff]   ;;  %v3406_v20 = vld [vmem:[#allocation7 + $0x2a8] ss:$16 sps:$4 sm:$0xff]   ;;  %v3832_v26 = vpack.c.bf16 %v769_v17, %v765_v8 }
 0x16f   :  { %v592_v34 = vadd.f32 %v591_v30, %v3793_v55  ;;  %v593_v35 = vpop.f32.mrb[9].mxu0  ;;  %1766 = vmatprep.subr.bf16.mxu0 %v3387_v23  ;;  %1992 = vmatprep.subr.bf16.mxu1 %v3390_v24  ;;  %v3411_v24 = vld [vmem:[#allocation7 + $0x2c4] ss:$16 sps:$4 sm:$0xff]   ;;  %v3414_v25 = vld [vmem:[#allocation7 + $0x2cc] ss:$16 sps:$4 sm:$0xff]   ;;  %v3834_v30 = vpack.c.bf16 %v770_v21, %v766_v13 }
 0x170   :  { %v594_v38 = vadd.f32 %v593_v35, %v3798_v56  ;;  %v595_v39 = vpop.f32.mrb[10].mxu0  ;;  %1691 = vmatprep.mubr.bf16.mxu0 %v832_v29  ;;  %1917 = vmatprep.mubr.bf16.mxu1 %v832_v29  ;;  %v3421_v13 = vld [vmem:[#allocation7 + $0x300] ss:$16 sps:$4 sm:$0xff]  }
 0x171   :  { %v596_v40 = vadd.f32 %v595_v39, %v3793_v55  ;;  %v597_v41 = vpop.f32.mrb[11].mxu0  ;;  %1692 = vmatmul.mubr.bf16.gmra.mrb[36].mxu0 %v831_v27  ;;  %1918 = vmatmul.mubr.bf16.gmra.mrb[36].mxu1 %v831_v27  ;;  %v779_v47 = vmax.f32 %v592_v34, 0.0  ;;  %v3409_v34 = vld [vmem:[#allocation7 + $0x2c0] ss:$16 sps:$4 sm:$0xff]   ;;  %v3412_v39 = vld [vmem:[#allocation7 + $0x2c8] ss:$16 sps:$4 sm:$0xff]  }
 0x172   :  { %v598_v43 = vadd.f32 %v597_v41, %v3798_v56  ;;  %1767 = vmatpush1.bf16.msra.mxu0 %v3385_v31  ;;  %1993 = vmatpush1.bf16.msra.mxu1 %v3388_v32  ;;  %v780_v57 = vmax.f32 %v594_v38, 0.0  ;;  %v694_v31 = vpop.f32.mrb[4].mxu1 }
 0x173   :  { %v783_v48 = vmax.f32 %v596_v40, 0.0  ;;  %1768 = vmatprep.subr.bf16.mxu0 %v3393_v36  ;;  %1994 = vmatprep.subr.bf16.mxu1 %v3396_v37  ;;  %v695_v35 = vadd.f32 %v694_v31, %v3816_v42  ;;  %v696_v36 = vpop.f32.mrb[5].mxu1  ;;  %v3417_v40 = vld [vmem:[#allocation7 + $0x2e4] ss:$16 sps:$4 sm:$0xff]  }
 0x174   :  { %v784_v58 = vmax.f32 %v598_v43, 0.0  ;;  %v697_v41 = vadd.f32 %v696_v36, %v3822_v46  ;;  %v698_v43 = vpop.f32.mrb[6].mxu1 }
 0x175   :  { %v835_v60 = vpack.c.bf16 %v783_v48, %v779_v47  ;;  %v3420_v47 = vld [vmem:[#allocation7 + $0x2ec] ss:$16 sps:$4 sm:$0xff]   ;;  %v773_v48 = vmax.f32 %v695_v35, 0.0 }
 0x176   :  { %v836_v0 = vpack.c.bf16 %v784_v58, %v780_v57  ;;  %1769 = vmatpush1.bf16.msra.mxu0 %v3391_v44  ;;  %v601_v1 = vpop.f32.mrb[12].mxu0  ;;  %1995 = vmatpush1.bf16.msra.mxu1 %v3394_v45  ;;  %v774_v59 = vmax.f32 %v697_v41, 0.0  ;;  %v3430_v41 = vld [vmem:[#allocation7 + $0x328] ss:$16 sps:$4 sm:$0xff]  }
 0x177   :  { %v602_v5 = vadd.f32 %v601_v1, %v3793_v55  ;;  %v603_v6 = vpop.f32.mrb[13].mxu0  ;;  %1770 = vmatprep.subr.bf16.mxu0 %v3399_v49  ;;  %1996 = vmatprep.subr.bf16.mxu1 %v3402_v50  ;;  %v699_v49 = vadd.f32 %v698_v43, %v3816_v42  ;;  %v700_v50 = vpop.f32.mrb[7].mxu1  ;;  %v3415_v1 = vld [vmem:[#allocation7 + $0x2e0] ss:$16 sps:$4 sm:$0xff]  }
 0x178   :  { %v604_v11 = vadd.f32 %v603_v6, %v3798_v56  ;;  %v605_v12 = vpop.f32.mrb[14].mxu0  ;;  %1701 = vmatprep.mubr.bf16.mxu0 %v836_v0  ;;  %1927 = vmatprep.mubr.bf16.mxu1 %v836_v0  ;;  %v3426_v6 = vld [vmem:[#allocation7 + $0x30c] ss:$16 sps:$4 sm:$0xff]  }
 0x179   :  { %v606_v15 = vadd.f32 %v605_v12, %v3793_v55  ;;  %v607_v16 = vpop.f32.mrb[15].mxu0  ;;  %1702 = vmatmul.mubr.bf16.gmra.mrb[40].mxu0 %v835_v60  ;;  %1928 = vmatmul.mubr.bf16.gmra.mrb[40].mxu1 %v835_v60  ;;  %v787_v22 = vmax.f32 %v602_v5, 0.0  ;;  %v701_v60 = vadd.f32 %v700_v50, %v3822_v46  ;;  %v777_v63 = vmax.f32 %v699_v49, 0.0  ;;  %v3423_v5 = vld [vmem:[#allocation7 + $0x304] ss:$16 sps:$4 sm:$0xff]  }
 0x17a   :  { %v608_v18 = vadd.f32 %v607_v16, %v3798_v56  ;;  %1771 = vmatpush1.bf16.msra.mxu0 %v3397_v61  ;;  %1997 = vmatpush1.bf16.msra.mxu1 %v3400_v53  ;;  %v788_v27 = vmax.f32 %v604_v11, 0.0  ;;  %v3418_v53 = vld [vmem:[#allocation7 + $0x2e8] ss:$16 sps:$4 sm:$0xff]   ;;  %v704_v11 = vpop.f32.mrb[8].mxu1 }
 0x17b   :  { %v791_v23 = vmax.f32 %v606_v15, 0.0  ;;  %1772 = vmatprep.subr.bf16.mxu0 %v3405_v2  ;;  %1998 = vmatprep.subr.bf16.mxu1 %v3408_v7  ;;  %v778_v2 = vmax.f32 %v701_v60, 0.0  ;;  %v3844_v7 = vpack.c.bf16 %v777_v63, %v773_v48  ;;  %v705_v14 = vadd.f32 %v704_v11, %v3816_v42  ;;  %v706_v15 = vpop.f32.mrb[9].mxu1  ;;  %v3438_v48 = vld [vmem:[#allocation7 + $0x34c] ss:$16 sps:$4 sm:$0xff]  }
 0x17c   :  { %v792_v29 = vmax.f32 %v608_v18, 0.0  ;;  %v3424_v18 = vld [vmem:[#allocation7 + $0x308] ss:$16 sps:$4 sm:$0xff]   ;;  %v708_v21 = vpop.f32.mrb[10].mxu1 }
 0x17d   :  { %v839_v32 = vpack.c.bf16 %v791_v23, %v787_v22  ;;  %v3846_v10 = vpack.c.bf16 %v778_v2, %v774_v59  ;;  %v3441_v2 = vld [vmem:[#allocation7 + $0x364] ss:$16 sps:$4 sm:$0xff]  }
 0x17e   :  { %v840_v37 = vpack.c.bf16 %v792_v29, %v788_v27  ;;  %1773 = vmatpush1.bf16.msra.mxu0 %v3403_v19  ;;  %v611_v38 = vpop.f32.mrb[16].mxu0  ;;  %1999 = vmatpush1.bf16.msra.mxu1 %v3406_v20  ;;  %v3429_v19 = vld [vmem:[#allocation7 + $0x324] ss:$16 sps:$4 sm:$0xff]   ;;  %v707_v20 = vadd.f32 %v706_v15, %v3822_v46  ;;  %v709_v27 = vadd.f32 %v708_v21, %v3816_v42  ;;  %v710_v29 = vpop.f32.mrb[11].mxu1  ;;  %v3439_v21 = vld [vmem:[#allocation7 + $0x360] ss:$16 sps:$4 sm:$0xff]  }
 0x17f   :  { %v612_v44 = vadd.f32 %v611_v38, %v3793_v55  ;;  %v613_v45 = vpop.f32.mrb[17].mxu0  ;;  %1774 = vmatprep.subr.bf16.mxu0 %v3411_v24  ;;  %2000 = vmatprep.subr.bf16.mxu1 %v3414_v25  ;;  %v3432_v24 = vld [vmem:[#allocation7 + $0x32c] ss:$16 sps:$4 sm:$0xff]   ;;  %v781_v25 = vmax.f32 %v705_v14, 0.0  ;;  %v711_v35 = vadd.f32 %v710_v29, %v3822_v46  ;;  %v714_v59 = vpop.f32.mrb[12].mxu1 }
 0x180   :  { %v614_v57 = vadd.f32 %v613_v45, %v3798_v56  ;;  %v615_v58 = vpop.f32.mrb[18].mxu0  ;;  %1711 = vmatprep.mubr.bf16.mxu0 %v840_v37  ;;  %1937 = vmatprep.mubr.bf16.mxu1 %v840_v37  ;;  %v785_v38 = vmax.f32 %v709_v27, 0.0  ;;  %v716_v63 = vpop.f32.mrb[13].mxu1  ;;  %v3447_v27 = vld [vmem:[#allocation7 + $0x384] ss:$16 sps:$4 sm:$0xff]  }
 0x181   :  { %v616_v61 = vadd.f32 %v615_v58, %v3793_v55  ;;  %v617_v62 = vpop.f32.mrb[19].mxu0  ;;  %1712 = vmatmul.mubr.bf16.gmra.mrb[44].mxu0 %v839_v32  ;;  %1938 = vmatmul.mubr.bf16.gmra.mrb[44].mxu1 %v839_v32  ;;  %v795_v3 = vmax.f32 %v612_v44, 0.0  ;;  %v786_v43 = vmax.f32 %v711_v35, 0.0  ;;  %v3450_v29 = vld [vmem:[#allocation7 + $0x38c] ss:$16 sps:$4 sm:$0xff]  }
 0x182   :  { %v618_v0 = vadd.f32 %v617_v62, %v3798_v56  ;;  %1775 = vmatpush1.bf16.msra.mxu0 %v3409_v34  ;;  %2001 = vmatpush1.bf16.msra.mxu1 %v3412_v39  ;;  %v796_v8 = vmax.f32 %v614_v57, 0.0  ;;  %v782_v34 = vmax.f32 %v707_v20, 0.0  ;;  %v3856_v49 = vpack.c.bf16 %v785_v38, %v781_v25  ;;  %v3445_v38 = vld [vmem:[#allocation7 + $0x380] ss:$16 sps:$4 sm:$0xff]  }
 0x183   :  { %v799_v4 = vmax.f32 %v616_v61, 0.0  ;;  %1776 = vmatprep.subr.bf16.mxu0 %v3417_v40  ;;  %2002 = vmatprep.subr.bf16.mxu1 %v3420_v47  ;;  %v3427_v40 = vld [vmem:[#allocation7 + $0x320] ss:$16 sps:$4 sm:$0xff]   ;;  %v3435_v47 = vld [vmem:[#allocation7 + $0x344] ss:$16 sps:$4 sm:$0xff]   ;;  %v715_v62 = vadd.f32 %v714_v59, %v3816_v42 }
 0x184   :  { %v800_v9 = vmax.f32 %v618_v0, 0.0  ;;  %v3858_v58 = vpack.c.bf16 %v786_v43, %v782_v34  ;;  %v3433_v61 = vld [vmem:[#allocation7 + $0x340] ss:$16 sps:$4 sm:$0xff]   ;;  %v3456_v59 = vld [vmem:[#allocation7 + $0x3ac] ss:$16 sps:$4 sm:$0xff]  }
 0x185   :  { %v843_v12 = vpack.c.bf16 %v799_v4, %v795_v3  ;;  %v717_v3 = vadd.f32 %v716_v63, %v3822_v46  ;;  %v718_v4 = vpop.f32.mrb[14].mxu1 }
 0x186   :  { %v844_v16 = vpack.c.bf16 %v800_v9, %v796_v8  ;;  %1777 = vmatpush1.bf16.msra.mxu0 %v3415_v1  ;;  %v621_v17 = vpop.f32.mrb[20].mxu0  ;;  %2003 = vmatpush1.bf16.msra.mxu1 %v3418_v53  ;;  %v3436_v53 = vld [vmem:[#allocation7 + $0x348] ss:$16 sps:$4 sm:$0xff]   ;;  %v3444_v8 = vld [vmem:[#allocation7 + $0x36c] ss:$16 sps:$4 sm:$0xff]   ;;  %v789_v9 = vmax.f32 %v715_v62, 0.0  ;;  %v719_v11 = vadd.f32 %v718_v4, %v3816_v42 }
 0x187   :  { %v622_v22 = vadd.f32 %v621_v17, %v3793_v55  ;;  %v623_v23 = vpop.f32.mrb[21].mxu0  ;;  %1778 = vmatprep.subr.bf16.mxu0 %v3423_v5  ;;  %2004 = vmatprep.subr.bf16.mxu1 %v3426_v6  ;;  %v790_v15 = vmax.f32 %v717_v3, 0.0 }
 0x188   :  { %v624_v31 = vadd.f32 %v623_v23, %v3798_v56  ;;  %v625_v32 = vpop.f32.mrb[22].mxu0  ;;  %1721 = vmatprep.mubr.bf16.mxu0 %v844_v16  ;;  %1947 = vmatprep.mubr.bf16.mxu1 %v844_v16 }
 0x189   :  { %v626_v36 = vadd.f32 %v625_v32, %v3793_v55  ;;  %v627_v37 = vpop.f32.mrb[23].mxu0  ;;  %1722 = vmatmul.mubr.bf16.gmra.mrb[48].mxu0 %v843_v12  ;;  %1948 = vmatmul.mubr.bf16.gmra.mrb[48].mxu1 %v843_v12  ;;  %v803_v44 = vmax.f32 %v622_v22, 0.0  ;;  %v720_v12 = vpop.f32.mrb[15].mxu1  ;;  %v3442_v22 = vld [vmem:[#allocation7 + $0x368] ss:$16 sps:$4 sm:$0xff]  }
 0x18a   :  { %v628_v39 = vadd.f32 %v627_v37, %v3798_v56  ;;  %1779 = vmatpush1.bf16.msra.mxu0 %v3421_v13  ;;  %2005 = vmatpush1.bf16.msra.mxu1 %v3424_v18  ;;  %v804_v50 = vmax.f32 %v624_v31, 0.0  ;;  %v721_v16 = vadd.f32 %v720_v12, %v3822_v46 }
 0x18b   :  { %v807_v45 = vmax.f32 %v626_v36, 0.0  ;;  %1780 = vmatprep.subr.bf16.mxu0 %v3429_v19  ;;  %2006 = vmatprep.subr.bf16.mxu1 %v3432_v24  ;;  %v793_v19 = vmax.f32 %v719_v11, 0.0  ;;  %v724_v36 = vpop.f32.mrb[16].mxu1 }
 0x18c   :  { %v808_v57 = vmax.f32 %v628_v39, 0.0  ;;  %v794_v23 = vmax.f32 %v721_v16, 0.0  ;;  %v725_v39 = vadd.f32 %v724_v36, %v3816_v42  ;;  %v3468_v36 = vld [vmem:[#allocation7 + $0x3ec] ss:$16 sps:$4 sm:$0xff]  }
 0x18d   :  { %v847_v60 = vpack.c.bf16 %v807_v45, %v803_v44  ;;  %v3868_v31 = vpack.c.bf16 %v793_v19, %v789_v9  ;;  %v3448_v44 = vld [vmem:[#allocation7 + $0x388] ss:$16 sps:$4 sm:$0xff]   ;;  %v3453_v45 = vld [vmem:[#allocation7 + $0x3a4] ss:$16 sps:$4 sm:$0xff]  }
 0x18e   :  { %v848_v0 = vpack.c.bf16 %v808_v57, %v804_v50  ;;  %1781 = vmatpush1.bf16.msra.mxu0 %v3427_v40  ;;  %v631_v1 = vpop.f32.mrb[24].mxu0  ;;  %2007 = vmatpush1.bf16.msra.mxu1 %v3430_v41  ;;  %v3870_v35 = vpack.c.bf16 %v794_v23, %v790_v15  ;;  %v726_v40 = vpop.f32.mrb[17].mxu1  ;;  %v3460_v23 = vld [vmem:[#allocation7 + $0x3c8] ss:$16 sps:$4 sm:$0xff]  }
 0x18f   :  { %v632_v5 = vadd.f32 %v631_v1, %v3793_v55  ;;  %v633_v6 = vpop.f32.mrb[25].mxu0  ;;  %1782 = vmatprep.subr.bf16.mxu0 %v3435_v47  ;;  %2008 = vmatprep.subr.bf16.mxu1 %v3438_v48  ;;  %v727_v47 = vadd.f32 %v726_v40, %v3822_v46  ;;  %v728_v48 = vpop.f32.mrb[18].mxu1  ;;  %v3463_v40 = vld [vmem:[#allocation7 + $0x3e0] ss:$16 sps:$4 sm:$0xff]  }
 0x190   :  { %v634_v13 = vadd.f32 %v633_v6, %v3798_v56  ;;  %v635_v14 = vpop.f32.mrb[26].mxu0  ;;  %1731 = vmatprep.mubr.bf16.mxu0 %v848_v0  ;;  %1957 = vmatprep.mubr.bf16.mxu1 %v848_v0  ;;  %v730_v62 = vpop.f32.mrb[19].mxu1  ;;  %v3451_v6 = vld [vmem:[#allocation7 + $0x3a0] ss:$16 sps:$4 sm:$0xff]  }
 0x191   :  { %v636_v17 = vadd.f32 %v635_v14, %v3793_v55  ;;  %v637_v18 = vpop.f32.mrb[27].mxu0  ;;  %1732 = vmatmul.mubr.bf16.gmra.mrb[52].mxu0 %v847_v60  ;;  %1958 = vmatmul.mubr.bf16.gmra.mrb[52].mxu1 %v847_v60  ;;  %v811_v24 = vmax.f32 %v632_v5, 0.0  ;;  %v797_v60 = vmax.f32 %v725_v39, 0.0  ;;  %v798_v1 = vmax.f32 %v727_v47, 0.0  ;;  %v3462_v14 = vld [vmem:[#allocation7 + $0x3cc] ss:$16 sps:$4 sm:$0xff]  }
 0x192   :  { %v638_v20 = vadd.f32 %v637_v18, %v3798_v56  ;;  %1783 = vmatpush1.bf16.msra.mxu0 %v3433_v61  ;;  %2009 = vmatpush1.bf16.msra.mxu1 %v3436_v53  ;;  %v812_v32 = vmax.f32 %v634_v13, 0.0  ;;  %v729_v61 = vadd.f32 %v728_v48, %v3816_v42  ;;  %v731_v53 = vadd.f32 %v730_v62, %v3822_v46  ;;  %v3459_v13 = vld [vmem:[#allocation7 + $0x3c4] ss:$16 sps:$4 sm:$0xff]   ;;  %v734_v18 = vpop.f32.mrb[20].mxu1 }
 0x193   :  { %v815_v25 = vmax.f32 %v636_v17, 0.0  ;;  %1784 = vmatprep.subr.bf16.mxu0 %v3441_v2  ;;  %2010 = vmatprep.subr.bf16.mxu1 %v3444_v8  ;;  %v3454_v8 = vld [vmem:[#allocation7 + $0x3a8] ss:$16 sps:$4 sm:$0xff]   ;;  %v3471_v47 = vld [vmem:[#allocation8 + $0xc0] sm:$0xff]  }
 0x194   :  { %v816_v34 = vmax.f32 %v638_v20, 0.0  ;;  %v801_v4 = vmax.f32 %v729_v61, 0.0  ;;  %v802_v9 = vmax.f32 %v731_v53, 0.0  ;;  %v736_v20 = vpop.f32.mrb[21].mxu1  ;;  %v3472_v53 = vld [vmem:[#allocation8 + $0x80] sm:$0xff]  }
 0x195   :  { %v851_v37 = vpack.c.bf16 %v815_v25, %v811_v24  ;;  %v737_v24 = vadd.f32 %v736_v20, %v3822_v46  ;;  %v738_v25 = vpop.f32.mrb[22].mxu1 }
 0x196   :  { %v852_v41 = vpack.c.bf16 %v816_v34, %v812_v32  ;;  %1785 = vmatpush1.bf16.msra.mxu0 %v3439_v21  ;;  %v641_v43 = vpop.f32.mrb[28].mxu0  ;;  %2011 = vmatpush1.bf16.msra.mxu1 %v3442_v22  ;;  %v3880_v15 = vpack.c.bf16 %v801_v4, %v797_v60  ;;  %v3882_v17 = vpack.c.bf16 %v802_v9, %v798_v1  ;;  %v3457_v22 = vld [vmem:[#allocation7 + $0x3c0] ss:$16 sps:$4 sm:$0xff]   ;;  %v740_v34 = vpop.f32.mrb[23].mxu1  ;;  %v3475_v4 = vld [vmem:[#allocation8 + $0xc8] sm:$0xff]  }
 0x197   :  { %v642_v50 = vadd.f32 %v641_v43, %v3793_v55  ;;  %v643_v57 = vpop.f32.mrb[29].mxu0  ;;  %1786 = vmatprep.subr.bf16.mxu0 %v3447_v27  ;;  %2012 = vmatprep.subr.bf16.mxu1 %v3450_v29  ;;  %v3465_v27 = vld [vmem:[#allocation7 + $0x3e4] ss:$16 sps:$4 sm:$0xff]   ;;  %v739_v32 = vadd.f32 %v738_v25, %v3816_v42  ;;  %v3474_v9 = vld [vmem:[#allocation8 + $0x8] sm:$0xff]   ;;  %v3481_v25 = vld [vmem:[#allocation8 + $0x58] sm:$0xff]  }
 0x198   :  { %v644_v63 = vadd.f32 %v643_v57, %v3798_v56  ;;  %v645_v0 = vpop.f32.mrb[30].mxu0  ;;  %1741 = vmatprep.mubr.bf16.mxu0 %v852_v41  ;;  %1967 = vmatprep.mubr.bf16.mxu1 %v852_v41  ;;  %v3466_v41 = vld [vmem:[#allocation7 + $0x3e8] ss:$16 sps:$4 sm:$0xff]   ;;  %v3470_v1 = vld [vmem:[#allocation8] sm:$0xff]  }
 0x199   :  { %v646_v2 = vadd.f32 %v645_v0, %v3793_v55  ;;  %v647_v3 = vpop.f32.mrb[31].mxu0  ;;  %1742 = vmatmul.mubr.bf16.gmra.mrb[56].mxu0 %v851_v37  ;;  %1968 = vmatmul.mubr.bf16.gmra.mrb[56].mxu1 %v851_v37  ;;  %v819_v11 = vmax.f32 %v642_v50, 0.0  ;;  %v806_v37 = vmax.f32 %v737_v24, 0.0  ;;  %v809_v39 = vmax.f32 %v739_v32, 0.0  ;;  %v744_v50 = vpop.f32.mrb[24].mxu1 }
 0x19a   :  { %v648_v5 = vadd.f32 %v647_v3, %v3798_v56  ;;  %1787 = vmatpush1.bf16.msra.mxu0 %v3445_v38  ;;  %2013 = vmatpush1.bf16.msra.mxu1 %v3448_v44  ;;  %v820_v55 = vmax.f32 %v644_v63, 0.0  ;;  %v735_v56 = vadd.f32 %v734_v18, %v3816_v42  ;;  %v741_v38 = vadd.f32 %v740_v34, %v3822_v46  ;;  %v3473_v3 = vld [vmem:[#allocation8 + $0x48] sm:$0xff]   ;;  %v3482_v34 = vld [vmem:[#allocation8 + $0x18] sm:$0xff]  }
 0x19b   :  { %v823_v12 = vmax.f32 %v646_v2, 0.0  ;;  %1788 = vmatprep.subr.bf16.mxu0 %v3453_v45  ;;  %2014 = vmatprep.subr.bf16.mxu1 %v3456_v59  ;;  %v3469_v45 = vld [vmem:[#allocation8 + $0x40] sm:$0xff]   ;;  %v745_v57 = vadd.f32 %v744_v50, %v3816_v42  ;;  %v746_v59 = vpop.f32.mrb[25].mxu1  ;;  %v3494_v50 = vld [vmem:[#allocation8 + $0x30] sm:$0xff]  }
 0x19c   :  { %v824_v16 = vmax.f32 %v648_v5, 0.0  ;;  %v805_v29 = vmax.f32 %v735_v56, 0.0  ;;  %v810_v43 = vmax.f32 %v741_v38, 0.0  ;;  %v747_v60 = vadd.f32 %v746_v59, %v3822_v46  ;;  %v748_v61 = vpop.f32.mrb[26].mxu1  ;;  %v3487_v38 = vld [vmem:[#allocation8 + $0xe0] sm:$0xff]  }
 0x19d   :  { %v855_v19 = vpack.c.bf16 %v823_v12, %v819_v11  ;;  %v813_v62 = vmax.f32 %v745_v57, 0.0  ;;  %v749_v63 = vadd.f32 %v748_v61, %v3816_v42  ;;  %v750_v0 = vpop.f32.mrb[27].mxu1  ;;  %v3476_v11 = vld [vmem:[#allocation8 + $0x88] sm:$0xff]   ;;  %v3496_v57 = vld [vmem:[#allocation8 + $0xb0] sm:$0xff]  }
 0x19e   :  { %v856_v21 = vpack.c.bf16 %v824_v16, %v820_v55  ;;  %1789 = vmatpush1.bf16.msra.mxu0 %v3451_v6  ;;  %2015 = vmatpush1.bf16.msra.mxu1 %v3454_v8  ;;  %v3889_v44 = vpack.c.bf16 %v809_v39, %v805_v29  ;;  %v3892_v48 = vpack.c.bf16 %v810_v43, %v806_v37  ;;  %v3479_v55 = vld [vmem:[#allocation8 + $0xd0] sm:$0xff]   ;;  %v3485_v37 = vld [vmem:[#allocation8 + $0x60] sm:$0xff]   ;;  %v3492_v43 = vld [vmem:[#allocation8 + $0xa8] sm:$0xff]  }
 0x19f   :  { %1790 = vmatprep.subr.bf16.mxu0 %v3459_v13  ;;  %2016 = vmatprep.subr.bf16.mxu1 %v3462_v14  ;;  %v751_v2 = vadd.f32 %v750_v0, %v3822_v46  ;;  %v817_v5 = vmax.f32 %v749_v63, 0.0  ;;  %v754_v13 = vpop.f32.mrb[28].mxu1  ;;  %v3477_v14 = vld [vmem:[#allocation8 + $0x50] sm:$0xff]   ;;  %v3486_v39 = vld [vmem:[#allocation8 + $0x20] sm:$0xff]  }
 0x1a0   :  { %1751 = vmatprep.mubr.bf16.mxu0 %v856_v21  ;;  %1977 = vmatprep.mubr.bf16.mxu1 %v856_v21  ;;  %v756_v16 = vpop.f32.mrb[29].mxu1  ;;  %v3478_v21 = vld [vmem:[#allocation8 + $0x10] sm:$0xff]  }
 0x1a1   :  { %1752 = vmatmul.mubr.bf16.gmra.mrb[60].mxu0 %v855_v19  ;;  %1978 = vmatmul.mubr.bf16.gmra.mrb[60].mxu1 %v855_v19  ;;  %v818_v6 = vmax.f32 %v751_v2, 0.0  ;;  %v3902_v8 = vpack.c.bf16 %v817_v5, %v813_v62  ;;  %v757_v18 = vadd.f32 %v756_v16, %v3822_v46 }
 0x1a2   :  { %1791 = vmatpush1.bf16.msra.mxu0 %v3457_v22  ;;  %2017 = vmatpush1.bf16.msra.mxu1 %v3460_v23  ;;  %v3480_v22 = vld [vmem:[#allocation8 + $0x90] sm:$0xff]  }
 0x1a3   :  { %1792 = vmatprep.subr.bf16.mxu0 %v3465_v27  ;;  %1794 = vmatprep.mubr.bf16.mxu0 %v3834_v30  ;;  %v822_v23 = vmax.f32 %v757_v18, 0.0  ;;  %v3483_v27 = vld [vmem:[#allocation8 + $0xd8] sm:$0xff]  }
 0x1a4   :  { %2018 = vmatprep.subr.bf16.mxu1 %v3468_v36  ;;  %2020 = vmatprep.mubr.bf16.mxu1 %v3834_v30  ;;  %v814_v30 = vmax.f32 %v747_v60, 0.0  ;;  %v3484_v36 = vld [vmem:[#allocation8 + $0x98] sm:$0xff]  }
 0x1a6   :  { %1793 = vmatpush1.bf16.msra.mxu0 %v3463_v40  ;;  %2019 = vmatpush1.bf16.msra.mxu1 %v3466_v41  ;;  %v3904_v12 = vpack.c.bf16 %v818_v6, %v814_v30  ;;  %v3489_v40 = vld [vmem:[#allocation8 + $0x68] sm:$0xff]  }
 0x1a7   :  { %2914 = vmatprep.subr.bf16.mxu0 %v3469_v45  ;;  %2978 = vmatprep.subr.bf16.mxu1 %v3471_v47  ;;  %v3491_v41 = vld [vmem:[#allocation8 + $0xe8] sm:$0xff]   ;;  %v3493_v45 = vld [vmem:[#allocation8 + $0x70] sm:$0xff]  }
 0x1a8   :  { %v3495_v47 = vld [vmem:[#allocation8 + $0xf0] sm:$0xff]  }
 0x1a9   :  { %1795 = vmatmul.mubr.bf16.vlgmr.msra.gmra.mrb[32].mxu0 %v3832_v26  ;;  %2021 = vmatmul.mubr.bf16.vlgmr.msra.gmra.mrb[32].mxu1 %v3832_v26  ;;  %v755_v26 = vadd.f32 %v754_v13, %v3816_v42 }
 0x1aa   :  { %1804 = vmatprep.mubr.bf16.mxu0 %v3846_v10  ;;  %2030 = vmatprep.mubr.bf16.mxu1 %v3846_v10  ;;  %v758_v10 = vpop.f32.mrb[30].mxu1 }
 0x1ab   :  { %2915 = vmatpush3.bf16.msra.mxu0 %v3470_v1  ;;  %2979 = vmatpush3.bf16.msra.mxu1 %v3472_v53  ;;  %v821_v19 = vmax.f32 %v755_v26, 0.0  ;;  %v759_v56 = vadd.f32 %v758_v10, %v3816_v42  ;;  %v760_v20 = vpop.f32.mrb[31].mxu1 }
 0x1ac   :  { %2916 = vmatprep.subr.bf16.mxu0 %v3473_v3  ;;  %2980 = vmatprep.subr.bf16.mxu1 %v3475_v4  ;;  %v761_v24 = vadd.f32 %v760_v20, %v3822_v46 }
 0x1ad   :  { %v825_v29 = vmax.f32 %v759_v56, 0.0 }
 0x1ae   :  { %v826_v42 = vmax.f32 %v761_v24, 0.0 }
 0x1af   :  { %2917 = vmatpush3.bf16.msra.mxu0 %v3474_v9  ;;  %2981 = vmatpush3.bf16.msra.mxu1 %v3476_v11  ;;  %v857_v32 = vpack.c.bf16 %v825_v29, %v821_v19 }
 0x1b0   :  { %2918 = vmatprep.subr.bf16.mxu0 %v3477_v14  ;;  %2982 = vmatprep.subr.bf16.mxu1 %v3479_v55  ;;  %v858_v46 = vpack.c.bf16 %v826_v42, %v822_v23 }
 0x1b1   :  { %1805 = vmatmul.mubr.bf16.gmra.mrb[36].mxu0 %v3844_v7  ;;  %2031 = vmatmul.mubr.bf16.gmra.mrb[36].mxu1 %v3844_v7  ;;  %v3488_v7 = vld [vmem:[#allocation8 + $0xa0] sm:$0xff]  }
 0x1b2   :  { %1814 = vmatprep.mubr.bf16.mxu0 %v3858_v58  ;;  %2040 = vmatprep.mubr.bf16.mxu1 %v3858_v58  ;;  %v3490_v58 = vld [vmem:[#allocation8 + $0x28] sm:$0xff]  }
 0x1b3   :  { %2919 = vmatpush3.bf16.msra.mxu0 %v3478_v21  ;;  %2983 = vmatpush3.bf16.msra.mxu1 %v3480_v22 }
 0x1b4   :  { %2920 = vmatprep.subr.bf16.mxu0 %v3481_v25  ;;  %2984 = vmatprep.subr.bf16.mxu1 %v3483_v27 }
 0x1b7   :  { %2921 = vmatpush3.bf16.msra.mxu0 %v3482_v34  ;;  %2985 = vmatpush3.bf16.msra.mxu1 %v3484_v36 }
 0x1b8   :  { %2922 = vmatprep.subr.bf16.mxu0 %v3485_v37  ;;  %2986 = vmatprep.subr.bf16.mxu1 %v3487_v38 }
 0x1b9   :  { %1815 = vmatmul.mubr.bf16.gmra.mrb[40].mxu0 %v3856_v49  ;;  %2041 = vmatmul.mubr.bf16.gmra.mrb[40].mxu1 %v3856_v49  ;;  %v3497_v49 = vld [vmem:[#allocation8 + $0x78] sm:$0xff]  }
 0x1ba   :  { %1824 = vmatprep.mubr.bf16.mxu0 %v3870_v35  ;;  %2050 = vmatprep.mubr.bf16.mxu1 %v3870_v35  ;;  %v3498_v35 = vld [vmem:[#allocation8 + $0x38] sm:$0xff]  }
 0x1bb   :  { %2923 = vmatpush3.bf16.msra.mxu0 %v3486_v39  ;;  %2987 = vmatpush3.bf16.msra.mxu1 %v3488_v7 }
 0x1bc   :  { %2924 = vmatprep.subr.bf16.mxu0 %v3489_v40  ;;  %2988 = vmatprep.subr.bf16.mxu1 %v3491_v41 }
 0x1bf   :  { %2925 = vmatpush3.bf16.msra.mxu0 %v3490_v58  ;;  %2989 = vmatpush3.bf16.msra.mxu1 %v3492_v43 }
 0x1c0   :  { %2926 = vmatprep.subr.bf16.mxu0 %v3493_v45  ;;  %2990 = vmatprep.subr.bf16.mxu1 %v3495_v47 }
 0x1c1   :  { %1825 = vmatmul.mubr.bf16.gmra.mrb[44].mxu0 %v3868_v31  ;;  %2051 = vmatmul.mubr.bf16.gmra.mrb[44].mxu1 %v3868_v31  ;;  %v3499_v31 = vld [vmem:[#allocation8 + $0xf8] sm:$0xff]  }
 0x1c2   :  { %1834 = vmatprep.mubr.bf16.mxu0 %v3882_v17  ;;  %2060 = vmatprep.mubr.bf16.mxu1 %v3882_v17  ;;  %v987_v17 = vld [vmem:[%s4052_s4] sm:$0xf] }
 0x1c3   :  { %2927 = vmatpush3.bf16.msra.mxu0 %v3494_v50  ;;  %2991 = vmatpush3.bf16.msra.mxu1 %v3496_v57  ;;  %v3945_v59 = vrot.slane %v987_v17, %v203_v54  ;;  %v3949_v60 = vrot.slane %v987_v17, %v211_v33 }
 0x1c4   :  { %2928 = vmatprep.subr.bf16.mxu0 %v3497_v49  ;;  %2992 = vmatprep.subr.bf16.mxu1 %v3499_v31 }
 0x1c7   :  { %2929 = vmatpush3.bf16.msra.mxu0 %v3498_v35 }
 0x1c9   :  { %1835 = vmatmul.mubr.bf16.gmra.mrb[48].mxu0 %v3880_v15  ;;  %2061 = vmatmul.mubr.bf16.gmra.mrb[48].mxu1 %v3880_v15  ;;  %v3500_v15 = vld [vmem:[#allocation8 + $0xb8] sm:$0xff]  }
 0x1ca   :  { %1844 = vmatprep.mubr.bf16.mxu0 %v3892_v48  ;;  %2070 = vmatprep.mubr.bf16.mxu1 %v3892_v48  ;;  %v3941_v48 = vrot.slane %v987_v17, %v207_v28 }
 0x1cb   :  { %2993 = vmatpush3.bf16.msra.mxu1 %v3500_v15 }
 0x1d1   :  { %1845 = vmatmul.mubr.bf16.gmra.mrb[52].mxu0 %v3889_v44  ;;  %2071 = vmatmul.mubr.bf16.gmra.mrb[52].mxu1 %v3889_v44  ;;  %v3937_v44 = vrot.slane %v987_v17, %v199_v52 }
 0x1d2   :  { %1854 = vmatprep.mubr.bf16.mxu0 %v3904_v12  ;;  %2080 = vmatprep.mubr.bf16.mxu1 %v3904_v12 }
 0x1d9   :  { %1855 = vmatmul.mubr.bf16.gmra.mrb[56].mxu0 %v3902_v8  ;;  %2081 = vmatmul.mubr.bf16.gmra.mrb[56].mxu1 %v3902_v8 }
 0x1da   :  { %1864 = vmatprep.mubr.bf16.mxu0 %v858_v46  ;;  %2090 = vmatprep.mubr.bf16.mxu1 %v858_v46 }
 0x1e1   :  { %1865 = vmatmul.mubr.bf16.gmra.mrb[60].mxu0 %v857_v32  ;;  %2091 = vmatmul.mubr.bf16.gmra.mrb[60].mxu1 %v857_v32 }
 0x27c   :  { %v1796_v61 = vpop.f32.mrb[32].mxu0  ;;  %v2022_v62 = vpop.f32.mrb[32].mxu1 }
 0x27d   :  { %v3042_v63 = vadd.f32 %v1796_v61, %v3937_v44  ;;  %v3074_v0 = vadd.f32 %v2022_v62, %v3941_v48  ;;  %v1798_v52 = vpop.f32.mrb[33].mxu0  ;;  %v2024_v1 = vpop.f32.mrb[33].mxu1 }
 0x27e   :  { %v3043_v53 = vadd.f32 %v1798_v52, %v3945_v59  ;;  %v3075_v28 = vadd.f32 %v2024_v1, %v3949_v60  ;;  %v1800_v30 = vpop.f32.mrb[34].mxu0  ;;  %v2026_v2 = vpop.f32.mrb[34].mxu1 }
 0x27f   :  { %v3044_v54 = vadd.f32 %v1800_v30, %v3937_v44  ;;  %v3076_v51 = vadd.f32 %v2026_v2, %v3941_v48  ;;  %v1802_v33 = vpop.f32.mrb[35].mxu0  ;;  %v2028_v3 = vpop.f32.mrb[35].mxu1  ;;  %v2101_v6 = vmax.f32 %v3042_v63, 0.0  ;;  %v2103_v8 = vmax.f32 %v3074_v0, 0.0 }
 0x280   :  { %v3045_v4 = vadd.f32 %v1802_v33, %v3945_v59  ;;  %v3077_v5 = vadd.f32 %v2028_v3, %v3949_v60  ;;  %v2102_v12 = vmax.f32 %v3043_v53, 0.0  ;;  %v2104_v13 = vmax.f32 %v3075_v28, 0.0 }
 0x281   :  { %v2105_v9 = vmax.f32 %v3044_v54, 0.0  ;;  %v2107_v11 = vmax.f32 %v3076_v51, 0.0 }
 0x282   :  { %v2106_v14 = vmax.f32 %v3045_v4, 0.0  ;;  %v2108_v55 = vmax.f32 %v3077_v5, 0.0 }
 0x283   :  { %v2165_v26 = vpack.c.bf16 %v2105_v9, %v2101_v6  ;;  %v2167_v16 = vpack.c.bf16 %v2107_v11, %v2103_v8 }
 0x284   :  { %v2166_v18 = vpack.c.bf16 %v2106_v14, %v2102_v12  ;;  %v2168_v10 = vpack.c.bf16 %v2108_v55, %v2104_v13  ;;  %v1806_v19 = vpop.f32.mrb[36].mxu0  ;;  %v2032_v56 = vpop.f32.mrb[36].mxu1 }
 0x285   :  { %v3046_v20 = vadd.f32 %v1806_v19, %v3937_v44  ;;  %v3078_v21 = vadd.f32 %v2032_v56, %v3941_v48  ;;  %v1808_v22 = vpop.f32.mrb[37].mxu0  ;;  %v2034_v23 = vpop.f32.mrb[37].mxu1 }
 0x286   :  { %v3047_v24 = vadd.f32 %v1808_v22, %v3945_v59  ;;  %v3079_v25 = vadd.f32 %v2034_v23, %v3949_v60  ;;  %v1810_v27 = vpop.f32.mrb[38].mxu0  ;;  %v2036_v29 = vpop.f32.mrb[38].mxu1  ;;  %2492 = vmatprep.mubr.bf16.mxu0 %v2166_v18  ;;  %2589 = vmatprep.mubr.bf16.mxu1 %v2168_v10 }
 0x287   :  { %v3048_v42 = vadd.f32 %v1810_v27, %v3937_v44  ;;  %v3080_v32 = vadd.f32 %v2036_v29, %v3941_v48  ;;  %v1812_v34 = vpop.f32.mrb[39].mxu0  ;;  %v2038_v36 = vpop.f32.mrb[39].mxu1  ;;  %2493 = vmatmul.mubr.bf16.vlgmr.msra.gmra.mrb[64].mxu0 %v2165_v26  ;;  %2590 = vmatmul.mubr.bf16.vlgmr.msra.gmra.mrb[64].mxu1 %v2167_v16  ;;  %v2109_v38 = vmax.f32 %v3046_v20, 0.0  ;;  %v2111_v39 = vmax.f32 %v3078_v21, 0.0 }
 0x288   :  { %v3049_v46 = vadd.f32 %v1812_v34, %v3945_v59  ;;  %v3081_v37 = vadd.f32 %v2038_v36, %v3949_v60  ;;  %v2110_v41 = vmax.f32 %v3047_v24, 0.0  ;;  %v2112_v58 = vmax.f32 %v3079_v25, 0.0 }
 0x289   :  { %v2113_v7 = vmax.f32 %v3048_v42, 0.0  ;;  %v2115_v40 = vmax.f32 %v3080_v32, 0.0 }
 0x28a   :  { %v2114_v43 = vmax.f32 %v3049_v46, 0.0  ;;  %v2116_v45 = vmax.f32 %v3081_v37, 0.0 }
 0x28b   :  { %v2169_v47 = vpack.c.bf16 %v2113_v7, %v2109_v38  ;;  %v2171_v50 = vpack.c.bf16 %v2115_v40, %v2111_v39 }
 0x28c   :  { %v2170_v57 = vpack.c.bf16 %v2114_v43, %v2110_v41  ;;  %v2172_v49 = vpack.c.bf16 %v2116_v45, %v2112_v58  ;;  %v1816_v31 = vpop.f32.mrb[40].mxu0  ;;  %v2042_v35 = vpop.f32.mrb[40].mxu1 }
 0x28d   :  { %v3050_v15 = vadd.f32 %v1816_v31, %v3937_v44  ;;  %v3082_v17 = vadd.f32 %v2042_v35, %v3941_v48  ;;  %v1818_v61 = vpop.f32.mrb[41].mxu0  ;;  %v2044_v62 = vpop.f32.mrb[41].mxu1 }
 0x28e   :  { %v3051_v63 = vadd.f32 %v1818_v61, %v3945_v59  ;;  %v3083_v0 = vadd.f32 %v2044_v62, %v3949_v60  ;;  %v1820_v52 = vpop.f32.mrb[42].mxu0  ;;  %v2046_v1 = vpop.f32.mrb[42].mxu1  ;;  %2500 = vmatprep.mubr.bf16.mxu0 %v2170_v57  ;;  %2597 = vmatprep.mubr.bf16.mxu1 %v2172_v49 }
 0x28f   :  { %v3052_v53 = vadd.f32 %v1820_v52, %v3937_v44  ;;  %v3084_v28 = vadd.f32 %v2046_v1, %v3941_v48  ;;  %v1822_v30 = vpop.f32.mrb[43].mxu0  ;;  %v2048_v2 = vpop.f32.mrb[43].mxu1  ;;  %2501 = vmatmul.mubr.bf16.gmra.mrb[68].mxu0 %v2169_v47  ;;  %2598 = vmatmul.mubr.bf16.gmra.mrb[68].mxu1 %v2171_v50  ;;  %v2117_v33 = vmax.f32 %v3050_v15, 0.0  ;;  %v2119_v3 = vmax.f32 %v3082_v17, 0.0 }
 0x290   :  { %v3053_v54 = vadd.f32 %v1822_v30, %v3945_v59  ;;  %v3085_v51 = vadd.f32 %v2048_v2, %v3949_v60  ;;  %v2118_v6 = vmax.f32 %v3051_v63, 0.0  ;;  %v2120_v8 = vmax.f32 %v3083_v0, 0.0 }
 0x291   :  { %v2121_v4 = vmax.f32 %v3052_v53, 0.0  ;;  %v2123_v5 = vmax.f32 %v3084_v28, 0.0 }
 0x292   :  { %v2122_v9 = vmax.f32 %v3053_v54, 0.0  ;;  %v2124_v11 = vmax.f32 %v3085_v51, 0.0 }
 0x293   :  { %v2173_v12 = vpack.c.bf16 %v2121_v4, %v2117_v33  ;;  %v2175_v13 = vpack.c.bf16 %v2123_v5, %v2119_v3 }
 0x294   :  { %v2174_v14 = vpack.c.bf16 %v2122_v9, %v2118_v6  ;;  %v2176_v55 = vpack.c.bf16 %v2124_v11, %v2120_v8  ;;  %v1826_v26 = vpop.f32.mrb[44].mxu0  ;;  %v2052_v16 = vpop.f32.mrb[44].mxu1 }
 0x295   :  { %v3054_v18 = vadd.f32 %v1826_v26, %v3937_v44  ;;  %v3086_v10 = vadd.f32 %v2052_v16, %v3941_v48  ;;  %v1828_v19 = vpop.f32.mrb[45].mxu0  ;;  %v2054_v56 = vpop.f32.mrb[45].mxu1 }
 0x296   :  { %v3055_v20 = vadd.f32 %v1828_v19, %v3945_v59  ;;  %v3087_v21 = vadd.f32 %v2054_v56, %v3949_v60  ;;  %v1830_v22 = vpop.f32.mrb[46].mxu0  ;;  %v2056_v23 = vpop.f32.mrb[46].mxu1  ;;  %2508 = vmatprep.mubr.bf16.mxu0 %v2174_v14  ;;  %2605 = vmatprep.mubr.bf16.mxu1 %v2176_v55 }
 0x297   :  { %v3056_v24 = vadd.f32 %v1830_v22, %v3937_v44  ;;  %v3088_v25 = vadd.f32 %v2056_v23, %v3941_v48  ;;  %v1832_v27 = vpop.f32.mrb[47].mxu0  ;;  %v2058_v29 = vpop.f32.mrb[47].mxu1  ;;  %2509 = vmatmul.mubr.bf16.gmra.mrb[72].mxu0 %v2173_v12  ;;  %2606 = vmatmul.mubr.bf16.gmra.mrb[72].mxu1 %v2175_v13  ;;  %v2125_v34 = vmax.f32 %v3054_v18, 0.0  ;;  %v2127_v36 = vmax.f32 %v3086_v10, 0.0 }
 0x298   :  { %v3057_v42 = vadd.f32 %v1832_v27, %v3945_v59  ;;  %v3089_v32 = vadd.f32 %v2058_v29, %v3949_v60  ;;  %v2126_v38 = vmax.f32 %v3055_v20, 0.0  ;;  %v2128_v39 = vmax.f32 %v3087_v21, 0.0 }
 0x299   :  { %v2129_v46 = vmax.f32 %v3056_v24, 0.0  ;;  %v2131_v37 = vmax.f32 %v3088_v25, 0.0 }
 0x29a   :  { %v2130_v7 = vmax.f32 %v3057_v42, 0.0  ;;  %v2132_v40 = vmax.f32 %v3089_v32, 0.0 }
 0x29b   :  { %v2177_v41 = vpack.c.bf16 %v2129_v46, %v2125_v34  ;;  %v2179_v58 = vpack.c.bf16 %v2131_v37, %v2127_v36 }
 0x29c   :  { %v2178_v43 = vpack.c.bf16 %v2130_v7, %v2126_v38  ;;  %v2180_v45 = vpack.c.bf16 %v2132_v40, %v2128_v39  ;;  %v1836_v47 = vpop.f32.mrb[48].mxu0  ;;  %v2062_v50 = vpop.f32.mrb[48].mxu1 }
 0x29d   :  { %v3058_v57 = vadd.f32 %v1836_v47, %v3937_v44  ;;  %v3090_v49 = vadd.f32 %v2062_v50, %v3941_v48  ;;  %v1838_v31 = vpop.f32.mrb[49].mxu0  ;;  %v2064_v35 = vpop.f32.mrb[49].mxu1 }
 0x29e   :  { %v3059_v15 = vadd.f32 %v1838_v31, %v3945_v59  ;;  %v3091_v17 = vadd.f32 %v2064_v35, %v3949_v60  ;;  %v1840_v61 = vpop.f32.mrb[50].mxu0  ;;  %v2066_v62 = vpop.f32.mrb[50].mxu1  ;;  %2516 = vmatprep.mubr.bf16.mxu0 %v2178_v43  ;;  %2613 = vmatprep.mubr.bf16.mxu1 %v2180_v45 }
 0x29f   :  { %v3060_v63 = vadd.f32 %v1840_v61, %v3937_v44  ;;  %v3092_v0 = vadd.f32 %v2066_v62, %v3941_v48  ;;  %v1842_v52 = vpop.f32.mrb[51].mxu0  ;;  %v2068_v1 = vpop.f32.mrb[51].mxu1  ;;  %2517 = vmatmul.mubr.bf16.gmra.mrb[76].mxu0 %v2177_v41  ;;  %2614 = vmatmul.mubr.bf16.gmra.mrb[76].mxu1 %v2179_v58  ;;  %v2133_v30 = vmax.f32 %v3058_v57, 0.0  ;;  %v2135_v2 = vmax.f32 %v3090_v49, 0.0 }
 0x2a0   :  { %v3061_v53 = vadd.f32 %v1842_v52, %v3945_v59  ;;  %v3093_v28 = vadd.f32 %v2068_v1, %v3949_v60  ;;  %v2134_v33 = vmax.f32 %v3059_v15, 0.0  ;;  %v2136_v3 = vmax.f32 %v3091_v17, 0.0 }
 0x2a1   :  { %v2137_v54 = vmax.f32 %v3060_v63, 0.0  ;;  %v2139_v51 = vmax.f32 %v3092_v0, 0.0 }
 0x2a2   :  { %v2138_v4 = vmax.f32 %v3061_v53, 0.0  ;;  %v2140_v5 = vmax.f32 %v3093_v28, 0.0 }
 0x2a3   :  { %v2181_v6 = vpack.c.bf16 %v2137_v54, %v2133_v30  ;;  %v2183_v8 = vpack.c.bf16 %v2139_v51, %v2135_v2 }
 0x2a4   :  { %v2182_v9 = vpack.c.bf16 %v2138_v4, %v2134_v33  ;;  %v2184_v11 = vpack.c.bf16 %v2140_v5, %v2136_v3  ;;  %v1846_v12 = vpop.f32.mrb[52].mxu0  ;;  %v2072_v13 = vpop.f32.mrb[52].mxu1 }
 0x2a5   :  { %v3062_v14 = vadd.f32 %v1846_v12, %v3937_v44  ;;  %v3094_v55 = vadd.f32 %v2072_v13, %v3941_v48  ;;  %v1848_v26 = vpop.f32.mrb[53].mxu0  ;;  %v2074_v16 = vpop.f32.mrb[53].mxu1 }
 0x2a6   :  { %v3063_v18 = vadd.f32 %v1848_v26, %v3945_v59  ;;  %v3095_v10 = vadd.f32 %v2074_v16, %v3949_v60  ;;  %v1850_v19 = vpop.f32.mrb[54].mxu0  ;;  %v2076_v56 = vpop.f32.mrb[54].mxu1  ;;  %2524 = vmatprep.mubr.bf16.mxu0 %v2182_v9  ;;  %2621 = vmatprep.mubr.bf16.mxu1 %v2184_v11 }
 0x2a7   :  { %v3064_v20 = vadd.f32 %v1850_v19, %v3937_v44  ;;  %v3096_v21 = vadd.f32 %v2076_v56, %v3941_v48  ;;  %v1852_v22 = vpop.f32.mrb[55].mxu0  ;;  %v2078_v23 = vpop.f32.mrb[55].mxu1  ;;  %2525 = vmatmul.mubr.bf16.gmra.mrb[80].mxu0 %v2181_v6  ;;  %2622 = vmatmul.mubr.bf16.gmra.mrb[80].mxu1 %v2183_v8  ;;  %v2141_v27 = vmax.f32 %v3062_v14, 0.0  ;;  %v2143_v29 = vmax.f32 %v3094_v55, 0.0 }
 0x2a8   :  { %v3065_v24 = vadd.f32 %v1852_v22, %v3945_v59  ;;  %v3097_v25 = vadd.f32 %v2078_v23, %v3949_v60  ;;  %v2142_v34 = vmax.f32 %v3063_v18, 0.0  ;;  %v2144_v36 = vmax.f32 %v3095_v10, 0.0 }
 0x2a9   :  { %v2145_v42 = vmax.f32 %v3064_v20, 0.0  ;;  %v2147_v32 = vmax.f32 %v3096_v21, 0.0 }
 0x2aa   :  { %v2146_v46 = vmax.f32 %v3065_v24, 0.0  ;;  %v2148_v37 = vmax.f32 %v3097_v25, 0.0 }
 0x2ab   :  { %v2185_v38 = vpack.c.bf16 %v2145_v42, %v2141_v27  ;;  %v2187_v39 = vpack.c.bf16 %v2147_v32, %v2143_v29 }
 0x2ac   :  { %v2186_v7 = vpack.c.bf16 %v2146_v46, %v2142_v34  ;;  %v2188_v40 = vpack.c.bf16 %v2148_v37, %v2144_v36  ;;  %v1856_v41 = vpop.f32.mrb[56].mxu0  ;;  %v2082_v58 = vpop.f32.mrb[56].mxu1 }
 0x2ad   :  { %v3066_v43 = vadd.f32 %v1856_v41, %v3937_v44  ;;  %v3098_v45 = vadd.f32 %v2082_v58, %v3941_v48  ;;  %v1858_v47 = vpop.f32.mrb[57].mxu0  ;;  %v2084_v50 = vpop.f32.mrb[57].mxu1 }
 0x2ae   :  { %v3067_v57 = vadd.f32 %v1858_v47, %v3945_v59  ;;  %v3099_v49 = vadd.f32 %v2084_v50, %v3949_v60  ;;  %v1860_v31 = vpop.f32.mrb[58].mxu0  ;;  %v2086_v35 = vpop.f32.mrb[58].mxu1  ;;  %2532 = vmatprep.mubr.bf16.mxu0 %v2186_v7  ;;  %2629 = vmatprep.mubr.bf16.mxu1 %v2188_v40 }
 0x2af   :  { %v3068_v15 = vadd.f32 %v1860_v31, %v3937_v44  ;;  %v3100_v17 = vadd.f32 %v2086_v35, %v3941_v48  ;;  %v1862_v61 = vpop.f32.mrb[59].mxu0  ;;  %v2088_v62 = vpop.f32.mrb[59].mxu1  ;;  %2533 = vmatmul.mubr.bf16.gmra.mrb[84].mxu0 %v2185_v38  ;;  %2630 = vmatmul.mubr.bf16.gmra.mrb[84].mxu1 %v2187_v39  ;;  %v2149_v52 = vmax.f32 %v3066_v43, 0.0  ;;  %v2151_v1 = vmax.f32 %v3098_v45, 0.0 }
 0x2b0   :  { %v3069_v63 = vadd.f32 %v1862_v61, %v3945_v59  ;;  %v3101_v0 = vadd.f32 %v2088_v62, %v3949_v60  ;;  %v2150_v30 = vmax.f32 %v3067_v57, 0.0  ;;  %v2152_v2 = vmax.f32 %v3099_v49, 0.0 }
 0x2b1   :  { %v2153_v53 = vmax.f32 %v3068_v15, 0.0  ;;  %v2155_v28 = vmax.f32 %v3100_v17, 0.0 }
 0x2b2   :  { %v2154_v54 = vmax.f32 %v3069_v63, 0.0  ;;  %v2156_v51 = vmax.f32 %v3101_v0, 0.0 }
 0x2b3   :  { %v2189_v33 = vpack.c.bf16 %v2153_v53, %v2149_v52  ;;  %v2191_v3 = vpack.c.bf16 %v2155_v28, %v2151_v1 }
 0x2b4   :  { %v2190_v4 = vpack.c.bf16 %v2154_v54, %v2150_v30  ;;  %v2192_v5 = vpack.c.bf16 %v2156_v51, %v2152_v2  ;;  %v1866_v6 = vpop.f32.mrb[60].mxu0  ;;  %v2092_v8 = vpop.f32.mrb[60].mxu1 }
 0x2b5   :  { %v3070_v9 = vadd.f32 %v1866_v6, %v3937_v44  ;;  %v3102_v11 = vadd.f32 %v2092_v8, %v3941_v48  ;;  %v1868_v12 = vpop.f32.mrb[61].mxu0  ;;  %v2094_v13 = vpop.f32.mrb[61].mxu1 }
 0x2b6   :  { %v3071_v14 = vadd.f32 %v1868_v12, %v3945_v59  ;;  %v3103_v55 = vadd.f32 %v2094_v13, %v3949_v60  ;;  %v1870_v26 = vpop.f32.mrb[62].mxu0  ;;  %v2096_v16 = vpop.f32.mrb[62].mxu1  ;;  %2540 = vmatprep.mubr.bf16.mxu0 %v2190_v4  ;;  %2637 = vmatprep.mubr.bf16.mxu1 %v2192_v5 }
 0x2b7   :  { %v3072_v18 = vadd.f32 %v1870_v26, %v3937_v44  ;;  %v3104_v10 = vadd.f32 %v2096_v16, %v3941_v48  ;;  %v1872_v19 = vpop.f32.mrb[63].mxu0  ;;  %v2098_v56 = vpop.f32.mrb[63].mxu1  ;;  %2541 = vmatmul.mubr.bf16.gmra.mrb[88].mxu0 %v2189_v33  ;;  %2638 = vmatmul.mubr.bf16.gmra.mrb[88].mxu1 %v2191_v3  ;;  %v2157_v22 = vmax.f32 %v3070_v9, 0.0  ;;  %v2159_v23 = vmax.f32 %v3102_v11, 0.0 }
 0x2b8   :  { %v3073_v20 = vadd.f32 %v1872_v19, %v3945_v59  ;;  %v3105_v21 = vadd.f32 %v2098_v56, %v3949_v60  ;;  %v2158_v27 = vmax.f32 %v3071_v14, 0.0  ;;  %v2160_v29 = vmax.f32 %v3103_v55, 0.0  ;;  %v4018_v60 = vld [vmem:[%s4054_s6] ss:$0 sm:$0xff]  ;;  %s3627_s6 = smov [#allocation10]  }
 0x2b9   :  { %v2161_v24 = vmax.f32 %v3072_v18, 0.0  ;;  %v2163_v25 = vmax.f32 %v3104_v10, 0.0  ;;  %s2675_s30 = sshll.u32 %s3627_s6, 4  ;;  %s2676_s30 = int_to_ptr.vmem [resolvable:$true] %s2675_s30 }
 0x2ba   :  { %v2162_v42 = vmax.f32 %v3073_v20, 0.0  ;;  %v2164_v32 = vmax.f32 %v3105_v21, 0.0  ;;  %s3589_s8 = scalar_lea.vmem %s2676_s30, 2048  ;;  %p3594_p5 = scmp.lt.s32.totalorder %s2676_s30, %s2676_s30 }
 0x2bb   :  { %v2193_v34 = vpack.c.bf16 %v2161_v24, %v2157_v22  ;;  %v2195_v44 = vpack.c.bf16 %v2163_v25, %v2159_v23  ;;  %p3590_p4 = scmp.ne.s32.totalorder %s2676_s30, %s3589_s8  ;;  %p3595_p6 = scmp.lt.s32.totalorder %s3589_s8, %s3589_s8 }
 0x2bc   :  { %v2194_v36 = vpack.c.bf16 %v2162_v42, %v2158_v27  ;;  %v2196_v48 = vpack.c.bf16 %v2164_v32, %v2160_v29 }
 0x2bd   :  { %p3596_p7 = por %p3595_p6, %p3594_p5 }
 0x2be   :  { %2548 = vmatprep.mubr.bf16.mxu0 %v2194_v36  ;;  %2645 = vmatprep.mubr.bf16.mxu1 %v2196_v48 }
 0x2bf   :  { %2549 = vmatmul.mubr.bf16.gmra.mrb[92].mxu0 %v2193_v34  ;;  %2646 = vmatmul.mubr.bf16.gmra.mrb[92].mxu1 %v2195_v44  ;;  %p3597_p8 = pnand %p3596_p7, %p3590_p4 }
 0x35a   :  { %v2930_v46 = vpop.f32.mrb[64].mxu0  ;;  %v2994_v59 = vpop.f32.mrb[64].mxu1 }
 0x35b   :  { %v2931_v37 = vpop.f32.mrb[65].mxu0  ;;  %v2995_v38 = vpop.f32.mrb[65].mxu1 }
 0x35c   :  { %v2932_v39 = vadd.f32 %v2931_v37, %v2930_v46  ;;  %v2996_v7 = vadd.f32 %v2995_v38, %v2994_v59  ;;  %v2933_v40 = vpop.f32.mrb[66].mxu0  ;;  %v2997_v41 = vpop.f32.mrb[66].mxu1 }
 0x35d   :  { %v2934_v58 = vpop.f32.mrb[67].mxu0  ;;  %v2998_v43 = vpop.f32.mrb[67].mxu1 }
 0x35e   :  { %v2495_v45 = vadd.f32 %v2932_v39, %v4018_v60  ;;  %v2935_v47 = vadd.f32 %v2934_v58, %v2933_v40  ;;  %v2999_v50 = vadd.f32 %v2998_v43, %v2997_v41 }
 0x360   :  { %v2592_v57 = vadd.f32 %v2996_v7, %v2495_v45  ;;  %v2498_v49 = vadd.f32 %v2935_v47, %v4018_v60 }
 0x362   :  { %2654 = vst [vmem:[#allocation10] sm:$0xff] %v2592_v57  ;;  %v2595_v31 = vadd.f32 %v2999_v50, %v2498_v49  ;;  %v2936_v35 = vpop.f32.mrb[68].mxu0  ;;  %v3000_v15 = vpop.f32.mrb[68].mxu1 }
 0x363   :  { %v2937_v17 = vpop.f32.mrb[69].mxu0  ;;  %v3001_v61 = vpop.f32.mrb[69].mxu1 }
 0x364   :  { %2655 = vst [vmem:[#allocation10 + $0x8] sm:$0xff] %v2595_v31  ;;  %v2938_v62 = vadd.f32 %v2937_v17, %v2936_v35  ;;  %v3002_v63 = vadd.f32 %v3001_v61, %v3000_v15  ;;  %v2939_v0 = vpop.f32.mrb[70].mxu0  ;;  %v3003_v52 = vpop.f32.mrb[70].mxu1 }
 0x365   :  { %v2940_v1 = vpop.f32.mrb[71].mxu0  ;;  %v3004_v53 = vpop.f32.mrb[71].mxu1 }
 0x366   :  { %v2503_v28 = vadd.f32 %v2938_v62, %v4018_v60  ;;  %v2941_v30 = vadd.f32 %v2940_v1, %v2939_v0  ;;  %v3005_v2 = vadd.f32 %v3004_v53, %v3003_v52 }
 0x368   :  { %v2600_v54 = vadd.f32 %v3002_v63, %v2503_v28  ;;  %v2506_v51 = vadd.f32 %v2941_v30, %v4018_v60 }
 0x36a   :  { %2656 = vst [vmem:[#allocation10 + $0x10] sm:$0xff] %v2600_v54  ;;  %v2603_v33 = vadd.f32 %v3005_v2, %v2506_v51  ;;  %v2942_v3 = vpop.f32.mrb[72].mxu0  ;;  %v3006_v4 = vpop.f32.mrb[72].mxu1 }
 0x36b   :  { %v2943_v5 = vpop.f32.mrb[73].mxu0  ;;  %v3007_v6 = vpop.f32.mrb[73].mxu1 }
 0x36c   :  { %2657 = vst [vmem:[#allocation10 + $0x18] sm:$0xff] %v2603_v33  ;;  %v2944_v8 = vadd.f32 %v2943_v5, %v2942_v3  ;;  %v3008_v9 = vadd.f32 %v3007_v6, %v3006_v4  ;;  %v2945_v11 = vpop.f32.mrb[74].mxu0  ;;  %v3009_v12 = vpop.f32.mrb[74].mxu1 }
 0x36d   :  { %v2946_v13 = vpop.f32.mrb[75].mxu0  ;;  %v3010_v14 = vpop.f32.mrb[75].mxu1 }
 0x36e   :  { %v2511_v55 = vadd.f32 %v2944_v8, %v4018_v60  ;;  %v2947_v26 = vadd.f32 %v2946_v13, %v2945_v11  ;;  %v3011_v16 = vadd.f32 %v3010_v14, %v3009_v12 }
 0x370   :  { %v2608_v18 = vadd.f32 %v3008_v9, %v2511_v55  ;;  %v2514_v10 = vadd.f32 %v2947_v26, %v4018_v60 }
 0x372   :  { %2658 = vst [vmem:[#allocation10 + $0x20] sm:$0xff] %v2608_v18  ;;  %v2611_v19 = vadd.f32 %v3011_v16, %v2514_v10  ;;  %v2948_v56 = vpop.f32.mrb[76].mxu0  ;;  %v3012_v20 = vpop.f32.mrb[76].mxu1 }
 0x373   :  { %v2949_v21 = vpop.f32.mrb[77].mxu0  ;;  %v3013_v22 = vpop.f32.mrb[77].mxu1 }
 0x374   :  { %2659 = vst [vmem:[#allocation10 + $0x28] sm:$0xff] %v2611_v19  ;;  %v2950_v23 = vadd.f32 %v2949_v21, %v2948_v56  ;;  %v3014_v24 = vadd.f32 %v3013_v22, %v3012_v20  ;;  %v2951_v25 = vpop.f32.mrb[78].mxu0  ;;  %v3015_v27 = vpop.f32.mrb[78].mxu1 }
 0x375   :  { %v2952_v29 = vpop.f32.mrb[79].mxu0  ;;  %v3016_v42 = vpop.f32.mrb[79].mxu1 }
 0x376   :  { %v2519_v32 = vadd.f32 %v2950_v23, %v4018_v60  ;;  %v2953_v34 = vadd.f32 %v2952_v29, %v2951_v25  ;;  %v3017_v44 = vadd.f32 %v3016_v42, %v3015_v27 }
 0x378   :  { %v2616_v36 = vadd.f32 %v3014_v24, %v2519_v32  ;;  %v2522_v48 = vadd.f32 %v2953_v34, %v4018_v60 }
 0x37a   :  { %2660 = vst [vmem:[#allocation10 + $0x30] sm:$0xff] %v2616_v36  ;;  %v2619_v46 = vadd.f32 %v3017_v44, %v2522_v48  ;;  %v2954_v59 = vpop.f32.mrb[80].mxu0  ;;  %v3018_v37 = vpop.f32.mrb[80].mxu1 }
 0x37b   :  { %v2955_v38 = vpop.f32.mrb[81].mxu0  ;;  %v3019_v39 = vpop.f32.mrb[81].mxu1 }
 0x37c   :  { %2661 = vst [vmem:[#allocation10 + $0x38] sm:$0xff] %v2619_v46  ;;  %v2956_v7 = vadd.f32 %v2955_v38, %v2954_v59  ;;  %v3020_v40 = vadd.f32 %v3019_v39, %v3018_v37  ;;  %v2957_v41 = vpop.f32.mrb[82].mxu0  ;;  %v3021_v58 = vpop.f32.mrb[82].mxu1 }
 0x37d   :  { %v2958_v43 = vpop.f32.mrb[83].mxu0  ;;  %v3022_v45 = vpop.f32.mrb[83].mxu1 }
 0x37e   :  { %v2527_v47 = vadd.f32 %v2956_v7, %v4018_v60  ;;  %v2959_v50 = vadd.f32 %v2958_v43, %v2957_v41  ;;  %v3023_v57 = vadd.f32 %v3022_v45, %v3021_v58 }
 0x380   :  { %v2624_v49 = vadd.f32 %v3020_v40, %v2527_v47  ;;  %v2530_v31 = vadd.f32 %v2959_v50, %v4018_v60 }
 0x382   :  { %2662 = vst [vmem:[#allocation10 + $0x40] sm:$0xff] %v2624_v49  ;;  %v2627_v35 = vadd.f32 %v3023_v57, %v2530_v31  ;;  %v2960_v15 = vpop.f32.mrb[84].mxu0  ;;  %v3024_v17 = vpop.f32.mrb[84].mxu1 }
 0x383   :  { %v2961_v61 = vpop.f32.mrb[85].mxu0  ;;  %v3025_v62 = vpop.f32.mrb[85].mxu1 }
 0x384   :  { %2663 = vst [vmem:[#allocation10 + $0x48] sm:$0xff] %v2627_v35  ;;  %v2962_v63 = vadd.f32 %v2961_v61, %v2960_v15  ;;  %v3026_v0 = vadd.f32 %v3025_v62, %v3024_v17  ;;  %v2963_v52 = vpop.f32.mrb[86].mxu0  ;;  %v3027_v1 = vpop.f32.mrb[86].mxu1 }
 0x385   :  { %v2964_v53 = vpop.f32.mrb[87].mxu0  ;;  %v3028_v28 = vpop.f32.mrb[87].mxu1 }
 0x386   :  { %v2535_v30 = vadd.f32 %v2962_v63, %v4018_v60  ;;  %v2965_v2 = vadd.f32 %v2964_v53, %v2963_v52  ;;  %v3029_v54 = vadd.f32 %v3028_v28, %v3027_v1 }
 0x388   :  { %v2632_v51 = vadd.f32 %v3026_v0, %v2535_v30  ;;  %v2538_v33 = vadd.f32 %v2965_v2, %v4018_v60 }
 0x38a   :  { %2664 = vst [vmem:[#allocation10 + $0x50] sm:$0xff] %v2632_v51  ;;  %v2635_v3 = vadd.f32 %v3029_v54, %v2538_v33  ;;  %v2966_v4 = vpop.f32.mrb[88].mxu0  ;;  %v3030_v5 = vpop.f32.mrb[88].mxu1 }
 0x38b   :  { %v2967_v6 = vpop.f32.mrb[89].mxu0  ;;  %v3031_v8 = vpop.f32.mrb[89].mxu1 }
 0x38c   :  { %2665 = vst [vmem:[#allocation10 + $0x58] sm:$0xff] %v2635_v3  ;;  %v2968_v9 = vadd.f32 %v2967_v6, %v2966_v4  ;;  %v3032_v11 = vadd.f32 %v3031_v8, %v3030_v5  ;;  %v2969_v12 = vpop.f32.mrb[90].mxu0  ;;  %v3033_v13 = vpop.f32.mrb[90].mxu1 }
 0x38d   :  { %v2970_v14 = vpop.f32.mrb[91].mxu0  ;;  %v3034_v55 = vpop.f32.mrb[91].mxu1 }
 0x38e   :  { %v2543_v26 = vadd.f32 %v2968_v9, %v4018_v60  ;;  %v2971_v16 = vadd.f32 %v2970_v14, %v2969_v12  ;;  %v3035_v18 = vadd.f32 %v3034_v55, %v3033_v13 }
 0x390   :  { %v2640_v10 = vadd.f32 %v3032_v11, %v2543_v26  ;;  %v2546_v19 = vadd.f32 %v2971_v16, %v4018_v60 }
 0x392   :  { %2666 = vst [vmem:[#allocation10 + $0x60] sm:$0xff] %v2640_v10  ;;  %v2643_v56 = vadd.f32 %v3035_v18, %v2546_v19  ;;  %v2972_v20 = vpop.f32.mrb[92].mxu0  ;;  %v3036_v21 = vpop.f32.mrb[92].mxu1 }
 0x393   :  { %v2973_v22 = vpop.f32.mrb[93].mxu0  ;;  %v3037_v23 = vpop.f32.mrb[93].mxu1 }
 0x394   :  { %2667 = vst [vmem:[#allocation10 + $0x68] sm:$0xff] %v2643_v56  ;;  %v2974_v24 = vadd.f32 %v2973_v22, %v2972_v20  ;;  %v3038_v25 = vadd.f32 %v3037_v23, %v3036_v21  ;;  %v2975_v27 = vpop.f32.mrb[94].mxu0  ;;  %v3039_v29 = vpop.f32.mrb[94].mxu1 }
 0x395   :  { %v2976_v42 = vpop.f32.mrb[95].mxu0  ;;  %v3040_v32 = vpop.f32.mrb[95].mxu1 }
 0x396   :  { %v2551_v34 = vadd.f32 %v2974_v24, %v4018_v60  ;;  %v2977_v44 = vadd.f32 %v2976_v42, %v2975_v27  ;;  %v3041_v36 = vadd.f32 %v3040_v32, %v3039_v29 }
 0x398   :  { %v2648_v48 = vadd.f32 %v3038_v25, %v2551_v34  ;;  %v2554_v46 = vadd.f32 %v2977_v44, %v4018_v60 }
 0x39a   :  { %2668 = vst [vmem:[#allocation10 + $0x70] sm:$0xff] %v2648_v48  ;;  %v2651_v59 = vadd.f32 %v3041_v36, %v2554_v46 }
 0x39c   :  { %2669 = vst [vmem:[#allocation10 + $0x78] sm:$0xff] %v2651_v59 }
 0x39d   :  { %3600 = shalt.err (!%p3597_p8)
}
 0x39e   :  { %s3601_s11 = scalar_lea.hbm %s4055_s7, 2048 }
 0x39f   :  { %p3602_p9 = scmp.ne.s32.totalorder %s4055_s7, %s3601_s11  ;;  %p3605_p10 = scmp.lt.u32.totalorder %s3601_s11, %s4055_s7 }
 0x3a1   :  { %p3607_p11 = pnand %p3605_p10, %p3602_p9 }
 0x3a3   :  { %3610 = shalt.err (!%p3607_p11)
}
 0x3a4   :  { %s3628_s27 = smov 128   ;;  %s3629_s17 = smov 8  }
 0x3a5   :  { %2681 = dma.vmem_to_hbm [thread:$0]  %s2676_s30, 2048, %s4055_s7, [#allocation4], %s3628_s27, %s3628_s27, %s3629_s17  }
 0x3a6   :  { %3617 = dma.done.wait [#allocation4], 2048  }
 0x3a7   :  { %3618 = vsyncadd [#allocation4], 4294965248 }
 0x3a8   :  { %2685 = vsyncpa [#allocation3], 1 }
 0x3a9   :  { %2686 = vsyncpa [#allocation6], 1 }
 0x3aa   :  { %2687 = vsyncpa [#allocation9], 1 }
 0x3ab   :  { %2688 = vsyncpa [#allocation4], 1 }

</bundles_post_ra>
